<compile_context>
chip_gen: v5e
topology: v5e:2x2
jax: 0.10.0
libtpu: 0.0.40
codegen_flags: <defaults>
</compile_context>

<pallas_src>
import functools

import jax
import jax.numpy as jnp
from jax.experimental import pallas as pl
from jax.experimental.pallas import tpu as pltpu  # noqa: F401  (TPU backend)


# ----------------------------------------------------------------------------
# Pallas kernel 1: fused conv matmul  (transposed layout, lane-dense output)
#   out (Cout, M) = act(W (Cout,K) @ patches^T (K,M) + b) -> [BN -> ReLU]
# ----------------------------------------------------------------------------
def _conv_mm_kernel(*refs, act, has_bn, relu_after_bn, eps):
    if has_bn:
        w_ref, p_ref, b_ref, g_ref, be_ref, o_ref = refs
    else:
        w_ref, p_ref, b_ref, o_ref = refs
        g_ref = be_ref = None

    # bf16 operands, f32 accumulation on the MXU.
    acc = jnp.dot(w_ref[...], p_ref[...], preferred_element_type=jnp.float32)
    acc = acc + b_ref[...]                        # (Cout, 1) broadcast over lanes

    if act == "relu":
        acc = jnp.maximum(acc, 0.0)
    elif act == "sigmoid":
        acc = jax.nn.sigmoid(acc)

    if has_bn:
        # Per-channel batch stats over the lane axis (M = N*H*W), one pass:
        # sum and sum-of-squares -> biased variance.
        m = acc.shape[1]
        inv_m = 1.0 / m
        s1 = jnp.sum(acc, axis=1, keepdims=True)
        s2 = jnp.sum(acc * acc, axis=1, keepdims=True)
        mean = s1 * inv_m
        var = jnp.maximum(s2 * inv_m - mean * mean, 0.0)
        acc = (acc - mean) * jax.lax.rsqrt(var + eps) * g_ref[...] + be_ref[...]
        if relu_after_bn:
            acc = jnp.maximum(acc, 0.0)

    o_ref[...] = acc.astype(o_ref.dtype)


def conv_mm(wm, patches_T, bias, *, bn=None, act="none", relu_after_bn=False,
            eps=1e-5):
    """wm:(Cout,K)  patches_T:(K,M)  -> (Cout,M) f32 with fused epilogue."""
    Cout, K = wm.shape
    K2, M = patches_T.shape
    assert K == K2
    args = [wm.astype(jnp.bfloat16),
            patches_T.astype(jnp.bfloat16),
            bias.reshape(Cout, 1).astype(jnp.float32)]
    has_bn = bn is not None
    if has_bn:
        gamma, beta = bn
        args.append(gamma.reshape(Cout, 1).astype(jnp.float32))
        args.append(beta.reshape(Cout, 1).astype(jnp.float32))
    kernel = functools.partial(_conv_mm_kernel, act=act, has_bn=has_bn,
                               relu_after_bn=relu_after_bn, eps=eps)
    # Whole-array blocks; every operand comfortably fits VMEM at these sizes.
    return pl.pallas_call(
        kernel,
        out_shape=jax.ShapeDtypeStruct((Cout, M), jnp.float32),
    )(*args)


# ----------------------------------------------------------------------------
# Pallas kernel 2: fused linear chain  (encoder_lin + decoder_lin + lead ReLU)
#   x(N,288) -> 128 -> embed -> 128 -> 288, intermediates stay in VMEM.
# ----------------------------------------------------------------------------
def _linear_chain_kernel(x_ref, w1_ref, b1_ref, w2_ref, b2_ref,
                         w3_ref, b3_ref, w4_ref, b4_ref, o_ref):
    h = jnp.dot(x_ref[...], w1_ref[...], preferred_element_type=jnp.float32)
    h = jnp.maximum(h + b1_ref[...], 0.0)                       # Linear + ReLU
    e = jnp.dot(h, w2_ref[...], preferred_element_type=jnp.float32) + b2_ref[...]
    d = jnp.dot(e, w3_ref[...], preferred_element_type=jnp.float32)
    d = jnp.maximum(d + b3_ref[...], 0.0)                       # Linear + ReLU
    d = jnp.dot(d, w4_ref[...], preferred_element_type=jnp.float32) + b4_ref[...]
    d = jnp.maximum(d, 0.0)            # decoder_conv's leading ReLU, fused here
    o_ref[...] = d.astype(o_ref.dtype)


def linear_chain(x, p):
    N = x.shape[0]
    f32 = jnp.float32
    args = [x.astype(f32),
            p["el1_w"].T.astype(f32), p["el1_b"].reshape(1, -1).astype(f32),
            p["el2_w"].T.astype(f32), p["el2_b"].reshape(1, -1).astype(f32),
            p["dl1_w"].T.astype(f32), p["dl1_b"].reshape(1, -1).astype(f32),
            p["dl2_w"].T.astype(f32), p["dl2_b"].reshape(1, -1).astype(f32)]
    return pl.pallas_call(
        _linear_chain_kernel,
        out_shape=jax.ShapeDtypeStruct((N, 288), jnp.float32),
    )(*args)


# ----------------------------------------------------------------------------
# Conv / ConvTranspose via C-major im2col + fused Pallas matmul
# (glue ops are pad / strided slice / stack / contiguous reshape only)
# ----------------------------------------------------------------------------
def _im2col_cm(x_c, kh, kw, stride, padding):
    """x_c:(C,N,H,W) -> patches^T:(C*kh*kw, N*Ho*Wo), Ho, Wo  (no transposes)."""
    C, N, H, W = x_c.shape
    xp = jnp.pad(x_c, ((0, 0), (0, 0), (padding, padding), (padding, padding)))
    Hp, Wp = H + 2 * padding, W + 2 * padding
    Ho = (Hp - kh) // stride + 1
    Wo = (Wp - kw) // stride + 1
    cols = []
    for i in range(kh):
        for j in range(kw):
            cols.append(xp[:, :, i:i + stride * Ho:stride, j:j + stride * Wo:stride])
    pt = jnp.stack(cols, axis=1)                 # (C, kh*kw, N, Ho, Wo)
    return pt.reshape(C * kh * kw, N * Ho * Wo), Ho, Wo


def _pad_k(wm, patches_T, multiple=16):
    """Zero-pad the contraction dim to a multiple of 16 (bf16 sublane packing)."""
    K = wm.shape[1]
    Kp = -(-K // multiple) * multiple
    if Kp != K:
        wm = jnp.pad(wm, ((0, 0), (0, Kp - K)))
        patches_T = jnp.pad(patches_T, ((0, Kp - K), (0, 0)))
    return wm, patches_T


def conv2d_cm(x_c, w, b, *, stride, padding, act="none", bn=None,
              relu_after_bn=False):
    """Conv2d in C-major layout: x_c (Cin,N,H,W), w (Cout,Cin,kh,kw) -> (Cout,N,Ho,Wo)."""
    Cout, Cin, kh, kw = w.shape
    N = x_c.shape[1]
    patches_T, Ho, Wo = _im2col_cm(x_c, kh, kw, stride, padding)
    wm = w.reshape(Cout, Cin * kh * kw)
    wm, patches_T = _pad_k(wm, patches_T)
    out = conv_mm(wm, patches_T, b, bn=bn, act=act,
                  relu_after_bn=relu_after_bn)               # (Cout, N*Ho*Wo)
    return out.reshape(Cout, N, Ho, Wo)


def conv_transpose2d_cm(x_c, w_t, b, *, stride, padding, output_padding,
                        act="none", bn=None, relu_after_bn=False):
    """ConvTranspose2d in C-major layout: x_c (Cin,N,H,W), w_t (Cin,Cout,kh,kw)."""
    Cin, N, H, W = x_c.shape
    _, Cout, kh, kw = w_t.shape
    # fractionally-strided conv: dilate input, pad by (k-1-p) (+output_padding
    # on bottom/right), convolve stride-1 with flipped, channel-swapped kernel.
    Hd = (H - 1) * stride + 1
    Wd = (W - 1) * stride + 1
    xd = jnp.zeros((Cin, N, Hd, Wd), x_c.dtype).at[:, :, ::stride, ::stride].set(x_c)
    ph, pw = kh - 1 - padding, kw - 1 - padding
    xp = jnp.pad(xd, ((0, 0), (0, 0),
                      (ph, ph + output_padding), (pw, pw + output_padding)))
    w_conv = jnp.flip(w_t, axis=(2, 3)).transpose(1, 0, 2, 3)  # (Cout,Cin,kh,kw)
    return conv2d_cm(xp, w_conv, b, stride=1, padding=0, act=act, bn=bn,
                     relu_after_bn=relu_after_bn)


# ----------------------------------------------------------------------------
# Parameters (deterministic synthetic init, shapes from the torch module)
# ----------------------------------------------------------------------------
def init_params(embed_dim=8):
    key = jax.random.PRNGKey(0)

    def nrm(key, shape, scale=0.1):
        return scale * jax.random.normal(key, shape, dtype=jnp.float32)

    keys = jax.random.split(key, 20)
    p = {
        # encoder cnn
        "ec1_w": nrm(keys[0], (8, 1, 3, 3)),   "ec1_b": nrm(keys[1], (8,)),
        "bn1_g": jnp.ones((8,), jnp.float32),  "bn1_b": jnp.zeros((8,), jnp.float32),
        "ec2_w": nrm(keys[2], (16, 8, 3, 3)),  "ec2_b": nrm(keys[3], (16,)),
        "bn2_g": jnp.ones((16,), jnp.float32), "bn2_b": jnp.zeros((16,), jnp.float32),
        "ec3_w": nrm(keys[4], (32, 16, 3, 3)), "ec3_b": nrm(keys[5], (32,)),
        # encoder lin
        "el1_w": nrm(keys[6], (128, 288)),     "el1_b": nrm(keys[7], (128,)),
        "el2_w": nrm(keys[8], (embed_dim, 128)), "el2_b": nrm(keys[9], (embed_dim,)),
        # decoder lin
        "dl1_w": nrm(keys[10], (128, embed_dim)), "dl1_b": nrm(keys[11], (128,)),
        "dl2_w": nrm(keys[12], (288, 128)),    "dl2_b": nrm(keys[13], (288,)),
        # decoder conv (ConvTranspose2d weights are (Cin, Cout, kh, kw))
        "dc1_w": nrm(keys[14], (32, 16, 3, 3)), "dc1_b": nrm(keys[15], (16,)),
        "dbn1_g": jnp.ones((16,), jnp.float32), "dbn1_b": jnp.zeros((16,), jnp.float32),
        "dc2_w": nrm(keys[16], (16, 8, 3, 3)),  "dc2_b": nrm(keys[17], (8,)),
        "dbn2_g": jnp.ones((8,), jnp.float32),  "dbn2_b": jnp.zeros((8,), jnp.float32),
        "dc3_w": nrm(keys[18], (8, 1, 3, 3)),   "dc3_b": nrm(keys[19], (1,)),
    }
    return p


# ----------------------------------------------------------------------------
# Forward pass (mirrors Autoencoder_normal.forward)
# ----------------------------------------------------------------------------
def autoencoder_forward(x, p):
    """x: (N, H, W) float -> decoded: (N, 1, 28, 28), like the torch module."""
    N = x.shape[0]
    # unsqueeze(1) + switch to C-major (C, N, H, W) working layout.
    x_c = x.astype(jnp.float32)[None, :, :, :]                        # (1,N,28,28)

    # ---- encoder_cnn: Conv + ReLU + BatchNorm fused per layer ----
    h = conv2d_cm(x_c, p["ec1_w"], p["ec1_b"], stride=2, padding=1,
                  act="relu", bn=(p["bn1_g"], p["bn1_b"]))            # (8,N,14,14)
    h = conv2d_cm(h, p["ec2_w"], p["ec2_b"], stride=2, padding=1,
                  act="relu", bn=(p["bn2_g"], p["bn2_b"]))            # (16,N,7,7)
    h = conv2d_cm(h, p["ec3_w"], p["ec3_b"], stride=2, padding=0,
                  act="relu")                                         # (32,N,3,3)

    # ---- flatten boundary (tiny, ~2 KB): (C,N,3,3) -> (N, 288) c-major rows ----
    hf = h.reshape(32, N, 9).transpose(1, 0, 2).reshape(N, 288)

    # ---- encoder_lin + decoder_lin + decoder_conv leading ReLU, one kernel ----
    # (.squeeze() in the torch module is a no-op for batch > 1.)
    d = linear_chain(hf, p)                                           # (N, 288)

    # ---- unflatten boundary (tiny): (N,288) -> (32, N, 3, 3) ----
    d = d.reshape(N, 32, 9).transpose(1, 0, 2).reshape(32, N, 3, 3)

    # ---- decoder_conv: ConvTranspose + BatchNorm + ReLU fused per layer ----
    d = conv_transpose2d_cm(d, p["dc1_w"], p["dc1_b"], stride=2, padding=0,
                            output_padding=0,
                            bn=(p["dbn1_g"], p["dbn1_b"]),
                            relu_after_bn=True)                       # (16,N,7,7)
    d = conv_transpose2d_cm(d, p["dc2_w"], p["dc2_b"], stride=2, padding=1,
                            output_padding=1,
                            bn=(p["dbn2_g"], p["dbn2_b"]),
                            relu_after_bn=True)                       # (8,N,14,14)
    d = conv_transpose2d_cm(d, p["dc3_w"], p["dc3_b"], stride=2, padding=1,
                            output_padding=1, act="sigmoid")          # (1,N,28,28)

    # back to NCHW like the torch module.
    return d.transpose(1, 0, 2, 3)                                    # (N,1,28,28)


if __name__ == "__main__":
    # Spatial size must be 28 so the encoder bottleneck is exactly 3x3x32.
    key = jax.random.PRNGKey(0)
    x = jax.random.uniform(key, (2, 28, 28), dtype=jnp.float32)       # batch=2

    params = init_params(embed_dim=8)
    fwd = jax.jit(lambda xx: autoencoder_forward(xx, params))
    out = fwd(x)
    jax.block_until_ready(out)

    assert out.shape == (2, 1, 28, 28), out.shape
    assert bool(jnp.all(jnp.isfinite(out)))
    assert bool(jnp.all((out >= 0.0) & (out <= 1.0)))                 # sigmoid range
    print("KERNEL_OK")
</pallas_src>

<mosaic_0001>
module attributes {stable_mosaic.version = 11 : i64} {
  func.func @_conv_mm_kernel(%arg0: memref<8x16xbf16, #tpu.memory_space<vmem>>, %arg1: memref<16x392xbf16, #tpu.memory_space<vmem>>, %arg2: memref<8x1xf32, #tpu.memory_space<vmem>>, %arg3: memref<8x1xf32, #tpu.memory_space<vmem>>, %arg4: memref<8x1xf32, #tpu.memory_space<vmem>>, %arg5: memref<8x392xf32, #tpu.memory_space<vmem>>) attributes {dimension_semantics = [], scalar_prefetch = 0 : i64, scratch_operands = 0 : i64, tpu.core_type = #tpu.core_type<tc>} {
    %c0 = arith.constant 0 : index
    %c0_0 = arith.constant 0 : index
    %0 = vector.load %arg0[%c0, %c0_0] : memref<8x16xbf16, #tpu.memory_space<vmem>>, vector<8x16xbf16>
    %c0_1 = arith.constant 0 : index
    %c0_2 = arith.constant 0 : index
    %1 = vector.load %arg1[%c0_1, %c0_2] : memref<16x392xbf16, #tpu.memory_space<vmem>>, vector<16x392xbf16>
    %cst = arith.constant dense<0.000000e+00> : vector<8x392xf32>
    %2 = tpu.matmul %0, %1, %cst {dimension_numbers = #tpu.dot_dimension_numbers<[1], [0], [0], [1], [0, 0, 1, 1], [], []>} : vector<8x16xbf16>, vector<16x392xbf16>, vector<8x392xf32> -> vector<8x392xf32>
    %c0_3 = arith.constant 0 : index
    %c0_4 = arith.constant 0 : index
    %3 = vector.load %arg2[%c0_3, %c0_4] : memref<8x1xf32, #tpu.memory_space<vmem>>, vector<8x1xf32>
    %4 = vector.broadcast %3 : vector<8x1xf32> to vector<8x392xf32>
    %5 = arith.addf %2, %4 : vector<8x392xf32>
    %cst_5 = arith.constant 0.000000e+00 : f32
    %6 = vector.broadcast %cst_5 : f32 to vector<8x392xf32>
    %7 = arith.maximumf %5, %6 : vector<8x392xf32>
    %cst_6 = arith.constant dense<0.000000e+00> : vector<8xf32>
    %8 = vector.multi_reduction <add>, %7, %cst_6 [1] : vector<8x392xf32> to vector<8xf32>
    %9 = vector.shape_cast %8 : vector<8xf32> to vector<8x1xf32>
    %10 = arith.mulf %7, %7 : vector<8x392xf32>
    %cst_7 = arith.constant dense<0.000000e+00> : vector<8xf32>
    %11 = vector.multi_reduction <add>, %10, %cst_7 [1] : vector<8x392xf32> to vector<8xf32>
    %12 = vector.shape_cast %11 : vector<8xf32> to vector<8x1xf32>
    %cst_8 = arith.constant 0.00255102036 : f32
    %13 = vector.broadcast %cst_8 : f32 to vector<8x1xf32>
    %14 = arith.mulf %9, %13 : vector<8x1xf32>
    %cst_9 = arith.constant 0.00255102036 : f32
    %15 = vector.broadcast %cst_9 : f32 to vector<8x1xf32>
    %16 = arith.mulf %12, %15 : vector<8x1xf32>
    %17 = arith.mulf %14, %14 : vector<8x1xf32>
    %18 = arith.subf %16, %17 : vector<8x1xf32>
    %cst_10 = arith.constant 0.000000e+00 : f32
    %19 = vector.broadcast %cst_10 : f32 to vector<8x1xf32>
    %20 = arith.maximumf %18, %19 : vector<8x1xf32>
    %21 = vector.broadcast %14 : vector<8x1xf32> to vector<8x392xf32>
    %22 = arith.subf %7, %21 : vector<8x392xf32>
    %cst_11 = arith.constant 9.99999974E-6 : f32
    %23 = vector.broadcast %cst_11 : f32 to vector<8x1xf32>
    %24 = arith.addf %20, %23 : vector<8x1xf32>
    %25 = math.rsqrt %24 : vector<8x1xf32>
    %26 = vector.broadcast %25 : vector<8x1xf32> to vector<8x392xf32>
    %27 = arith.mulf %22, %26 : vector<8x392xf32>
    %c0_12 = arith.constant 0 : index
    %c0_13 = arith.constant 0 : index
    %28 = vector.load %arg3[%c0_12, %c0_13] : memref<8x1xf32, #tpu.memory_space<vmem>>, vector<8x1xf32>
    %29 = vector.broadcast %28 : vector<8x1xf32> to vector<8x392xf32>
    %30 = arith.mulf %27, %29 : vector<8x392xf32>
    %c0_14 = arith.constant 0 : index
    %c0_15 = arith.constant 0 : index
    %31 = vector.load %arg4[%c0_14, %c0_15] : memref<8x1xf32, #tpu.memory_space<vmem>>, vector<8x1xf32>
    %32 = vector.broadcast %31 : vector<8x1xf32> to vector<8x392xf32>
    %33 = arith.addf %30, %32 : vector<8x392xf32>
    %c0_16 = arith.constant 0 : index
    %c0_17 = arith.constant 0 : index
    %34 = vector.load %arg5[%c0_16, %c0_17] : memref<8x392xf32, #tpu.memory_space<vmem>>, vector<8x392xf32>
    tpu.vector_store %arg5[%c0_16, %c0_17], %33 {strides = array<i32>} : memref<8x392xf32, #tpu.memory_space<vmem>>, vector<8x392xf32>,
    return
  }
}

module attributes {stable_mosaic.version = 11 : i64} {
  func.func @_conv_mm_kernel(%arg0: memref<16x80xbf16, #tpu.memory_space<vmem>>, %arg1: memref<80x98xbf16, #tpu.memory_space<vmem>>, %arg2: memref<16x1xf32, #tpu.memory_space<vmem>>, %arg3: memref<16x1xf32, #tpu.memory_space<vmem>>, %arg4: memref<16x1xf32, #tpu.memory_space<vmem>>, %arg5: memref<16x98xf32, #tpu.memory_space<vmem>>) attributes {dimension_semantics = [], scalar_prefetch = 0 : i64, scratch_operands = 0 : i64, tpu.core_type = #tpu.core_type<tc>} {
    %c0 = arith.constant 0 : index
    %c0_0 = arith.constant 0 : index
    %0 = vector.load %arg0[%c0, %c0_0] : memref<16x80xbf16, #tpu.memory_space<vmem>>, vector<16x80xbf16>
    %c0_1 = arith.constant 0 : index
    %c0_2 = arith.constant 0 : index
    %1 = vector.load %arg1[%c0_1, %c0_2] : memref<80x98xbf16, #tpu.memory_space<vmem>>, vector<80x98xbf16>
    %cst = arith.constant dense<0.000000e+00> : vector<16x98xf32>
    %2 = tpu.matmul %0, %1, %cst {dimension_numbers = #tpu.dot_dimension_numbers<[1], [0], [0], [1], [0, 0, 1, 1], [], []>} : vector<16x80xbf16>, vector<80x98xbf16>, vector<16x98xf32> -> vector<16x98xf32>
    %c0_3 = arith.constant 0 : index
    %c0_4 = arith.constant 0 : index
    %3 = vector.load %arg2[%c0_3, %c0_4] : memref<16x1xf32, #tpu.memory_space<vmem>>, vector<16x1xf32>
    %4 = vector.broadcast %3 : vector<16x1xf32> to vector<16x98xf32>
    %5 = arith.addf %2, %4 : vector<16x98xf32>
    %cst_5 = arith.constant 0.000000e+00 : f32
    %6 = vector.broadcast %cst_5 : f32 to vector<16x98xf32>
    %7 = arith.maximumf %5, %6 : vector<16x98xf32>
    %cst_6 = arith.constant dense<0.000000e+00> : vector<16xf32>
    %8 = vector.multi_reduction <add>, %7, %cst_6 [1] : vector<16x98xf32> to vector<16xf32>
    %9 = vector.shape_cast %8 : vector<16xf32> to vector<16x1xf32>
    %10 = arith.mulf %7, %7 : vector<16x98xf32>
    %cst_7 = arith.constant dense<0.000000e+00> : vector<16xf32>
    %11 = vector.multi_reduction <add>, %10, %cst_7 [1] : vector<16x98xf32> to vector<16xf32>
    %12 = vector.shape_cast %11 : vector<16xf32> to vector<16x1xf32>
    %cst_8 = arith.constant 0.0102040814 : f32
    %13 = vector.broadcast %cst_8 : f32 to vector<16x1xf32>
    %14 = arith.mulf %9, %13 : vector<16x1xf32>
    %cst_9 = arith.constant 0.0102040814 : f32
    %15 = vector.broadcast %cst_9 : f32 to vector<16x1xf32>
    %16 = arith.mulf %12, %15 : vector<16x1xf32>
    %17 = arith.mulf %14, %14 : vector<16x1xf32>
    %18 = arith.subf %16, %17 : vector<16x1xf32>
    %cst_10 = arith.constant 0.000000e+00 : f32
    %19 = vector.broadcast %cst_10 : f32 to vector<16x1xf32>
    %20 = arith.maximumf %18, %19 : vector<16x1xf32>
    %21 = vector.broadcast %14 : vector<16x1xf32> to vector<16x98xf32>
    %22 = arith.subf %7, %21 : vector<16x98xf32>
    %cst_11 = arith.constant 9.99999974E-6 : f32
    %23 = vector.broadcast %cst_11 : f32 to vector<16x1xf32>
    %24 = arith.addf %20, %23 : vector<16x1xf32>
    %25 = math.rsqrt %24 : vector<16x1xf32>
    %26 = vector.broadcast %25 : vector<16x1xf32> to vector<16x98xf32>
    %27 = arith.mulf %22, %26 : vector<16x98xf32>
    %c0_12 = arith.constant 0 : index
    %c0_13 = arith.constant 0 : index
    %28 = vector.load %arg3[%c0_12, %c0_13] : memref<16x1xf32, #tpu.memory_space<vmem>>, vector<16x1xf32>
    %29 = vector.broadcast %28 : vector<16x1xf32> to vector<16x98xf32>
    %30 = arith.mulf %27, %29 : vector<16x98xf32>
    %c0_14 = arith.constant 0 : index
    %c0_15 = arith.constant 0 : index
    %31 = vector.load %arg4[%c0_14, %c0_15] : memref<16x1xf32, #tpu.memory_space<vmem>>, vector<16x1xf32>
    %32 = vector.broadcast %31 : vector<16x1xf32> to vector<16x98xf32>
    %33 = arith.addf %30, %32 : vector<16x98xf32>
    %c0_16 = arith.constant 0 : index
    %c0_17 = arith.constant 0 : index
    %34 = vector.load %arg5[%c0_16, %c0_17] : memref<16x98xf32, #tpu.memory_space<vmem>>, vector<16x98xf32>
    tpu.vector_store %arg5[%c0_16, %c0_17], %33 {strides = array<i32>} : memref<16x98xf32, #tpu.memory_space<vmem>>, vector<16x98xf32>,
    return
  }
}

module attributes {stable_mosaic.version = 11 : i64} {
  func.func @_conv_mm_kernel(%arg0: memref<32x144xbf16, #tpu.memory_space<vmem>>, %arg1: memref<144x18xbf16, #tpu.memory_space<vmem>>, %arg2: memref<32x1xf32, #tpu.memory_space<vmem>>, %arg3: memref<32x18xf32, #tpu.memory_space<vmem>>) attributes {dimension_semantics = [], scalar_prefetch = 0 : i64, scratch_operands = 0 : i64, tpu.core_type = #tpu.core_type<tc>} {
    %c0 = arith.constant 0 : index
    %c0_0 = arith.constant 0 : index
    %0 = vector.load %arg0[%c0, %c0_0] : memref<32x144xbf16, #tpu.memory_space<vmem>>, vector<32x144xbf16>
    %c0_1 = arith.constant 0 : index
    %c0_2 = arith.constant 0 : index
    %1 = vector.load %arg1[%c0_1, %c0_2] : memref<144x18xbf16, #tpu.memory_space<vmem>>, vector<144x18xbf16>
    %cst = arith.constant dense<0.000000e+00> : vector<32x18xf32>
    %2 = tpu.matmul %0, %1, %cst {dimension_numbers = #tpu.dot_dimension_numbers<[1], [0], [0], [1], [0, 0, 1, 1], [], []>} : vector<32x144xbf16>, vector<144x18xbf16>, vector<32x18xf32> -> vector<32x18xf32>
    %c0_3 = arith.constant 0 : index
    %c0_4 = arith.constant 0 : index
    %3 = vector.load %arg2[%c0_3, %c0_4] : memref<32x1xf32, #tpu.memory_space<vmem>>, vector<32x1xf32>
    %4 = vector.broadcast %3 : vector<32x1xf32> to vector<32x18xf32>
    %5 = arith.addf %2, %4 : vector<32x18xf32>
    %cst_5 = arith.constant 0.000000e+00 : f32
    %6 = vector.broadcast %cst_5 : f32 to vector<32x18xf32>
    %7 = arith.maximumf %5, %6 : vector<32x18xf32>
    %c0_6 = arith.constant 0 : index
    %c0_7 = arith.constant 0 : index
    %8 = vector.load %arg3[%c0_6, %c0_7] : memref<32x18xf32, #tpu.memory_space<vmem>>, vector<32x18xf32>
    tpu.vector_store %arg3[%c0_6, %c0_7], %7 {strides = array<i32>} : memref<32x18xf32, #tpu.memory_space<vmem>>, vector<32x18xf32>,
    return
  }
}

module attributes {stable_mosaic.version = 11 : i64} {
  func.func @_linear_chain_kernel(%arg0: memref<2x288xf32, #tpu.memory_space<vmem>>, %arg1: memref<288x128xf32, #tpu.memory_space<vmem>>, %arg2: memref<1x128xf32, #tpu.memory_space<vmem>>, %arg3: memref<128x8xf32, #tpu.memory_space<vmem>>, %arg4: memref<1x8xf32, #tpu.memory_space<vmem>>, %arg5: memref<8x128xf32, #tpu.memory_space<vmem>>, %arg6: memref<1x128xf32, #tpu.memory_space<vmem>>, %arg7: memref<128x288xf32, #tpu.memory_space<vmem>>, %arg8: memref<1x288xf32, #tpu.memory_space<vmem>>, %arg9: memref<2x288xf32, #tpu.memory_space<vmem>>) attributes {dimension_semantics = [], scalar_prefetch = 0 : i64, scratch_operands = 0 : i64, tpu.core_type = #tpu.core_type<tc>} {
    %c0 = arith.constant 0 : index
    %c0_0 = arith.constant 0 : index
    %0 = vector.load %arg0[%c0, %c0_0] : memref<2x288xf32, #tpu.memory_space<vmem>>, vector<2x288xf32>
    %c0_1 = arith.constant 0 : index
    %c0_2 = arith.constant 0 : index
    %1 = vector.load %arg1[%c0_1, %c0_2] : memref<288x128xf32, #tpu.memory_space<vmem>>, vector<288x128xf32>
    %cst = arith.constant dense<0.000000e+00> : vector<2x128xf32>
    %2 = tpu.matmul %0, %1, %cst {dimension_numbers = #tpu.dot_dimension_numbers<[1], [0], [0], [1], [0, 0, 1, 1], [], []>} : vector<2x288xf32>, vector<288x128xf32>, vector<2x128xf32> -> vector<2x128xf32>
    %c0_3 = arith.constant 0 : index
    %c0_4 = arith.constant 0 : index
    %3 = vector.load %arg2[%c0_3, %c0_4] : memref<1x128xf32, #tpu.memory_space<vmem>>, vector<1x128xf32>
    %4 = vector.broadcast %3 : vector<1x128xf32> to vector<2x128xf32>
    %5 = arith.addf %2, %4 : vector<2x128xf32>
    %cst_5 = arith.constant 0.000000e+00 : f32
    %6 = vector.broadcast %cst_5 : f32 to vector<2x128xf32>
    %7 = arith.maximumf %5, %6 : vector<2x128xf32>
    %c0_6 = arith.constant 0 : index
    %c0_7 = arith.constant 0 : index
    %8 = vector.load %arg3[%c0_6, %c0_7] : memref<128x8xf32, #tpu.memory_space<vmem>>, vector<128x8xf32>
    %cst_8 = arith.constant dense<0.000000e+00> : vector<2x8xf32>
    %9 = tpu.matmul %7, %8, %cst_8 {dimension_numbers = #tpu.dot_dimension_numbers<[1], [0], [0], [1], [0, 0, 1, 1], [], []>} : vector<2x128xf32>, vector<128x8xf32>, vector<2x8xf32> -> vector<2x8xf32>
    %c0_9 = arith.constant 0 : index
    %c0_10 = arith.constant 0 : index
    %10 = vector.load %arg4[%c0_9, %c0_10] : memref<1x8xf32, #tpu.memory_space<vmem>>, vector<1x8xf32>
    %11 = vector.broadcast %10 : vector<1x8xf32> to vector<2x8xf32>
    %12 = arith.addf %9, %11 : vector<2x8xf32>
    %c0_11 = arith.constant 0 : index
    %c0_12 = arith.constant 0 : index
    %13 = vector.load %arg5[%c0_11, %c0_12] : memref<8x128xf32, #tpu.memory_space<vmem>>, vector<8x128xf32>
    %cst_13 = arith.constant dense<0.000000e+00> : vector<2x128xf32>
    %14 = tpu.matmul %12, %13, %cst_13 {dimension_numbers = #tpu.dot_dimension_numbers<[1], [0], [0], [1], [0, 0, 1, 1], [], []>} : vector<2x8xf32>, vector<8x128xf32>, vector<2x128xf32> -> vector<2x128xf32>
    %c0_14 = arith.constant 0 : index
    %c0_15 = arith.constant 0 : index
    %15 = vector.load %arg6[%c0_14, %c0_15] : memref<1x128xf32, #tpu.memory_space<vmem>>, vector<1x128xf32>
    %16 = vector.broadcast %15 : vector<1x128xf32> to vector<2x128xf32>
    %17 = arith.addf %14, %16 : vector<2x128xf32>
    %cst_16 = arith.constant 0.000000e+00 : f32
    %18 = vector.broadcast %cst_16 : f32 to vector<2x128xf32>
    %19 = arith.maximumf %17, %18 : vector<2x128xf32>
    %c0_17 = arith.constant 0 : index
    %c0_18 = arith.constant 0 : index
    %20 = vector.load %arg7[%c0_17, %c0_18] : memref<128x288xf32, #tpu.memory_space<vmem>>, vector<128x288xf32>
    %cst_19 = arith.constant dense<0.000000e+00> : vector<2x288xf32>
    %21 = tpu.matmul %19, %20, %cst_19 {dimension_numbers = #tpu.dot_dimension_numbers<[1], [0], [0], [1], [0, 0, 1, 1], [], []>} : vector<2x128xf32>, vector<128x288xf32>, vector<2x288xf32> -> vector<2x288xf32>
    %c0_20 = arith.constant 0 : index
    %c0_21 = arith.constant 0 : index
    %22 = vector.load %arg8[%c0_20, %c0_21] : memref<1x288xf32, #tpu.memory_space<vmem>>, vector<1x288xf32>
    %23 = vector.broadcast %22 : vector<1x288xf32> to vector<2x288xf32>
    %24 = arith.addf %21, %23 : vector<2x288xf32>
    %cst_22 = arith.constant 0.000000e+00 : f32
    %25 = vector.broadcast %cst_22 : f32 to vector<2x288xf32>
    %26 = arith.maximumf %24, %25 : vector<2x288xf32>
    %c0_23 = arith.constant 0 : index
    %c0_24 = arith.constant 0 : index
    %27 = vector.load %arg9[%c0_23, %c0_24] : memref<2x288xf32, #tpu.memory_space<vmem>>, vector<2x288xf32>
    tpu.vector_store %arg9[%c0_23, %c0_24], %26 {strides = array<i32>} : memref<2x288xf32, #tpu.memory_space<vmem>>, vector<2x288xf32>,
    return
  }
}

module attributes {stable_mosaic.version = 11 : i64} {
  func.func @_conv_mm_kernel(%arg0: memref<16x288xbf16, #tpu.memory_space<vmem>>, %arg1: memref<288x98xbf16, #tpu.memory_space<vmem>>, %arg2: memref<16x1xf32, #tpu.memory_space<vmem>>, %arg3: memref<16x1xf32, #tpu.memory_space<vmem>>, %arg4: memref<16x1xf32, #tpu.memory_space<vmem>>, %arg5: memref<16x98xf32, #tpu.memory_space<vmem>>) attributes {dimension_semantics = [], scalar_prefetch = 0 : i64, scratch_operands = 0 : i64, tpu.core_type = #tpu.core_type<tc>} {
    %c0 = arith.constant 0 : index
    %c0_0 = arith.constant 0 : index
    %0 = vector.load %arg0[%c0, %c0_0] : memref<16x288xbf16, #tpu.memory_space<vmem>>, vector<16x288xbf16>
    %c0_1 = arith.constant 0 : index
    %c0_2 = arith.constant 0 : index
    %1 = vector.load %arg1[%c0_1, %c0_2] : memref<288x98xbf16, #tpu.memory_space<vmem>>, vector<288x98xbf16>
    %cst = arith.constant dense<0.000000e+00> : vector<16x98xf32>
    %2 = tpu.matmul %0, %1, %cst {dimension_numbers = #tpu.dot_dimension_numbers<[1], [0], [0], [1], [0, 0, 1, 1], [], []>} : vector<16x288xbf16>, vector<288x98xbf16>, vector<16x98xf32> -> vector<16x98xf32>
    %c0_3 = arith.constant 0 : index
    %c0_4 = arith.constant 0 : index
    %3 = vector.load %arg2[%c0_3, %c0_4] : memref<16x1xf32, #tpu.memory_space<vmem>>, vector<16x1xf32>
    %4 = vector.broadcast %3 : vector<16x1xf32> to vector<16x98xf32>
    %5 = arith.addf %2, %4 : vector<16x98xf32>
    %cst_5 = arith.constant dense<0.000000e+00> : vector<16xf32>
    %6 = vector.multi_reduction <add>, %5, %cst_5 [1] : vector<16x98xf32> to vector<16xf32>
    %7 = vector.shape_cast %6 : vector<16xf32> to vector<16x1xf32>
    %8 = arith.mulf %5, %5 : vector<16x98xf32>
    %cst_6 = arith.constant dense<0.000000e+00> : vector<16xf32>
    %9 = vector.multi_reduction <add>, %8, %cst_6 [1] : vector<16x98xf32> to vector<16xf32>
    %10 = vector.shape_cast %9 : vector<16xf32> to vector<16x1xf32>
    %cst_7 = arith.constant 0.0102040814 : f32
    %11 = vector.broadcast %cst_7 : f32 to vector<16x1xf32>
    %12 = arith.mulf %7, %11 : vector<16x1xf32>
    %cst_8 = arith.constant 0.0102040814 : f32
    %13 = vector.broadcast %cst_8 : f32 to vector<16x1xf32>
    %14 = arith.mulf %10, %13 : vector<16x1xf32>
    %15 = arith.mulf %12, %12 : vector<16x1xf32>
    %16 = arith.subf %14, %15 : vector<16x1xf32>
    %cst_9 = arith.constant 0.000000e+00 : f32
    %17 = vector.broadcast %cst_9 : f32 to vector<16x1xf32>
    %18 = arith.maximumf %16, %17 : vector<16x1xf32>
    %19 = vector.broadcast %12 : vector<16x1xf32> to vector<16x98xf32>
    %20 = arith.subf %5, %19 : vector<16x98xf32>
    %cst_10 = arith.constant 9.99999974E-6 : f32
    %21 = vector.broadcast %cst_10 : f32 to vector<16x1xf32>
    %22 = arith.addf %18, %21 : vector<16x1xf32>
    %23 = math.rsqrt %22 : vector<16x1xf32>
    %24 = vector.broadcast %23 : vector<16x1xf32> to vector<16x98xf32>
    %25 = arith.mulf %20, %24 : vector<16x98xf32>
    %c0_11 = arith.constant 0 : index
    %c0_12 = arith.constant 0 : index
    %26 = vector.load %arg3[%c0_11, %c0_12] : memref<16x1xf32, #tpu.memory_space<vmem>>, vector<16x1xf32>
    %27 = vector.broadcast %26 : vector<16x1xf32> to vector<16x98xf32>
    %28 = arith.mulf %25, %27 : vector<16x98xf32>
    %c0_13 = arith.constant 0 : index
    %c0_14 = arith.constant 0 : index
    %29 = vector.load %arg4[%c0_13, %c0_14] : memref<16x1xf32, #tpu.memory_space<vmem>>, vector<16x1xf32>
    %30 = vector.broadcast %29 : vector<16x1xf32> to vector<16x98xf32>
    %31 = arith.addf %28, %30 : vector<16x98xf32>
    %cst_15 = arith.constant 0.000000e+00 : f32
    %32 = vector.broadcast %cst_15 : f32 to vector<16x98xf32>
    %33 = arith.maximumf %31, %32 : vector<16x98xf32>
    %c0_16 = arith.constant 0 : index
    %c0_17 = arith.constant 0 : index
    %34 = vector.load %arg5[%c0_16, %c0_17] : memref<16x98xf32, #tpu.memory_space<vmem>>, vector<16x98xf32>
    tpu.vector_store %arg5[%c0_16, %c0_17], %33 {strides = array<i32>} : memref<16x98xf32, #tpu.memory_space<vmem>>, vector<16x98xf32>,
    return
  }
}

module attributes {stable_mosaic.version = 11 : i64} {
  func.func @_conv_mm_kernel(%arg0: memref<8x144xbf16, #tpu.memory_space<vmem>>, %arg1: memref<144x392xbf16, #tpu.memory_space<vmem>>, %arg2: memref<8x1xf32, #tpu.memory_space<vmem>>, %arg3: memref<8x1xf32, #tpu.memory_space<vmem>>, %arg4: memref<8x1xf32, #tpu.memory_space<vmem>>, %arg5: memref<8x392xf32, #tpu.memory_space<vmem>>) attributes {dimension_semantics = [], scalar_prefetch = 0 : i64, scratch_operands = 0 : i64, tpu.core_type = #tpu.core_type<tc>} {
    %c0 = arith.constant 0 : index
    %c0_0 = arith.constant 0 : index
    %0 = vector.load %arg0[%c0, %c0_0] : memref<8x144xbf16, #tpu.memory_space<vmem>>, vector<8x144xbf16>
    %c0_1 = arith.constant 0 : index
    %c0_2 = arith.constant 0 : index
    %1 = vector.load %arg1[%c0_1, %c0_2] : memref<144x392xbf16, #tpu.memory_space<vmem>>, vector<144x392xbf16>
    %cst = arith.constant dense<0.000000e+00> : vector<8x392xf32>
    %2 = tpu.matmul %0, %1, %cst {dimension_numbers = #tpu.dot_dimension_numbers<[1], [0], [0], [1], [0, 0, 1, 1], [], []>} : vector<8x144xbf16>, vector<144x392xbf16>, vector<8x392xf32> -> vector<8x392xf32>
    %c0_3 = arith.constant 0 : index
    %c0_4 = arith.constant 0 : index
    %3 = vector.load %arg2[%c0_3, %c0_4] : memref<8x1xf32, #tpu.memory_space<vmem>>, vector<8x1xf32>
    %4 = vector.broadcast %3 : vector<8x1xf32> to vector<8x392xf32>
    %5 = arith.addf %2, %4 : vector<8x392xf32>
    %cst_5 = arith.constant dense<0.000000e+00> : vector<8xf32>
    %6 = vector.multi_reduction <add>, %5, %cst_5 [1] : vector<8x392xf32> to vector<8xf32>
    %7 = vector.shape_cast %6 : vector<8xf32> to vector<8x1xf32>
    %8 = arith.mulf %5, %5 : vector<8x392xf32>
    %cst_6 = arith.constant dense<0.000000e+00> : vector<8xf32>
    %9 = vector.multi_reduction <add>, %8, %cst_6 [1] : vector<8x392xf32> to vector<8xf32>
    %10 = vector.shape_cast %9 : vector<8xf32> to vector<8x1xf32>
    %cst_7 = arith.constant 0.00255102036 : f32
    %11 = vector.broadcast %cst_7 : f32 to vector<8x1xf32>
    %12 = arith.mulf %7, %11 : vector<8x1xf32>
    %cst_8 = arith.constant 0.00255102036 : f32
    %13 = vector.broadcast %cst_8 : f32 to vector<8x1xf32>
    %14 = arith.mulf %10, %13 : vector<8x1xf32>
    %15 = arith.mulf %12, %12 : vector<8x1xf32>
    %16 = arith.subf %14, %15 : vector<8x1xf32>
    %cst_9 = arith.constant 0.000000e+00 : f32
    %17 = vector.broadcast %cst_9 : f32 to vector<8x1xf32>
    %18 = arith.maximumf %16, %17 : vector<8x1xf32>
    %19 = vector.broadcast %12 : vector<8x1xf32> to vector<8x392xf32>
    %20 = arith.subf %5, %19 : vector<8x392xf32>
    %cst_10 = arith.constant 9.99999974E-6 : f32
    %21 = vector.broadcast %cst_10 : f32 to vector<8x1xf32>
    %22 = arith.addf %18, %21 : vector<8x1xf32>
    %23 = math.rsqrt %22 : vector<8x1xf32>
    %24 = vector.broadcast %23 : vector<8x1xf32> to vector<8x392xf32>
    %25 = arith.mulf %20, %24 : vector<8x392xf32>
    %c0_11 = arith.constant 0 : index
    %c0_12 = arith.constant 0 : index
    %26 = vector.load %arg3[%c0_11, %c0_12] : memref<8x1xf32, #tpu.memory_space<vmem>>, vector<8x1xf32>
    %27 = vector.broadcast %26 : vector<8x1xf32> to vector<8x392xf32>
    %28 = arith.mulf %25, %27 : vector<8x392xf32>
    %c0_13 = arith.constant 0 : index
    %c0_14 = arith.constant 0 : index
    %29 = vector.load %arg4[%c0_13, %c0_14] : memref<8x1xf32, #tpu.memory_space<vmem>>, vector<8x1xf32>
    %30 = vector.broadcast %29 : vector<8x1xf32> to vector<8x392xf32>
    %31 = arith.addf %28, %30 : vector<8x392xf32>
    %cst_15 = arith.constant 0.000000e+00 : f32
    %32 = vector.broadcast %cst_15 : f32 to vector<8x392xf32>
    %33 = arith.maximumf %31, %32 : vector<8x392xf32>
    %c0_16 = arith.constant 0 : index
    %c0_17 = arith.constant 0 : index
    %34 = vector.load %arg5[%c0_16, %c0_17] : memref<8x392xf32, #tpu.memory_space<vmem>>, vector<8x392xf32>
    tpu.vector_store %arg5[%c0_16, %c0_17], %33 {strides = array<i32>} : memref<8x392xf32, #tpu.memory_space<vmem>>, vector<8x392xf32>,
    return
  }
}

module attributes {stable_mosaic.version = 11 : i64} {
  func.func @_conv_mm_kernel(%arg0: memref<1x80xbf16, #tpu.memory_space<vmem>>, %arg1: memref<80x1568xbf16, #tpu.memory_space<vmem>>, %arg2: memref<1x1xf32, #tpu.memory_space<vmem>>, %arg3: memref<1x1568xf32, #tpu.memory_space<vmem>>) attributes {dimension_semantics = [], scalar_prefetch = 0 : i64, scratch_operands = 0 : i64, tpu.core_type = #tpu.core_type<tc>} {
    %c0 = arith.constant 0 : index
    %c0_0 = arith.constant 0 : index
    %0 = vector.load %arg0[%c0, %c0_0] : memref<1x80xbf16, #tpu.memory_space<vmem>>, vector<1x80xbf16>
    %c0_1 = arith.constant 0 : index
    %c0_2 = arith.constant 0 : index
    %1 = vector.load %arg1[%c0_1, %c0_2] : memref<80x1568xbf16, #tpu.memory_space<vmem>>, vector<80x1568xbf16>
    %cst = arith.constant dense<0.000000e+00> : vector<1x1568xf32>
    %2 = tpu.matmul %0, %1, %cst {dimension_numbers = #tpu.dot_dimension_numbers<[1], [0], [0], [1], [0, 0, 1, 1], [], []>} : vector<1x80xbf16>, vector<80x1568xbf16>, vector<1x1568xf32> -> vector<1x1568xf32>
    %c0_3 = arith.constant 0 : index
    %c0_4 = arith.constant 0 : index
    %3 = vector.load %arg2[%c0_3, %c0_4] : memref<1x1xf32, #tpu.memory_space<vmem>>, vector<1x1xf32>
    %4 = vector.broadcast %3 : vector<1x1xf32> to vector<1x1568xf32>
    %5 = arith.addf %2, %4 : vector<1x1568xf32>
    %6 = arith.negf %5 : vector<1x1568xf32>
    %7 = math.exp %6 : vector<1x1568xf32>
    %cst_5 = arith.constant 1.000000e+00 : f32
    %8 = vector.broadcast %cst_5 : f32 to vector<1x1568xf32>
    %9 = arith.addf %8, %7 : vector<1x1568xf32>
    %10 = arith.divf %8, %9 : vector<1x1568xf32>
    %c0_6 = arith.constant 0 : index
    %c0_7 = arith.constant 0 : index
    %11 = vector.load %arg3[%c0_6, %c0_7] : memref<1x1568xf32, #tpu.memory_space<vmem>>, vector<1x1568xf32>
    tpu.vector_store %arg3[%c0_6, %c0_7], %10 {strides = array<i32>} : memref<1x1568xf32, #tpu.memory_space<vmem>>, vector<1x1568xf32>,
    return
  }
}

</mosaic_0001>

<bundles_post_ra>
// kernel: _lambda_.7
= control target key start
LH: loop header
LB: loop body
LE: loop exit
PB: predicated region body
PF: predicated region fallthrough
CT: control target
= control target key end

     0   :  { %10 = vsyncpa [#allocation3], 0  ;;  %s379_s0 = inlined_call_operand.hbm [shape: bf16[8,16], index: 0, kind: input, shape index: {}]   ;;  %s380_s1 = inlined_call_operand.vmem [shape: bf16[16,392], index: 1, kind: input, shape index: {}]   ;;  %s381_s2 = inlined_call_operand.hbm [shape: f32[8,1], index: 2, kind: input, shape index: {}]   ;;  %s382_s3 = inlined_call_operand.vmem [shape: f32[8,1], index: 3, kind: input, shape index: {}]   ;;  %s383_s4 = inlined_call_operand.vmem [shape: f32[8,1], index: 4, kind: input, shape index: {}]   ;;  %s384_s5 = inlined_call_operand.vmem [shape: f32[8,392], index: 5, kind: output, shape index: {}]  }
   0x1   :  { %s17_s20 = sshll.u32 %s379_s0, 4  ;;  %s18_s20 = int_to_ptr.hbm [resolvable:$true] %s17_s20 }
   0x2   :  { %11 = vsyncpa [#allocation5], 0  ;;  %s295_s21 = smov [#allocation2]   ;;  %s30_s25 = sshll.u32 %s381_s2, 4  ;;  %s31_s25 = int_to_ptr.hbm [resolvable:$true] %s30_s25 }
   0x3   :  { %s19_s22 = sshll.u32 %s295_s21, 4  ;;  %s296_s26 = smov [#allocation4]   ;;  %s20_s22 = int_to_ptr.vmem [resolvable:$true] %s19_s22 }
   0x4   :  { %22 = dma.hbm_to_vmem [thread:$0]  %s18_s20, 64, %s20_s22, [#allocation3]  }
   0x5   :  { %s32_s27 = sshll.u32 %s296_s26, 4  ;;  %s33_s27 = int_to_ptr.vmem [resolvable:$true] %s32_s27 }
   0x6   :  { %35 = dma.hbm_to_vmem [thread:$0]  %s31_s25, 128, %s33_s27, [#allocation5]  }
   0x7   :  { %291 = dma.done.wait [#allocation3], 64  }
   0x8   :  { %292 = vsyncadd [#allocation3], 4294967232 }
   0x9   :  { %293 = dma.done.wait [#allocation5], 128  }
   0xa   :  { %294 = vsyncadd [#allocation5], 4294967168  ;;  %v297_v0 = vmov 0   ;;  %v213_v1 = vld [vmem:[%s380_s1] sm:$0xf]  ;;  %vm80_vm0 = vcmask 130048  }
   0xb   :  { %238 = vset.pattern.permute.xlu0 %v297_v0  ;;  %239 = vset.pattern.permute.xlu1 %v297_v0  ;;  %v233_v2 = vld [vmem:[%s380_s1 + $0xc] sm:$0xf0]  ;;  %v231_v3 = vld [vmem:[%s380_s1 + $0x4] sm:$0xf]  ;;  %v215_v5 = vld [vmem:[%s380_s1 + $0x10] sm:$0xf0] }
   0xc   :  { %240 = vset.pattern.permute.xlu2 %v297_v0  ;;  %v214_v4 = vor.u32 %v233_v2, %v213_v1  ;;  %v221_v6 = vld [vmem:[%s380_s1 + $0x8] sm:$0xf]  ;;  %v234_v7 = vld [vmem:[%s380_s1 + $0x14] sm:$0xf0]  ;;  %v218_v8 = vor.u32 %v231_v3, %v215_v5  ;;  %v232_v10 = vld [vmem:[%s380_s1 + $0xc] sm:$0xf] }
   0xd   :  { %v222_v9 = vor.u32 %v234_v7, %v221_v6  ;;  %v223_v11 = vld [vmem:[%s380_s1 + $0x18] sm:$0xf0]  ;;  %v49_v13 = vld [vmem:[#allocation2] sm:$0xf]  ;;  %v54_v14 = vld [vmem:[#allocation4] sm:$0xff]  ;;  %vm142_vm1 = vcmask 64512  }
   0xe   :  { %91 = vmatpush.bf16.msra.mxu0 %v214_v4  ;;  %v226_v12 = vor.u32 %v232_v10, %v223_v11  ;;  %104 = vmatpush.bf16.msra.mxu1 %v218_v8  ;;  %v191_v34 = vld [vmem:[%s383_s4] sm:$0xff] }
   0xf   :  { %117 = vmatpush.bf16.msra.mxu2 %v222_v9  ;;  %57 = vperm.xlu0 %238, %v54_v14   ;;  %v181_v45 = vld [vmem:[%s382_s3] sm:$0xff] }
  0x10   :  { %130 = vmatpush.bf16.msra.mxu3 %v226_v12  ;;  %194 = vperm.xlu2 %240, %v191_v34  }
  0x11   :  { %227 = vmatmul.msk.bf16.vlgmr.msra.gmra.mxu0 %vm80_vm0, %v49_v13  ;;  %228 = vmatmul.msk.bf16.vlgmr.msra.gmra.mxu1 %vm80_vm0, %v49_v13 }
  0x12   :  { %229 = vmatmul.msk.bf16.vlgmr.msra.gmra.mxu2 %vm80_vm0, %v49_v13 }
  0x13   :  { %230 = vmatmul.msk.bf16.vlgmr.msra.gmra.mxu3 %vm80_vm0, %v49_v13 }
  0x6a   :  { %v195_v6 = vpop.permute.xlu2 %194 }
  0x81   :  { %v58_v15 = vpop.permute.xlu0 %57 }
  0x8e   :  { %v93_v16 = vpop.f32.mrf.mxu0  ;;  %v106_v17 = vpop.f32.mrf.mxu1 }
  0x8f   :  { %v94_v18 = vadd.f32 %v93_v16, %v58_v15  ;;  %v107_v19 = vadd.f32 %v106_v17, %v58_v15 }
  0x91   :  { %v136_v20 = vmax.f32 %v94_v18, 0.0  ;;  %v137_v21 = vmax.f32 %v107_v19, 0.0 }
  0x93   :  { %v147_v22 = vmul.f32 %v136_v20, %v136_v20  ;;  %v148_v23 = vmul.f32 %v137_v21, %v137_v21  ;;  %v140_v28 = vadd.f32 %v137_v21, %v136_v20 }
  0x95   :  { %v119_v24 = vpop.f32.mrf.mxu2  ;;  %v151_v32 = vadd.f32 %v148_v23, %v147_v22 }
  0x96   :  { %v120_v25 = vadd.f32 %v119_v24, %v58_v15  ;;  %v132_v26 = vpop.f32.mrf.mxu3  ;;  %v95_v27 = vpop.f32.mrf.mxu0 }
  0x97   :  { %v133_v29 = vadd.f32 %v132_v26, %v58_v15  ;;  %v108_v30 = vpop.f32.mrf.mxu1 }
  0x98   :  { %v138_v31 = vmax.f32 %v120_v25, 0.0 }
  0x99   :  { %v139_v33 = vmax.f32 %v133_v29, 0.0 }
  0x9a   :  { %v141_v35 = vadd.f32 %v140_v28, %v138_v31  ;;  %v149_v36 = vmul.f32 %v138_v31, %v138_v31 }
  0x9b   :  { %v143_v37 = vsel %vm142_vm1, %v139_v33, 0.0  ;;  %v150_v38 = vmul.f32 %v139_v33, %v139_v33 }
  0x9c   :  { %v144_v39 = vadd.f32 %v143_v37, %v141_v35  ;;  %v152_v40 = vadd.f32 %v151_v32, %v149_v36 }
  0x9d   :  { %v121_v41 = vpop.f32.mrf.mxu2  ;;  %v153_v42 = vsel %vm142_vm1, %v150_v38, 0.0 }
  0x9e   :  { %v134_v43 = vpop.f32.mrf.mxu3  ;;  %145 = vadd.xlane.f32.xlu0 %v144_v39  ;;  %v154_v44 = vadd.f32 %v153_v42, %v152_v40 }
  0xa0   :  { %155 = vadd.xlane.f32.xlu1 %v154_v44 }
  0xb9   :  { %184 = vperm.xlu1 %239, %v181_v45  }
 0x111   :  { %v146_v46 = vpop.xlane.xlu0 %145 }
 0x112   :  { %v157_v47 = vmul.f32 0.0025510204, %v146_v46 }
 0x113   :  { %v156_v48 = vpop.xlane.xlu1 %155 }
 0x114   :  { %v158_v49 = vmul.f32 0.0025510204, %v156_v48  ;;  %v159_v50 = vmul.f32 %v157_v47, %v157_v47  ;;  %v162_v60 = vsub.f32 %v136_v20, %v157_v47  ;;  %v163_v61 = vsub.f32 %v137_v21, %v157_v47 }
 0x115   :  { %v164_v62 = vsub.f32 %v138_v31, %v157_v47  ;;  %v165_v63 = vsub.f32 %v139_v33, %v157_v47 }
 0x116   :  { %v160_v51 = vsub.f32 %v158_v49, %v159_v50 }
 0x118   :  { %v161_v52 = vmax.f32 %v160_v51, 0.0 }
 0x11a   :  { %v166_v53 = vadd.f32 1e-05, %v161_v52 }
 0x11c   :  { %241 = vrsqrt.f32 %v166_v53  ;;  %vm173_vm3 = vweird.f32 %v166_v53 }
 0x122   :  { %v242_v54 = vpop.eup %241 }
 0x123   :  { %v168_v55 = vmul.f32 %v242_v54, %v166_v53  ;;  %vm174_vm2 = vweird.f32 %v242_v54 }
 0x124   :  { %vm175_vm4 = vmor %vm173_vm3, %vm174_vm2 }
 0x125   :  { %v169_v56 = vmul.f32 %v242_v54, %v168_v55 }
 0x127   :  { %v170_v57 = vmul.f32 0.5, %v169_v56 }
 0x129   :  { %v171_v58 = vsub.f32 1.5, %v170_v57 }
 0x12b   :  { %v172_v59 = vmul.f32 %v242_v54, %v171_v58  ;;  %v185_v0 = vpop.permute.xlu1 %184 }
 0x12d   :  { %v176_v1 = vsel %vm175_vm4, %v242_v54, %v172_v59 }
 0x12e   :  { %v177_v2 = vmul.f32 %v176_v1, %v162_v60  ;;  %v178_v3 = vmul.f32 %v176_v1, %v163_v61  ;;  %v179_v4 = vmul.f32 %v176_v1, %v164_v62  ;;  %v180_v5 = vmul.f32 %v176_v1, %v165_v63 }
 0x130   :  { %v187_v7 = vmul.f32 %v185_v0, %v177_v2  ;;  %v188_v8 = vmul.f32 %v185_v0, %v178_v3  ;;  %v189_v9 = vmul.f32 %v185_v0, %v179_v4  ;;  %v190_v10 = vmul.f32 %v185_v0, %v180_v5 }
 0x132   :  { %v197_v11 = vadd.f32 %v195_v6, %v187_v7  ;;  %v198_v12 = vadd.f32 %v195_v6, %v188_v8  ;;  %v199_v13 = vadd.f32 %v195_v6, %v189_v9  ;;  %v200_v14 = vadd.f32 %v195_v6, %v190_v10 }
 0x134   :  { %201 = vst [vmem:[%s384_s5] sm:$0xff] %v197_v11 }
 0x135   :  { %202 = vst [vmem:[%s384_s5 + $0x8] sm:$0xff] %v198_v12 }
 0x136   :  { %203 = vst [vmem:[%s384_s5 + $0x10] sm:$0xff] %v199_v13 }
 0x137   :  { %204 = vst.msk [vmem:[%s384_s5 + $0x18] sm:$0xff] %vm142_vm1, %v200_v14 }
 0x138   :  { %209 = vsyncpa [#allocation3], 1 }
 0x139   :  { %210 = vsyncpa [#allocation5], 1 }

// kernel: _lambda_.8
= control target key start
LH: loop header
LB: loop body
LE: loop exit
PB: predicated region body
PF: predicated region fallthrough
CT: control target
= control target key end

     0   :  { %10 = vsyncpa [#allocation3], 0  ;;  %s398_s0 = inlined_call_operand.hbm [shape: bf16[16,80], index: 0, kind: input, shape index: {}]   ;;  %s399_s1 = inlined_call_operand.vmem [shape: bf16[80,98], index: 1, kind: input, shape index: {}]   ;;  %s400_s2 = inlined_call_operand.hbm [shape: f32[16,1], index: 2, kind: input, shape index: {}]   ;;  %s401_s3 = inlined_call_operand.vmem [shape: f32[16,1], index: 3, kind: input, shape index: {}]   ;;  %s402_s4 = inlined_call_operand.vmem [shape: f32[16,1], index: 4, kind: input, shape index: {}]   ;;  %s403_s5 = inlined_call_operand.vmem [shape: f32[16,98], index: 5, kind: output, shape index: {}]  }
   0x1   :  { %s16_s20 = sshll.u32 %s398_s0, 4  ;;  %s17_s20 = int_to_ptr.hbm [resolvable:$true] %s16_s20 }
   0x2   :  { %11 = vsyncpa [#allocation5], 0  ;;  %s316_s21 = smov [#allocation2]   ;;  %s31_s25 = sshll.u32 %s400_s2, 4  ;;  %s32_s25 = int_to_ptr.hbm [resolvable:$true] %s31_s25 }
   0x3   :  { %s18_s22 = sshll.u32 %s316_s21, 4  ;;  %s317_s26 = smov 64   ;;  %s19_s22 = int_to_ptr.vmem [resolvable:$true] %s18_s22 }
   0x4   :  { %s318_s27 = smov 4   ;;  %s319_s28 = smov [#allocation4]  }
   0x5   :  { %24 = dma.hbm_to_vmem [thread:$0]  %s17_s20, 128, %s19_s22, [#allocation3], %s317_s26, %s317_s26, %s318_s27  }
   0x6   :  { %s33_s29 = sshll.u32 %s319_s28, 4  ;;  %s320_s30 = smov 128   ;;  %s34_s29 = int_to_ptr.vmem [resolvable:$true] %s33_s29 }
   0x7   :  { %s321_s6 = smov 8  }
   0x8   :  { %39 = dma.hbm_to_vmem [thread:$0]  %s32_s25, 256, %s34_s29, [#allocation5], %s320_s30, %s320_s30, %s321_s6  }
   0x9   :  { %312 = dma.done.wait [#allocation3], 128  }
   0xa   :  { %313 = vsyncadd [#allocation3], 4294967168 }
   0xb   :  { %314 = dma.done.wait [#allocation5], 256  }
   0xc   :  { %315 = vsyncadd [#allocation5], 4294967040  ;;  %v322_v0 = vmov 0   ;;  %v249_v1 = vld [vmem:[%s399_s1 + $0x20] sm:$0xff]  ;;  %v65_v2 = vld [vmem:[#allocation4] sm:$0xff]  ;;  %vm112_vm0 = vcmask 654336  }
   0xd   :  { %257 = vset.pattern.permute.xlu0 %v322_v0  ;;  %258 = vset.pattern.permute.xlu1 %v322_v0  ;;  %v248_v3 = vld [vmem:[%s399_s1 + $0x18] sm:$0xff]  ;;  %v247_v4 = vld [vmem:[%s399_s1 + $0x10] sm:$0xff]  ;;  %v246_v6 = vld [vmem:[%s399_s1 + $0x8] sm:$0xff]  ;;  %vm132_vm1 = vcmask 801792  }
   0xe   :  { %259 = vset.pattern.permute.xlu2 %v322_v0  ;;  %69 = vperm.xlu0 %257, %v65_v2   ;;  %v66_v5 = vld [vmem:[#allocation4 + $0x8] sm:$0xff]  ;;  %v245_v7 = vld [vmem:[%s399_s1] sm:$0xff]  ;;  %v198_v10 = vld [vmem:[%s402_s4 + $0x8] sm:$0xff] }
   0xf   :  { %119 = vmatpush.bf16.msra.mxu0 %v249_v1  ;;  %v183_v8 = vld [vmem:[%s401_s3] sm:$0xff]  ;;  %v184_v25 = vld [vmem:[%s401_s3 + $0x8] sm:$0xff] }
  0x10   :  { %v244_v9 = vld [vmem:[#allocation2] sm:$0xff] }
  0x11   :  { %v197_v26 = vld [vmem:[%s402_s4] sm:$0xff] }
  0x13   :  { %120 = vmatpush.bf16.msra.mxu0 %v248_v3 }
  0x16   :  { %74 = vperm.xlu0 %257, %v66_v5  }
  0x17   :  { %121 = vmatpush.bf16.msra.mxu0 %v247_v4 }
  0x1b   :  { %122 = vmatpush.bf16.msra.mxu0 %v246_v6 }
  0x1e   :  { %187 = vperm.xlu0 %257, %v183_v8  }
  0x1f   :  { %123 = vmatpush.bf16.msra.mxu0 %v245_v7 }
  0x22   :  { %243 = vmatmul.msk.bf16.vlgmr.msra.gmra.mxu0 %vm112_vm0, %v244_v9 }
  0x26   :  { %206 = vperm.xlu0 %257, %v198_v10  }
  0x80   :  { %v70_v11 = vpop.permute.xlu0 %69 }
  0x88   :  { %v75_v18 = vpop.permute.xlu0 %74 }
  0x90   :  { %v188_v55 = vpop.permute.xlu0 %187 }
  0x98   :  { %v207_v3 = vpop.permute.xlu0 %206 }
  0x9f   :  { %v125_v12 = vpop.f32.mrf.mxu0 }
  0xa0   :  { %v126_v13 = vadd.f32 %v125_v12, %v70_v11 }
  0xa2   :  { %v130_v14 = vmax.f32 %v126_v13, 0.0 }
  0xa4   :  { %v133_v15 = vsel %vm132_vm1, %v130_v14, 0.0  ;;  %v139_v16 = vmul.f32 %v130_v14, %v130_v14 }
  0xa5   :  { %134 = vadd.xlane.f32.xlu1 %v133_v15 }
  0xa6   :  { %v141_v17 = vsel %vm132_vm1, %v139_v16, 0.0 }
  0xa7   :  { %v127_v19 = vpop.f32.mrf.mxu0  ;;  %142 = vadd.xlane.f32.xlu2 %v141_v17 }
  0xa8   :  { %v128_v20 = vadd.f32 %v127_v19, %v75_v18 }
  0xaa   :  { %v131_v21 = vmax.f32 %v128_v20, 0.0 }
  0xac   :  { %v136_v22 = vsel %vm132_vm1, %v131_v21, 0.0  ;;  %v140_v23 = vmul.f32 %v131_v21, %v131_v21 }
  0xad   :  { %137 = vadd.xlane.f32.xlu1 %v136_v22 }
  0xae   :  { %v144_v24 = vsel %vm132_vm1, %v140_v23, 0.0 }
  0xaf   :  { %145 = vadd.xlane.f32.xlu2 %v144_v24 }
  0xc6   :  { %192 = vperm.xlu1 %258, %v184_v25  }
  0xc7   :  { %201 = vperm.xlu2 %259, %v197_v26  }
 0x118   :  { %v135_v27 = vpop.xlane.xlu1 %134 }
 0x119   :  { %v147_v28 = vmul.f32 0.010204081, %v135_v27 }
 0x11a   :  { %v143_v29 = vpop.xlane.xlu2 %142 }
 0x11b   :  { %v151_v30 = vmul.f32 %v147_v28, %v147_v28  ;;  %v149_v31 = vmul.f32 0.010204081, %v143_v29  ;;  %v157_v50 = vsub.f32 %v130_v14, %v147_v28 }
 0x11d   :  { %v153_v32 = vsub.f32 %v149_v31, %v151_v30 }
 0x11f   :  { %v155_v33 = vmax.f32 %v153_v32, 0.0 }
 0x120   :  { %v138_v34 = vpop.xlane.xlu1 %137 }
 0x121   :  { %v159_v35 = vadd.f32 1e-05, %v155_v33  ;;  %v148_v36 = vmul.f32 0.010204081, %v138_v34 }
 0x122   :  { %v146_v37 = vpop.xlane.xlu2 %145 }
 0x123   :  { %260 = vrsqrt.f32 %v159_v35  ;;  %v152_v38 = vmul.f32 %v148_v36, %v148_v36  ;;  %v150_v39 = vmul.f32 0.010204081, %v146_v37  ;;  %vm167_vm3 = vweird.f32 %v159_v35 }
 0x124   :  { %v158_v62 = vsub.f32 %v131_v21, %v148_v36 }
 0x125   :  { %v154_v40 = vsub.f32 %v150_v39, %v152_v38 }
 0x127   :  { %v156_v41 = vmax.f32 %v154_v40, 0.0 }
 0x129   :  { %v261_v42 = vpop.eup %260  ;;  %v160_v44 = vadd.f32 1e-05, %v156_v41 }
 0x12a   :  { %v162_v43 = vmul.f32 %v261_v42, %v159_v35  ;;  %vm168_vm2 = vweird.f32 %v261_v42  ;;  %v202_v56 = vpop.permute.xlu2 %201 }
 0x12b   :  { %262 = vrsqrt.f32 %v160_v44  ;;  %vm169_vm4 = vmor %vm167_vm3, %vm168_vm2  ;;  %vm177_vm6 = vweird.f32 %v160_v44 }
 0x12c   :  { %v163_v45 = vmul.f32 %v261_v42, %v162_v43 }
 0x12e   :  { %v164_v46 = vmul.f32 0.5, %v163_v45 }
 0x130   :  { %v165_v47 = vsub.f32 1.5, %v164_v46 }
 0x131   :  { %v263_v48 = vpop.eup %262 }
 0x132   :  { %v166_v49 = vmul.f32 %v261_v42, %v165_v47  ;;  %v172_v51 = vmul.f32 %v263_v48, %v160_v44  ;;  %vm178_vm5 = vweird.f32 %v263_v48 }
 0x133   :  { %vm179_vm7 = vmor %vm177_vm6, %vm178_vm5 }
 0x134   :  { %v170_v52 = vsel %vm169_vm4, %v261_v42, %v166_v49  ;;  %v173_v53 = vmul.f32 %v263_v48, %v172_v51 }
 0x135   :  { %v181_v54 = vmul.f32 %v170_v52, %v157_v50 }
 0x136   :  { %v174_v58 = vmul.f32 0.5, %v173_v53 }
 0x137   :  { %v195_v57 = vmul.f32 %v188_v55, %v181_v54 }
 0x138   :  { %v175_v60 = vsub.f32 1.5, %v174_v58  ;;  %v193_v0 = vpop.permute.xlu1 %192 }
 0x139   :  { %v209_v59 = vadd.f32 %v202_v56, %v195_v57 }
 0x13a   :  { %v176_v61 = vmul.f32 %v263_v48, %v175_v60 }
 0x13b   :  { %211 = vst.msk [vmem:[%s403_s5] sm:$0xff] %vm132_vm1, %v209_v59 }
 0x13c   :  { %v180_v63 = vsel %vm179_vm7, %v263_v48, %v176_v61 }
 0x13d   :  { %v182_v1 = vmul.f32 %v180_v63, %v158_v62 }
 0x13f   :  { %v196_v2 = vmul.f32 %v193_v0, %v182_v1 }
 0x141   :  { %v210_v4 = vadd.f32 %v207_v3, %v196_v2 }
 0x143   :  { %212 = vst.msk [vmem:[%s403_s5 + $0x8] sm:$0xff] %vm132_vm1, %v210_v4 }
 0x144   :  { %217 = vsyncpa [#allocation3], 1 }
 0x145   :  { %218 = vsyncpa [#allocation5], 1 }

// kernel: _lambda_.9
= control target key start
LH: loop header
LB: loop body
LE: loop exit
PB: predicated region body
PF: predicated region fallthrough
CT: control target
= control target key end

     0   :  { %8 = vsyncpa [#allocation3], 0  ;;  %s435_s0 = inlined_call_operand.hbm [shape: bf16[32,144], index: 0, kind: input, shape index: {}]   ;;  %s436_s1 = inlined_call_operand.vmem [shape: bf16[144,18], index: 1, kind: input, shape index: {}]   ;;  %s437_s2 = inlined_call_operand.hbm [shape: f32[32,1], index: 2, kind: input, shape index: {}]   ;;  %s438_s3 = inlined_call_operand.vmem [shape: f32[32,18], index: 3, kind: output, shape index: {}]  }
   0x1   :  { %s14_s14 = sshll.u32 %s435_s0, 4  ;;  %s15_s14 = int_to_ptr.hbm [resolvable:$true] %s14_s14 }
   0x2   :  { %9 = vsyncpa [#allocation5], 0  ;;  %s359_s15 = smov [#allocation2]   ;;  %s29_s19 = sshll.u32 %s437_s2, 4  ;;  %s30_s19 = int_to_ptr.hbm [resolvable:$true] %s29_s19 }
   0x3   :  { %s16_s16 = sshll.u32 %s359_s15, 4  ;;  %s360_s20 = smov 128   ;;  %s17_s16 = int_to_ptr.vmem [resolvable:$true] %s16_s16 }
   0x4   :  { %s361_s21 = smov 8   ;;  %s362_s22 = smov [#allocation4]  }
   0x5   :  { %22 = dma.hbm_to_vmem [thread:$0]  %s15_s14, 512, %s17_s16, [#allocation3], %s360_s20, %s360_s20, %s361_s21  }
   0x6   :  { %s31_s23 = sshll.u32 %s362_s22, 4  ;;  %s32_s23 = int_to_ptr.vmem [resolvable:$true] %s31_s23 }
   0x7   :  { %37 = dma.hbm_to_vmem [thread:$0]  %s30_s19, 512, %s32_s23, [#allocation5], %s360_s20, %s360_s20, %s361_s21  }
   0x8   :  { %355 = dma.done.wait [#allocation3], 512  }
   0x9   :  { %356 = vsyncadd [#allocation3], 4294966784 }
   0xa   :  { %357 = dma.done.wait [#allocation5], 512  }
   0xb   :  { %358 = vsyncadd [#allocation5], 4294966784  ;;  %v290_v0 = vld [vmem:[%s436_s1 + $0x38] sm:$0xff]  ;;  %v291_v1 = vld [vmem:[%s436_s1 + $0x40] sm:$0xff]  ;;  %v363_v6 = vmov 0   ;;  %vm165_vm0 = vcmask 130048  }
   0xc   :  { %v279_v2 = vld [vmem:[#allocation2 + $0x4] sm:$0xf]  ;;  %172 = vmatpush.bf16.msra.mxu0 %v290_v0  ;;  %292 = vmatpush.bf16.msra.mxu2 %v290_v0  ;;  %v289_v3 = vld [vmem:[%s436_s1 + $0x30] sm:$0xff]  ;;  %v229_v4 = vld [vmem:[#allocation2 + $0x8] sm:$0xf0]  ;;  %vm214_vm1 = vcmask 146432  }
   0xd   :  { %198 = vmatpush.bf16.msra.mxu1 %v291_v1  ;;  %v232_v5 = vor.u32 %v279_v2, %v229_v4  ;;  %306 = vset.pattern.permute.xlu1 %v363_v6  ;;  %v71_v7 = vld [vmem:[#allocation4 + $0x10] sm:$0xff]  ;;  %v288_v8 = vld [vmem:[%s436_s1 + $0x28] sm:$0xff]  ;;  %v69_v9 = vld [vmem:[#allocation4] sm:$0xff] }
   0xe   :  { %305 = vset.pattern.permute.xlu0 %v363_v6  ;;  %85 = vperm.xlu1 %306, %v71_v7   ;;  %v287_v10 = vld [vmem:[%s436_s1 + $0x20] sm:$0xff]  ;;  %v72_v11 = vld [vmem:[#allocation4 + $0x18] sm:$0xff]  ;;  %v70_v12 = vld [vmem:[#allocation4 + $0x8] sm:$0xff] }
   0xf   :  { %75 = vperm.xlu0 %305, %v69_v9   ;;  %v286_v13 = vld [vmem:[%s436_s1 + $0x18] sm:$0xff]  ;;  %v281_v14 = vld [vmem:[#allocation2 + $0x14] sm:$0xf]  ;;  %v284_v18 = vld [vmem:[%s436_s1 + $0x8] sm:$0xff] }
  0x10   :  { %173 = vmatpush.bf16.msra.mxu0 %v289_v3  ;;  %293 = vmatpush.bf16.msra.mxu2 %v289_v3  ;;  %v237_v15 = vld [vmem:[#allocation2 + $0x18] sm:$0xf0]  ;;  %v285_v16 = vld [vmem:[%s436_s1 + $0x10] sm:$0xff]  ;;  %v283_v19 = vld [vmem:[%s436_s1] sm:$0xff] }
  0x11   :  { %277 = vmatmul.msk.bf16.vlgmr.msra.gmra.mxu1 %vm165_vm0, %v232_v5  ;;  %v240_v17 = vor.u32 %v281_v14, %v237_v15  ;;  %v227_v20 = vld [vmem:[#allocation2] sm:$0xf]  ;;  %v280_v21 = vld [vmem:[#allocation2 + $0x4] sm:$0xf0]  ;;  %v235_v22 = vld [vmem:[#allocation2 + $0x10] sm:$0xf] }
  0x12   :  { %v282_v23 = vld [vmem:[#allocation2 + $0x14] sm:$0xf0]  ;;  %v228_v24 = vor.u32 %v280_v21, %v227_v20 }
  0x13   :  { %v236_v25 = vor.u32 %v282_v23, %v235_v22 }
  0x14   :  { %174 = vmatpush.bf16.msra.mxu0 %v288_v8  ;;  %294 = vmatpush.bf16.msra.mxu2 %v288_v8 }
  0x16   :  { %90 = vperm.xlu1 %306, %v72_v11  }
  0x17   :  { %80 = vperm.xlu0 %305, %v70_v12  }
  0x18   :  { %175 = vmatpush.bf16.msra.mxu0 %v287_v10  ;;  %295 = vmatpush.bf16.msra.mxu2 %v287_v10 }
  0x1c   :  { %176 = vmatpush.bf16.msra.mxu0 %v286_v13  ;;  %296 = vmatpush.bf16.msra.mxu2 %v286_v13 }
  0x20   :  { %177 = vmatpush.bf16.msra.mxu0 %v285_v16  ;;  %297 = vmatpush.bf16.msra.mxu2 %v285_v16 }
  0x21   :  { %278 = vmatmul.msk.bf16.gmra.mxu1 %vm165_vm0, %v240_v17 }
  0x24   :  { %178 = vmatpush.bf16.msra.mxu0 %v284_v18  ;;  %298 = vmatpush.bf16.msra.mxu2 %v284_v18 }
  0x28   :  { %179 = vmatpush.bf16.msra.mxu0 %v283_v19  ;;  %299 = vmatpush.bf16.msra.mxu2 %v283_v19 }
  0x2b   :  { %180 = vmatmul.bf16.vlgmr.msra.gmra.mxu0 %v228_v24  ;;  %185 = vmatmul.bf16.vlgmr.msra.gmra.mxu2 %v236_v25 }
  0x80   :  { %v86_v32 = vpop.permute.xlu1 %85 }
  0x81   :  { %v76_v28 = vpop.permute.xlu0 %75 }
  0x88   :  { %v91_v44 = vpop.permute.xlu1 %90 }
  0x89   :  { %v81_v37 = vpop.permute.xlu0 %80 }
  0x8e   :  { %v200_v26 = vpop.f32.mrf.mxu1 }
  0x96   :  { %v202_v27 = vpop.f32.mrf.mxu1 }
  0x9e   :  { %v205_v34 = vpop.f32.mrf.mxu1 }
  0xa6   :  { %v207_v47 = vpop.f32.mrf.mxu1 }
  0xa8   :  { %v181_v29 = vpop.f32.mrf.mxu0 }
  0xa9   :  { %v182_v30 = vadd.f32 %v181_v29, %v76_v28 }
  0xab   :  { %v201_v31 = vadd.f32 %v200_v26, %v182_v30 }
  0xad   :  { %v210_v33 = vmax.f32 %v201_v31, 0.0 }
  0xae   :  { %v186_v35 = vpop.f32.mrf.mxu2 }
  0xaf   :  { %215 = vst.msk [vmem:[%s438_s3] sm:$0xff] %vm214_vm1, %v210_v33  ;;  %v187_v36 = vadd.f32 %v186_v35, %v86_v32 }
  0xb0   :  { %v183_v38 = vpop.f32.mrf.mxu0 }
  0xb1   :  { %v206_v39 = vadd.f32 %v205_v34, %v187_v36  ;;  %v184_v40 = vadd.f32 %v183_v38, %v81_v37 }
  0xb3   :  { %v212_v41 = vmax.f32 %v206_v39, 0.0  ;;  %v203_v42 = vadd.f32 %v202_v27, %v184_v40 }
  0xb5   :  { %217 = vst.msk [vmem:[%s438_s3 + $0x10] sm:$0xff] %vm214_vm1, %v212_v41  ;;  %v211_v43 = vmax.f32 %v203_v42, 0.0 }
  0xb6   :  { %v188_v45 = vpop.f32.mrf.mxu2 }
  0xb7   :  { %216 = vst.msk [vmem:[%s438_s3 + $0x8] sm:$0xff] %vm214_vm1, %v211_v43  ;;  %v189_v46 = vadd.f32 %v188_v45, %v91_v44 }
  0xb9   :  { %v208_v48 = vadd.f32 %v207_v47, %v189_v46 }
  0xbb   :  { %v213_v49 = vmax.f32 %v208_v48, 0.0 }
  0xbd   :  { %218 = vst.msk [vmem:[%s438_s3 + $0x18] sm:$0xff] %vm214_vm1, %v213_v49 }
  0xbe   :  { %223 = vsyncpa [#allocation3], 1 }
  0xbf   :  { %224 = vsyncpa [#allocation5], 1 }

// kernel: _lambda_.10
= control target key start
LH: loop header
LB: loop body
LE: loop exit
PB: predicated region body
PF: predicated region fallthrough
CT: control target
= control target key end

     0   :  { %14 = vsyncpa [#allocation3], 0  ;;  %s783_s0 = inlined_call_operand.vmem [shape: f32[2,288], index: 0, kind: input, shape index: {}]   ;;  %s784_s1 = inlined_call_operand.hbm [shape: f32[288,128], index: 1, kind: input, shape index: {}]   ;;  %s785_s2 = inlined_call_operand.hbm [shape: f32[1,128], index: 2, kind: input, shape index: {}]   ;;  %s786_s3 = inlined_call_operand.hbm [shape: f32[128,8], index: 3, kind: input, shape index: {}]   ;;  %s787_s4 = inlined_call_operand.hbm [shape: f32[1,8], index: 4, kind: input, shape index: {}]   ;;  %s788_s5 = inlined_call_operand.hbm [shape: f32[8,128], index: 5, kind: input, shape index: {}]   ;;  %s789_s6 = inlined_call_operand.hbm [shape: f32[1,128], index: 6, kind: input, shape index: {}]   ;;  %s790_s7 = inlined_call_operand.hbm [shape: f32[128,288], index: 7, kind: input, shape index: {}]   ;;  %s791_s8 = inlined_call_operand.hbm [shape: f32[1,288], index: 8, kind: input, shape index: {}]   ;;  %s792_s9 = inlined_call_operand.vmem [shape: f32[2,288], index: 9, kind: output, shape index: {}]  }
   0x1   :  { %15 = vsyncpa [#allocation5], 0 }
   0x2   :  { %16 = vsyncpa [#allocation8], 0 }
   0x3   :  { %17 = vsyncpa [#allocation11], 0  ;;  %s39_s11 = sshll.u32 %s785_s2, 4  ;;  %s40_s11 = int_to_ptr.hbm [resolvable:$true] %s39_s11 }
   0x4   :  { %18 = vsyncpa [#allocation14], 0  ;;  %s691_s12 = smov [#allocation4]   ;;  %s63_s16 = sshll.u32 %s787_s4, 4  ;;  %s64_s16 = int_to_ptr.hbm [resolvable:$true] %s63_s16 }
   0x5   :  { %s41_s13 = sshll.u32 %s691_s12, 4  ;;  %s692_s17 = smov [#allocation7]   ;;  %s42_s13 = int_to_ptr.vmem [resolvable:$true] %s41_s13 }
   0x6   :  { %44 = dma.hbm_to_vmem [thread:$0]  %s40_s11, 16, %s42_s13, [#allocation5]  }
   0x7   :  { %s65_s18 = sshll.u32 %s692_s17, 4  ;;  %s85_s21 = sshll.u32 %s789_s6, 4  ;;  %s66_s18 = int_to_ptr.vmem [resolvable:$true] %s65_s18  ;;  %s86_s21 = int_to_ptr.hbm [resolvable:$true] %s85_s21 }
   0x8   :  { %68 = dma.hbm_to_vmem [thread:$0]  %s64_s16, 16, %s66_s18, [#allocation8]  }
   0x9   :  { %s25_s23 = sshll.u32 %s784_s1, 4  ;;  %s693_s24 = smov [#allocation10]   ;;  %s26_s23 = int_to_ptr.hbm [resolvable:$true] %s25_s23 }
   0xa   :  { %s87_s25 = sshll.u32 %s693_s24, 4  ;;  %s694_s4 = smov [#allocation2]   ;;  %s88_s25 = int_to_ptr.vmem [resolvable:$true] %s87_s25 }
   0xb   :  { %90 = dma.hbm_to_vmem [thread:$0]  %s86_s21, 16, %s88_s25, [#allocation11]  }
   0xc   :  { %s27_s26 = sshll.u32 %s694_s4, 4  ;;  %s695_s27 = smov 128   ;;  %s28_s26 = int_to_ptr.vmem [resolvable:$true] %s27_s26 }
   0xd   :  { %s696_s28 = smov 8   ;;  %s49_s30 = sshll.u32 %s786_s3, 4  ;;  %s50_s30 = int_to_ptr.hbm [resolvable:$true] %s49_s30 }
   0xe   :  { %33 = dma.hbm_to_vmem [thread:$0]  %s26_s23, 4608, %s28_s26, [#allocation3], %s695_s27, %s695_s27, %s696_s28  }
   0xf   :  { %s697_s10 = smov [#allocation6]   ;;  %s74_s13 = sshll.u32 %s788_s5, 4  ;;  %s75_s13 = int_to_ptr.hbm [resolvable:$true] %s74_s13 }
  0x10   :  { %s51_s11 = sshll.u32 %s697_s10, 4  ;;  %s698_s14 = smov [#allocation9]   ;;  %s52_s11 = int_to_ptr.vmem [resolvable:$true] %s51_s11 }
  0x11   :  { %57 = dma.hbm_to_vmem [thread:$0]  %s50_s30, 2048, %s52_s11, [#allocation5], %s695_s27, %s695_s27, %s696_s28  }
  0x12   :  { %s76_s15 = sshll.u32 %s698_s14, 4  ;;  %s95_s18 = sshll.u32 %s790_s7, 4  ;;  %s77_s15 = int_to_ptr.vmem [resolvable:$true] %s76_s15  ;;  %s96_s18 = int_to_ptr.hbm [resolvable:$true] %s95_s18 }
  0x13   :  { %79 = dma.hbm_to_vmem [thread:$0]  %s75_s13, 128, %s77_s15, [#allocation8]  }
  0x14   :  { %s699_s3 = smov [#allocation12]   ;;  %s109_s2 = sshll.u32 %s791_s8, 4  ;;  %s110_s2 = int_to_ptr.hbm [resolvable:$true] %s109_s2 }
  0x15   :  { %s97_s19 = sshll.u32 %s699_s3, 4  ;;  %s700_s22 = smov 384   ;;  %s98_s19 = int_to_ptr.vmem [resolvable:$true] %s97_s19 }
  0x16   :  { %s701_s5 = smov 24   ;;  %s702_s23 = smov [#allocation13]  }
  0x17   :  { %103 = dma.hbm_to_vmem [thread:$0]  %s96_s18, 6144, %s98_s19, [#allocation11], %s700_s22, %s700_s22, %s701_s5  }
  0x18   :  { %s111_s24 = sshll.u32 %s702_s23, 4  ;;  %s112_s24 = int_to_ptr.vmem [resolvable:$true] %s111_s24 }
  0x19   :  { %114 = dma.hbm_to_vmem [thread:$0]  %s110_s2, 48, %s112_s24, [#allocation14]  }
  0x1a   :  { %681 = dma.done.wait [#allocation3], 4608  }
  0x1b   :  { %682 = vsyncadd [#allocation3], 4294962688 }
  0x1c   :  { %683 = dma.done.wait [#allocation5], 2064  }
  0x1d   :  { %684 = vsyncadd [#allocation5], 4294965232 }
  0x1e   :  { %685 = dma.done.wait [#allocation8], 144  }
  0x1f   :  { %686 = vsyncadd [#allocation8], 4294967152 }
  0x20   :  { %687 = dma.done.wait [#allocation11], 6160  }
  0x21   :  { %688 = vsyncadd [#allocation11], 4294961136 }
  0x22   :  { %689 = dma.done.wait [#allocation14], 48  }
  0x23   :  { %690 = vsyncadd [#allocation14], 4294967248  ;;  %v163_v0 = vld [vmem:[#allocation2 + $0x78] sm:$0xff]  ;;  %v162_v1 = vld [vmem:[#allocation2 + $0x70] sm:$0xff]  ;;  %vm195_vm0 = vcmask 261120   ;;  %vm304_vm1 = vcmask 64512  }
  0x24   :  { %v179_v2 = vld [vmem:[#allocation2 + $0xf8] sm:$0xff]  ;;  %198 = vmatpush.msra.mxu0 %v163_v0  ;;  %v178_v3 = vld [vmem:[#allocation2 + $0xf0] sm:$0xff]  ;;  %v161_v4 = vld [vmem:[#allocation2 + $0x68] sm:$0xff]  ;;  %vm453_vm2 = vcmask 1041408   ;;  %vm458_vm3 = vcmask 1043458   ;;  %vm460_vm5 = vcmask 259076  }
  0x25   :  { %218 = vmatpush.msra.mxu1 %v179_v2  ;;  %v177_v5 = vld [vmem:[#allocation2 + $0xe8] sm:$0xff]  ;;  %v160_v6 = vld [vmem:[#allocation2 + $0x60] sm:$0xff]  ;;  %v159_v8 = vld [vmem:[#allocation2 + $0x58] sm:$0xff]  ;;  %vm455_vm6 = vcmask 1043456  }
  0x26   :  { %199 = vmatpush.msra.mxu0 %v162_v1  ;;  %v176_v7 = vld [vmem:[#allocation2 + $0xe0] sm:$0xff]  ;;  %v175_v9 = vld [vmem:[#allocation2 + $0xd8] sm:$0xff]  ;;  %v158_v11 = vld [vmem:[#allocation2 + $0x50] sm:$0xff] }
  0x27   :  { %219 = vmatpush.msra.mxu1 %v178_v3  ;;  %v183_v10 = vld [vmem:[#allocation2 + $0x118] sm:$0xff]  ;;  %v174_v12 = vld [vmem:[#allocation2 + $0xd0] sm:$0xff]  ;;  %v181_v14 = vld [vmem:[#allocation2 + $0x108] sm:$0xff] }
  0x28   :  { %200 = vmatpush.msra.mxu0 %v161_v4  ;;  %250 = vmatpush.msra.mxu2 %v183_v10  ;;  %v182_v13 = vld [vmem:[#allocation2 + $0x110] sm:$0xff]  ;;  %v157_v15 = vld [vmem:[#allocation2 + $0x48] sm:$0xff]  ;;  %v180_v17 = vld [vmem:[#allocation2 + $0x100] sm:$0xff] }
  0x29   :  { %220 = vmatpush.msra.mxu1 %v177_v5  ;;  %v173_v16 = vld [vmem:[#allocation2 + $0xc8] sm:$0xff]  ;;  %v147_v18 = vld [vmem:[%s783_s0] sm:$0x3f]  ;;  %v156_v19 = vld [vmem:[#allocation2 + $0x40] sm:$0xff] }
  0x2a   :  { %201 = vmatpush.msra.mxu0 %v160_v6  ;;  %251 = vmatpush.msra.mxu2 %v182_v13  ;;  %v172_v20 = vld [vmem:[#allocation2 + $0xc0] sm:$0xff]  ;;  %189 = vst [vmem:[#allocation1] ss:$4 sm:$0xff] %v147_v18  ;;  %v273_v22 = vld [vmem:[#allocation6 + $0x70] sm:$0xff]  ;;  %v272_v26 = vld [vmem:[#allocation6 + $0x68] sm:$0xff] }
  0x2b   :  { %221 = vmatpush.msra.mxu1 %v176_v7  ;;  %v274_v21 = vld [vmem:[#allocation6 + $0x78] sm:$0xff]  ;;  %v154_v25 = vld [vmem:[#allocation2 + $0x30] sm:$0xff]  ;;  %v271_v28 = vld [vmem:[#allocation6 + $0x60] sm:$0xff] }
  0x2c   :  { %202 = vmatpush.msra.mxu0 %v159_v8  ;;  %252 = vmatpush.msra.mxu2 %v181_v14  ;;  %v155_v23 = vld [vmem:[#allocation2 + $0x38] sm:$0xff]  ;;  %v170_v27 = vld [vmem:[#allocation2 + $0xb0] sm:$0xff]  ;;  %v153_v29 = vld [vmem:[#allocation2 + $0x28] sm:$0xff] }
  0x2d   :  { %222 = vmatpush.msra.mxu1 %v175_v9  ;;  %v171_v24 = vld [vmem:[#allocation2 + $0xb8] sm:$0xff]  ;;  %279 = vmatpush.msra.mxu3 %v274_v21  ;;  %v169_v30 = vld [vmem:[#allocation2 + $0xa8] sm:$0xff]  ;;  %v152_v33 = vld [vmem:[#allocation2 + $0x20] sm:$0xff] }
  0x2e   :  { %203 = vmatpush.msra.mxu0 %v158_v11  ;;  %253 = vmatpush.msra.mxu2 %v180_v17  ;;  %v270_v32 = vld [vmem:[#allocation6 + $0x58] sm:$0xff]  ;;  %v269_v35 = vld [vmem:[#allocation6 + $0x50] sm:$0xff]  ;;  %v268_v38 = vld [vmem:[#allocation6 + $0x48] sm:$0xff] }
  0x2f   :  { %223 = vmatpush.msra.mxu1 %v174_v12  ;;  %280 = vmatpush.msra.mxu3 %v273_v22  ;;  %v168_v34 = vld [vmem:[#allocation2 + $0xa0] sm:$0xff]  ;;  %v151_v36 = vld [vmem:[#allocation2 + $0x18] sm:$0xff]  ;;  %v150_v39 = vld [vmem:[#allocation2 + $0x10] sm:$0xff] }
  0x30   :  { %204 = vmatpush.msra.mxu0 %v157_v15  ;;  %v167_v37 = vld [vmem:[#allocation2 + $0x98] sm:$0xff]  ;;  %v166_v40 = vld [vmem:[#allocation2 + $0x90] sm:$0xff]  ;;  %v267_v41 = vld [vmem:[#allocation6 + $0x40] sm:$0xff] }
  0x31   :  { %224 = vmatpush.msra.mxu1 %v173_v16  ;;  %281 = vmatpush.msra.mxu3 %v272_v26  ;;  %v192_v31 = vld.sshfl [vmem:[#allocation1 + $0x10] sm:$0xff pattern:$0x73625140]  ;;  %v266_v44 = vld [vmem:[#allocation6 + $0x38] sm:$0xff]  ;;  %v265_v49 = vld [vmem:[#allocation6 + $0x30] sm:$0xff] }
  0x32   :  { %205 = vmatpush.msra.mxu0 %v156_v19  ;;  %472 = vmatmul.msk.f32.vlgmr.msra.gmra.mxu2 %vm195_vm0, %v192_v31  ;;  %v149_v42 = vld [vmem:[#allocation2 + $0x8] sm:$0xff]  ;;  %v148_v45 = vld [vmem:[#allocation2] sm:$0xff]  ;;  %v190_v47 = vld.sshfl [vmem:[#allocation1] sm:$0xff pattern:$0x73625140] }
  0x33   :  { %225 = vmatpush.msra.mxu1 %v172_v20  ;;  %282 = vmatpush.msra.mxu3 %v271_v28  ;;  %v165_v43 = vld [vmem:[#allocation2 + $0x88] sm:$0xff]  ;;  %v164_v46 = vld [vmem:[#allocation2 + $0x80] sm:$0xff]  ;;  %v261_v53 = vld [vmem:[#allocation6 + $0x10] sm:$0xff] }
  0x34   :  { %206 = vmatpush.msra.mxu0 %v155_v23  ;;  %v191_v48 = vld.sshfl [vmem:[#allocation1 + $0x8] sm:$0xff pattern:$0x73625140]  ;;  %v264_v50 = vld [vmem:[#allocation6 + $0x28] sm:$0xff]  ;;  %v374_v1 = vld [vmem:[#allocation12 + $0x168] sm:$0xff] }
  0x35   :  { %226 = vmatpush.msra.mxu1 %v171_v24  ;;  %283 = vmatpush.msra.mxu3 %v270_v32  ;;  %v263_v51 = vld [vmem:[#allocation6 + $0x20] sm:$0xff]  ;;  %v262_v52 = vld [vmem:[#allocation6 + $0x18] sm:$0xff]  ;;  %v260_v54 = vld [vmem:[#allocation6 + $0x8] sm:$0xff] }
  0x36   :  { %207 = vmatpush.msra.mxu0 %v154_v25  ;;  %v259_v55 = vld [vmem:[#allocation6] sm:$0xff]  ;;  %v486_v57 = vld [vmem:[#allocation4] ss:$0 sm:$0xff]  ;;  %v373_v6 = vld [vmem:[#allocation12 + $0x160] sm:$0xff] }
  0x37   :  { %227 = vmatpush.msra.mxu1 %v170_v27  ;;  %284 = vmatpush.msra.mxu3 %v269_v35  ;;  %v299_v56 = vld [vmem:[#allocation9] sm:$0xff]  ;;  %v369_v8 = vld [vmem:[#allocation12 + $0x140] sm:$0xff]  ;;  %v370_v9 = vld [vmem:[#allocation12 + $0x148] sm:$0xff] }
  0x38   :  { %208 = vmatpush.msra.mxu0 %v153_v29  ;;  %323 = vmatpush.msrb.mxu2 %v299_v56  ;;  %v375_v2 = vld [vmem:[#allocation12 + $0x170] sm:$0xff]  ;;  %v376_v3 = vld [vmem:[#allocation12 + $0x178] sm:$0xff]  ;;  %v365_v10 = vld [vmem:[#allocation12 + $0x120] sm:$0xff] }
  0x39   :  { %228 = vmatpush.msra.mxu1 %v169_v30  ;;  %285 = vmatpush.msra.mxu3 %v268_v38  ;;  %v371_v4 = vld [vmem:[#allocation12 + $0x150] sm:$0xff]  ;;  %v372_v5 = vld [vmem:[#allocation12 + $0x158] sm:$0xff]  ;;  %v366_v11 = vld [vmem:[#allocation12 + $0x128] sm:$0xff] }
  0x3a   :  { %209 = vmatpush.msra.mxu0 %v152_v33  ;;  %385 = vmatpush.msra.mxu2 %v374_v1  ;;  %v368_v7 = vld [vmem:[#allocation12 + $0x138] sm:$0xff]  ;;  %v367_v12 = vld [vmem:[#allocation12 + $0x130] sm:$0xff]  ;;  %v362_v13 = vld [vmem:[#allocation12 + $0x108] sm:$0xff] }
  0x3b   :  { %229 = vmatpush.msra.mxu1 %v168_v34  ;;  %286 = vmatpush.msra.mxu3 %v267_v41  ;;  %v363_v14 = vld [vmem:[#allocation12 + $0x110] sm:$0xff]  ;;  %v364_v15 = vld [vmem:[#allocation12 + $0x118] sm:$0xff]  ;;  %v361_v18 = vld [vmem:[#allocation12 + $0x100] sm:$0xff] }
  0x3c   :  { %210 = vmatpush.msra.mxu0 %v151_v36  ;;  %386 = vmatpush.msra.mxu2 %v371_v4  ;;  %v359_v16 = vld [vmem:[#allocation12 + $0xf0] sm:$0xff]  ;;  %v360_v17 = vld [vmem:[#allocation12 + $0xf8] sm:$0xff]  ;;  %v357_v20 = vld [vmem:[#allocation12 + $0xe0] sm:$0xff] }
  0x3d   :  { %230 = vmatpush.msra.mxu1 %v167_v37  ;;  %287 = vmatpush.msra.mxu3 %v266_v44  ;;  %v356_v19 = vld [vmem:[#allocation12 + $0xd8] sm:$0xff]  ;;  %v358_v21 = vld [vmem:[#allocation12 + $0xe8] sm:$0xff]  ;;  %v353_v22 = vld [vmem:[#allocation12 + $0xc0] sm:$0xff] }
  0x3e   :  { %211 = vmatpush.msra.mxu0 %v150_v39  ;;  %387 = vmatpush.msra.mxu2 %v368_v7  ;;  %v354_v23 = vld [vmem:[#allocation12 + $0xc8] sm:$0xff]  ;;  %v355_v24 = vld [vmem:[#allocation12 + $0xd0] sm:$0xff]  ;;  %v352_v27 = vld [vmem:[#allocation12 + $0xb8] sm:$0xff] }
  0x3f   :  { %231 = vmatpush.msra.mxu1 %v166_v40  ;;  %288 = vmatpush.msra.mxu3 %v265_v49  ;;  %v350_v25 = vld [vmem:[#allocation12 + $0xa8] sm:$0xff]  ;;  %v351_v26 = vld [vmem:[#allocation12 + $0xb0] sm:$0xff]  ;;  %v348_v29 = vld [vmem:[#allocation12 + $0x98] sm:$0xff] }
  0x40   :  { %212 = vmatpush.msra.mxu0 %v149_v42  ;;  %388 = vmatpush.msra.mxu2 %v365_v10  ;;  %v347_v28 = vld [vmem:[#allocation12 + $0x90] sm:$0xff]  ;;  %v349_v30 = vld [vmem:[#allocation12 + $0xa0] sm:$0xff]  ;;  %v344_v31 = vld [vmem:[#allocation12 + $0x78] sm:$0xff] }
  0x41   :  { %232 = vmatpush.msra.mxu1 %v165_v43  ;;  %289 = vmatpush.msra.mxu3 %v264_v50  ;;  %v345_v32 = vld [vmem:[#allocation12 + $0x80] sm:$0xff]  ;;  %v346_v33 = vld [vmem:[#allocation12 + $0x88] sm:$0xff]  ;;  %v343_v36 = vld [vmem:[#allocation12 + $0x70] sm:$0xff] }
  0x42   :  { %213 = vmatpush.msra.mxu0 %v148_v45  ;;  %389 = vmatpush.msra.mxu2 %v362_v13  ;;  %v341_v34 = vld [vmem:[#allocation12 + $0x60] sm:$0xff]  ;;  %v342_v35 = vld [vmem:[#allocation12 + $0x68] sm:$0xff]  ;;  %v339_v38 = vld [vmem:[#allocation12 + $0x50] sm:$0xff] }
  0x43   :  { %233 = vmatpush.msra.mxu1 %v164_v46  ;;  %214 = vmatmul.f32.vlgmr.msra.gmra.mxu0 %v190_v47  ;;  %v338_v37 = vld [vmem:[#allocation12 + $0x48] sm:$0xff]  ;;  %v340_v39 = vld [vmem:[#allocation12 + $0x58] sm:$0xff]  ;;  %v487_v40 = vld [vmem:[#allocation7] ss:$0 sm:$0xff] }
  0x44   :  { %234 = vmatmul.f32.vlgmr.msra.gmra.mxu1 %v191_v48  ;;  %290 = vmatpush.msra.mxu3 %v263_v51  ;;  %v335_v43 = vld [vmem:[#allocation12 + $0x30] sm:$0xff]  ;;  %v336_v44 = vld [vmem:[#allocation12 + $0x38] sm:$0xff]  ;;  %v337_v45 = vld [vmem:[#allocation12 + $0x40] sm:$0xff] }
  0x45   :  { %405 = vmatpush.msrb.mxu0 %v375_v2  ;;  %425 = vmatpush.msrb.mxu1 %v376_v3  ;;  %v332_v46 = vld [vmem:[#allocation12 + $0x18] sm:$0xff]  ;;  %v333_v47 = vld [vmem:[#allocation12 + $0x20] sm:$0xff]  ;;  %v334_v48 = vld [vmem:[#allocation12 + $0x28] sm:$0xff] }
  0x46   :  { %291 = vmatpush.msra.mxu3 %v262_v52  ;;  %390 = vmatpush.msra.mxu2 %v359_v16  ;;  %v329_v49 = vld [vmem:[#allocation12] sm:$0xff]  ;;  %v330_v50 = vld [vmem:[#allocation12 + $0x8] sm:$0xff]  ;;  %v331_v51 = vld [vmem:[#allocation12 + $0x10] sm:$0xff] }
  0x47   :  { %406 = vmatpush.msrb.mxu0 %v372_v5  ;;  %426 = vmatpush.msrb.mxu1 %v373_v6  ;;  %v488_v52 = vld [vmem:[#allocation10] ss:$0 sm:$0xff]  ;;  %v377_v56 = vld [vmem:[#allocation13] sm:$0x7]  ;;  %vm459_vm4 = vmor %vm458_vm3, %vm453_vm2 }
  0x48   :  { %292 = vmatpush.msra.mxu3 %v261_v53  ;;  %391 = vmatpush.msra.mxu2 %v356_v19  ;;  %vm461_vm7 = vmor %vm460_vm5, %vm459_vm4 }
  0x49   :  { %407 = vmatpush.msrb.mxu0 %v369_v8  ;;  %427 = vmatpush.msrb.mxu1 %v370_v9 }
  0x4a   :  { %293 = vmatpush.msra.mxu3 %v260_v54  ;;  %392 = vmatpush.msra.mxu2 %v353_v22 }
  0x4b   :  { %408 = vmatpush.msrb.mxu0 %v366_v11  ;;  %428 = vmatpush.msrb.mxu1 %v367_v12 }
  0x4c   :  { %294 = vmatpush.msra.mxu3 %v259_v55  ;;  %393 = vmatpush.msra.mxu2 %v350_v25 }
  0x4d   :  { %409 = vmatpush.msrb.mxu0 %v363_v14  ;;  %429 = vmatpush.msrb.mxu1 %v364_v15 }
  0x4e   :  { %394 = vmatpush.msra.mxu2 %v347_v28 }
  0x4f   :  { %410 = vmatpush.msrb.mxu0 %v360_v17  ;;  %430 = vmatpush.msrb.mxu1 %v361_v18 }
  0x50   :  { %395 = vmatpush.msra.mxu2 %v344_v31 }
  0x51   :  { %411 = vmatpush.msrb.mxu0 %v357_v20  ;;  %431 = vmatpush.msrb.mxu1 %v358_v21 }
  0x52   :  { %396 = vmatpush.msra.mxu2 %v341_v34 }
  0x53   :  { %412 = vmatpush.msrb.mxu0 %v354_v23  ;;  %432 = vmatpush.msrb.mxu1 %v355_v24 }
  0x54   :  { %397 = vmatpush.msra.mxu2 %v338_v37 }
  0x55   :  { %413 = vmatpush.msrb.mxu0 %v351_v26  ;;  %433 = vmatpush.msrb.mxu1 %v352_v27 }
  0x56   :  { %398 = vmatpush.msra.mxu2 %v335_v43 }
  0x57   :  { %414 = vmatpush.msrb.mxu0 %v348_v29  ;;  %434 = vmatpush.msrb.mxu1 %v349_v30 }
  0x58   :  { %399 = vmatpush.msra.mxu2 %v332_v46 }
  0x59   :  { %415 = vmatpush.msrb.mxu0 %v345_v32  ;;  %435 = vmatpush.msrb.mxu1 %v346_v33 }
  0x5a   :  { %400 = vmatpush.msra.mxu2 %v329_v49 }
  0x5b   :  { %416 = vmatpush.msrb.mxu0 %v342_v35  ;;  %436 = vmatpush.msrb.mxu1 %v343_v36 }
  0x5d   :  { %417 = vmatpush.msrb.mxu0 %v339_v38  ;;  %437 = vmatpush.msrb.mxu1 %v340_v39 }
  0x5f   :  { %418 = vmatpush.msrb.mxu0 %v336_v44  ;;  %438 = vmatpush.msrb.mxu1 %v337_v45 }
  0x61   :  { %419 = vmatpush.msrb.mxu0 %v333_v47  ;;  %439 = vmatpush.msrb.mxu1 %v334_v48 }
  0x63   :  { %420 = vmatpush.msrb.mxu0 %v330_v50  ;;  %440 = vmatpush.msrb.mxu1 %v331_v51 }
  0xb5   :  { %v255_v61 = vpop.f32.mrf.mxu2 }
  0xc0   :  { %v215_v58 = vpop.f32.mrf.mxu0 }
  0xc1   :  { %v235_v59 = vpop.f32.mrf.mxu1  ;;  %v216_v60 = vadd.f32 %v486_v57, %v215_v58  ;;  %v380_v57 = vperm.slane %v377_v56, 1  ;;  %v381_v58 = vperm.slane %v377_v56, 2 }
  0xc3   :  { %v236_v62 = vadd.f32 %v235_v59, %v216_v60 }
  0xc5   :  { %v256_v63 = vadd.f32 %v255_v61, %v236_v62 }
  0xc7   :  { %v258_v0 = vmax.f32 %v256_v63, 0.0  ;;  %v379_v63 = vperm.slane %v377_v56, 0 }
  0xc9   :  { %295 = vmatmul.f32.vlgmr.msra.gmra.mxu3 %v258_v0 }
 0x14c   :  { %v296_v41 = vpop.f32.mrf.mxu3 }
 0x14d   :  { %v297_v42 = vadd.f32 %v487_v40, %v296_v41 }
 0x14f   :  { %473 = vmatmul.msk.f32.vlgmr.msrb.gmra.mxu2 %vm304_vm1, %v297_v42 }
 0x1d2   :  { %v325_v53 = vpop.f32.mrf.mxu2 }
 0x1d3   :  { %v326_v54 = vadd.f32 %v488_v52, %v325_v53 }
 0x1d5   :  { %v328_v55 = vmax.f32 %v326_v54, 0.0 }
 0x1d7   :  { %401 = vmatmul.f32.vlgmr.msra.gmra.mxu2 %v328_v55  ;;  %421 = vmatmul.f32.vlgmr.msrb.gmra.mxu0 %v328_v55 }
 0x1d8   :  { %441 = vmatmul.f32.vlgmr.msrb.gmra.mxu1 %v328_v55 }
 0x254   :  { %v422_v59 = vpop.f32.mrf.mxu0 }
 0x255   :  { %v423_v60 = vadd.f32 %v422_v59, %v380_v57  ;;  %v442_v61 = vpop.f32.mrf.mxu1 }
 0x256   :  { %v443_v62 = vadd.f32 %v442_v61, %v381_v58 }
 0x257   :  { %v446_v0 = vmax.f32 %v423_v60, 0.0 }
 0x258   :  { %v447_v1 = vmax.f32 %v443_v62, 0.0 }
 0x259   :  { %v451_v4 = vrot.slane %v446_v0, 6 }
 0x25a   :  { %v402_v2 = vpop.f32.mrf.mxu2  ;;  %v452_v6 = vrot.slane %v447_v1, 4 }
 0x25b   :  { %v403_v3 = vadd.f32 %v402_v2, %v379_v63 }
 0x25d   :  { %v445_v5 = vmax.f32 %v403_v3, 0.0 }
 0x25f   :  { %v454_v7 = vsel %vm453_vm2, %v445_v5, %v451_v4 }
 0x260   :  { %v456_v8 = vsel %vm455_vm6, %v454_v7, %v452_v6 }
 0x261   :  { %462 = vst.msk [vmem:[%s792_s9] sm:$0x3f] %vm461_vm7, %v456_v8 }
 0x262   :  { %467 = vsyncpa [#allocation3], 1 }
 0x263   :  { %468 = vsyncpa [#allocation5], 1 }
 0x264   :  { %469 = vsyncpa [#allocation8], 1 }
 0x265   :  { %470 = vsyncpa [#allocation11], 1 }
 0x266   :  { %471 = vsyncpa [#allocation14], 1 }

// kernel: _lambda_.11
= control target key start
LH: loop header
LB: loop body
LE: loop exit
PB: predicated region body
PF: predicated region fallthrough
CT: control target
= control target key end

     0   :  { %v443_v2 = vmov 0   ;;  %vm196_vm0 = vcmask 261120   ;;  %vm242_vm1 = vcmask 801792   ;;  %s576_s1 = inlined_call_operand.vmem [shape: bf16[288,98], index: 1, kind: input, shape index: {}]   ;;  %s577_s2 = inlined_call_operand.vmem [shape: f32[16,1], index: 2, kind: input, shape index: {}]   ;;  %s578_s0 = inlined_call_operand.vmem [shape: bf16[16,288], index: 0, kind: input, shape index: {}]   ;;  %s579_s3 = inlined_call_operand.vmem [shape: f32[16,1], index: 3, kind: input, shape index: {}]   ;;  %s580_s4 = inlined_call_operand.vmem [shape: f32[16,1], index: 4, kind: input, shape index: {}]   ;;  %s581_s5 = inlined_call_operand.vmem [shape: f32[16,98], index: 5, kind: output, shape index: {}]  }
   0x1   :  { %v424_v0 = vld [vmem:[%s576_s1 + $0x38] sm:$0xff]  ;;  %436 = vset.pattern.permute.xlu0 %v443_v2  ;;  %437 = vset.pattern.permute.xlu1 %v443_v2  ;;  %v423_v3 = vld [vmem:[%s576_s1 + $0x30] sm:$0xff]  ;;  %v434_v5 = vld [vmem:[%s576_s1 + $0x88] sm:$0xff] }
   0x2   :  { %v432_v1 = vld [vmem:[%s576_s1 + $0x78] sm:$0xff]  ;;  %438 = vset.pattern.permute.xlu2 %v443_v2  ;;  %200 = vmatpush.bf16.msra.mxu0 %v424_v0  ;;  %v431_v4 = vld [vmem:[%s576_s1 + $0x70] sm:$0xff]  ;;  %v61_v6 = vld [vmem:[%s577_s2] sm:$0xff] }
   0x3   :  { %214 = vmatpush.bf16.msra.mxu1 %v432_v1  ;;  %234 = vmatpush.bf16.msra.mxu2 %v434_v5  ;;  %v433_v7 = vld [vmem:[%s576_s1 + $0x80] sm:$0xff]  ;;  %v339_v8 = vld [vmem:[%s578_s0 + $0x8] sm:$0xf]  ;;  %v416_v9 = vld [vmem:[%s578_s0 + $0x10] sm:$0xf0] }
   0x4   :  { %65 = vperm.xlu0 %436, %v61_v6   ;;  %v422_v10 = vld [vmem:[%s576_s1 + $0x28] sm:$0xff]  ;;  %v340_v12 = vor.u32 %v416_v9, %v339_v8  ;;  %v421_v14 = vld [vmem:[%s576_s1 + $0x20] sm:$0xff]  ;;  %v420_v16 = vld [vmem:[%s576_s1 + $0x18] sm:$0xff] }
   0x5   :  { %v430_v11 = vld [vmem:[%s576_s1 + $0x68] sm:$0xff]  ;;  %v429_v15 = vld [vmem:[%s576_s1 + $0x60] sm:$0xff]  ;;  %v428_v17 = vld [vmem:[%s576_s1 + $0x58] sm:$0xff] }
   0x6   :  { %201 = vmatpush.bf16.msra.mxu0 %v423_v3  ;;  %v62_v13 = vld [vmem:[%s577_s2 + $0x8] sm:$0xff]  ;;  %v293_v18 = vld [vmem:[%s579_s3] sm:$0xff]  ;;  %v419_v19 = vld [vmem:[%s576_s1 + $0x10] sm:$0xff] }
   0x7   :  { %215 = vmatpush.bf16.msra.mxu1 %v431_v4  ;;  %235 = vmatpush.bf16.msra.mxu2 %v433_v7  ;;  %v427_v20 = vld [vmem:[%s576_s1 + $0x50] sm:$0xff]  ;;  %v418_v21 = vld [vmem:[%s576_s1 + $0x8] sm:$0xff]  ;;  %v417_v23 = vld [vmem:[%s576_s1] sm:$0xff] }
   0x8   :  { %v426_v22 = vld [vmem:[%s576_s1 + $0x48] sm:$0xff]  ;;  %v425_v24 = vld [vmem:[%s576_s1 + $0x40] sm:$0xff]  ;;  %v333_v29 = vld [vmem:[%s578_s0 + $0xc] sm:$0xf0] }
   0x9   :  { %v331_v25 = vld [vmem:[%s578_s0] sm:$0xf]  ;;  %v308_v26 = vld [vmem:[%s580_s4 + $0x8] sm:$0xff]  ;;  %v414_v28 = vld [vmem:[%s578_s0 + $0x4] sm:$0xf] }
   0xa   :  { %202 = vmatpush.bf16.msra.mxu0 %v422_v10  ;;  %413 = vmatmul.msk.bf16.vlgmr.msra.gmra.mxu2 %vm196_vm0, %v340_v12  ;;  %v415_v27 = vld [vmem:[%s578_s0 + $0x8] sm:$0xf0]  ;;  %v336_v31 = vor.u32 %v414_v28, %v333_v29  ;;  %v307_v53 = vld [vmem:[%s580_s4] sm:$0xff] }
   0xb   :  { %216 = vmatpush.bf16.msra.mxu1 %v430_v11  ;;  %v332_v30 = vor.u32 %v415_v27, %v331_v25  ;;  %v294_v52 = vld [vmem:[%s579_s3 + $0x8] sm:$0xff] }
   0xc   :  { %70 = vperm.xlu0 %436, %v62_v13  }
   0xe   :  { %203 = vmatpush.bf16.msra.mxu0 %v421_v14 }
   0xf   :  { %217 = vmatpush.bf16.msra.mxu1 %v429_v15 }
  0x12   :  { %204 = vmatpush.bf16.msra.mxu0 %v420_v16 }
  0x13   :  { %218 = vmatpush.bf16.msra.mxu1 %v428_v17 }
  0x14   :  { %297 = vperm.xlu0 %436, %v293_v18  }
  0x16   :  { %205 = vmatpush.bf16.msra.mxu0 %v419_v19 }
  0x17   :  { %219 = vmatpush.bf16.msra.mxu1 %v427_v20 }
  0x1a   :  { %206 = vmatpush.bf16.msra.mxu0 %v418_v21 }
  0x1b   :  { %220 = vmatpush.bf16.msra.mxu1 %v426_v22 }
  0x1c   :  { %316 = vperm.xlu0 %436, %v308_v26  }
  0x1e   :  { %207 = vmatpush.bf16.msra.mxu0 %v417_v23 }
  0x1f   :  { %221 = vmatpush.bf16.msra.mxu1 %v425_v24 }
  0x21   :  { %208 = vmatmul.bf16.vlgmr.msra.gmra.mxu0 %v332_v30 }
  0x22   :  { %222 = vmatmul.bf16.vlgmr.msra.gmra.mxu1 %v336_v31 }
  0x76   :  { %v66_v32 = vpop.permute.xlu0 %65 }
  0x7e   :  { %v71_v41 = vpop.permute.xlu0 %70 }
  0x86   :  { %v298_v18 = vpop.permute.xlu0 %297 }
  0x8d   :  { %v237_v36 = vpop.f32.mrf.mxu2 }
  0x8e   :  { %v317_v31 = vpop.permute.xlu0 %316 }
  0x95   :  { %v239_v47 = vpop.f32.mrf.mxu2 }
  0x9e   :  { %v209_v33 = vpop.f32.mrf.mxu0 }
  0x9f   :  { %v223_v34 = vpop.f32.mrf.mxu1  ;;  %v210_v35 = vadd.f32 %v209_v33, %v66_v32 }
  0xa1   :  { %v224_v37 = vadd.f32 %v223_v34, %v210_v35 }
  0xa3   :  { %v238_v38 = vadd.f32 %v237_v36, %v224_v37 }
  0xa5   :  { %v243_v39 = vsel %vm242_vm1, %v238_v38, 0.0  ;;  %v249_v40 = vmul.f32 %v238_v38, %v238_v38 }
  0xa6   :  { %v211_v42 = vpop.f32.mrf.mxu0  ;;  %244 = vadd.xlane.f32.xlu1 %v243_v39 }
  0xa7   :  { %v212_v43 = vadd.f32 %v211_v42, %v71_v41  ;;  %v251_v44 = vsel %vm242_vm1, %v249_v40, 0.0  ;;  %v225_v45 = vpop.f32.mrf.mxu1 }
  0xa8   :  { %252 = vadd.xlane.f32.xlu2 %v251_v44 }
  0xa9   :  { %v226_v46 = vadd.f32 %v225_v45, %v212_v43 }
  0xab   :  { %v240_v48 = vadd.f32 %v239_v47, %v226_v46 }
  0xad   :  { %v246_v49 = vsel %vm242_vm1, %v240_v48, 0.0  ;;  %v250_v50 = vmul.f32 %v240_v48, %v240_v48 }
  0xae   :  { %247 = vadd.xlane.f32.xlu1 %v246_v49 }
  0xaf   :  { %v254_v51 = vsel %vm242_vm1, %v250_v50, 0.0 }
  0xb0   :  { %255 = vadd.xlane.f32.xlu2 %v254_v51 }
  0xc7   :  { %302 = vperm.xlu1 %437, %v294_v52  }
  0xc8   :  { %311 = vperm.xlu2 %438, %v307_v53  }
 0x119   :  { %v245_v54 = vpop.xlane.xlu1 %244 }
 0x11a   :  { %v257_v55 = vmul.f32 0.010204081, %v245_v54 }
 0x11b   :  { %v253_v56 = vpop.xlane.xlu2 %252 }
 0x11c   :  { %v261_v57 = vmul.f32 %v257_v55, %v257_v55  ;;  %v259_v58 = vmul.f32 0.010204081, %v253_v56  ;;  %v267_v13 = vsub.f32 %v238_v38, %v257_v55 }
 0x11e   :  { %v263_v59 = vsub.f32 %v259_v58, %v261_v57 }
 0x120   :  { %v265_v60 = vmax.f32 %v263_v59, 0.0 }
 0x121   :  { %v248_v61 = vpop.xlane.xlu1 %247 }
 0x122   :  { %v269_v62 = vadd.f32 1e-05, %v265_v60  ;;  %v258_v63 = vmul.f32 0.010204081, %v248_v61 }
 0x123   :  { %v256_v0 = vpop.xlane.xlu2 %255 }
 0x124   :  { %439 = vrsqrt.f32 %v269_v62  ;;  %v262_v1 = vmul.f32 %v258_v63, %v258_v63  ;;  %v260_v2 = vmul.f32 0.010204081, %v256_v0  ;;  %vm277_vm3 = vweird.f32 %v269_v62 }
 0x125   :  { %v268_v26 = vsub.f32 %v240_v48, %v258_v63 }
 0x126   :  { %v264_v3 = vsub.f32 %v260_v2, %v262_v1 }
 0x128   :  { %v266_v4 = vmax.f32 %v264_v3, 0.0 }
 0x12a   :  { %v440_v5 = vpop.eup %439  ;;  %v270_v7 = vadd.f32 1e-05, %v266_v4 }
 0x12b   :  { %v272_v6 = vmul.f32 %v440_v5, %v269_v62  ;;  %vm278_vm2 = vweird.f32 %v440_v5  ;;  %v312_v19 = vpop.permute.xlu2 %311 }
 0x12c   :  { %441 = vrsqrt.f32 %v270_v7  ;;  %vm279_vm4 = vmor %vm277_vm3, %vm278_vm2  ;;  %vm287_vm6 = vweird.f32 %v270_v7 }
 0x12d   :  { %v273_v8 = vmul.f32 %v440_v5, %v272_v6 }
 0x12f   :  { %v274_v9 = vmul.f32 0.5, %v273_v8 }
 0x131   :  { %v275_v10 = vsub.f32 1.5, %v274_v9 }
 0x132   :  { %v442_v11 = vpop.eup %441 }
 0x133   :  { %v276_v12 = vmul.f32 %v440_v5, %v275_v10  ;;  %v282_v14 = vmul.f32 %v442_v11, %v270_v7  ;;  %vm288_vm5 = vweird.f32 %v442_v11 }
 0x134   :  { %vm289_vm7 = vmor %vm287_vm6, %vm288_vm5 }
 0x135   :  { %v280_v15 = vsel %vm279_vm4, %v440_v5, %v276_v12  ;;  %v283_v16 = vmul.f32 %v442_v11, %v282_v14 }
 0x136   :  { %v291_v17 = vmul.f32 %v280_v15, %v267_v13 }
 0x137   :  { %v284_v21 = vmul.f32 0.5, %v283_v16 }
 0x138   :  { %v305_v20 = vmul.f32 %v298_v18, %v291_v17 }
 0x139   :  { %v285_v23 = vsub.f32 1.5, %v284_v21  ;;  %v303_v28 = vpop.permute.xlu1 %302 }
 0x13a   :  { %v319_v22 = vadd.f32 %v312_v19, %v305_v20 }
 0x13b   :  { %v286_v25 = vmul.f32 %v442_v11, %v285_v23 }
 0x13c   :  { %v321_v24 = vmax.f32 %v319_v22, 0.0 }
 0x13d   :  { %v290_v27 = vsel %vm289_vm7, %v442_v11, %v286_v25 }
 0x13e   :  { %323 = vst.msk [vmem:[%s581_s5] sm:$0xff] %vm242_vm1, %v321_v24  ;;  %v292_v29 = vmul.f32 %v290_v27, %v268_v26 }
 0x140   :  { %v306_v30 = vmul.f32 %v303_v28, %v292_v29 }
 0x142   :  { %v320_v32 = vadd.f32 %v317_v31, %v306_v30 }
 0x144   :  { %v322_v33 = vmax.f32 %v320_v32, 0.0 }
 0x146   :  { %324 = vst.msk [vmem:[%s581_s5 + $0x8] sm:$0xff] %vm242_vm1, %v322_v33 }

// kernel: _lambda_.12
= control target key start
LH: loop header
LB: loop body
LE: loop exit
PB: predicated region body
PF: predicated region fallthrough
CT: control target
= control target key end

     0   :  { %v621_v55 = vmov 0   ;;  %vm250_vm0 = vcmask 130048   ;;  %vm360_vm1 = vcmask 64512   ;;  %s909_s1 = inlined_call_operand.vmem [shape: bf16[144,392], index: 1, kind: input, shape index: {}]   ;;  %s910_s0 = inlined_call_operand.vmem [shape: bf16[8,144], index: 0, kind: input, shape index: {}]   ;;  %s911_s2 = inlined_call_operand.vmem [shape: f32[8,1], index: 2, kind: input, shape index: {}]   ;;  %s912_s4 = inlined_call_operand.vmem [shape: f32[8,1], index: 4, kind: input, shape index: {}]   ;;  %s913_s3 = inlined_call_operand.vmem [shape: f32[8,1], index: 3, kind: input, shape index: {}]   ;;  %s914_s5 = inlined_call_operand.vmem [shape: f32[8,392], index: 5, kind: output, shape index: {}]  }
   0x1   :  { %v607_v0 = vld [vmem:[%s909_s1 + $0xe4] sm:$0xf]  ;;  %v547_v1 = vld [vmem:[%s909_s1 + $0xf0] sm:$0xf0]  ;;  %v545_v2 = vld [vmem:[%s909_s1 + $0xe0] sm:$0xf]  ;;  %616 = vset.pattern.permute.xlu0 %v621_v55  ;;  %617 = vset.pattern.permute.xlu1 %v621_v55 }
   0x2   :  { %v550_v3 = vor.u32 %v607_v0, %v547_v1  ;;  %v609_v4 = vld [vmem:[%s909_s1 + $0xec] sm:$0xf0]  ;;  %v561_v5 = vld [vmem:[%s909_s1 + $0x100] sm:$0xf]  ;;  %v603_v9 = vld [vmem:[%s909_s1 + $0xc4] sm:$0xf]  ;;  %618 = vset.pattern.permute.xlu2 %v621_v55 }
   0x3   :  { %v613_v6 = vld [vmem:[%s909_s1 + $0x10c] sm:$0xf0]  ;;  %v546_v7 = vor.u32 %v609_v4, %v545_v2  ;;  %v531_v10 = vld [vmem:[%s909_s1 + $0xd0] sm:$0xf0]  ;;  %v529_v11 = vld [vmem:[%s909_s1 + $0xc0] sm:$0xf] }
   0x4   :  { %v562_v8 = vor.u32 %v613_v6, %v561_v5  ;;  %280 = vmatpush.bf16.msra.mxu2 %v550_v3  ;;  %v534_v12 = vor.u32 %v603_v9, %v531_v10  ;;  %v605_v13 = vld [vmem:[%s909_s1 + $0xcc] sm:$0xf0]  ;;  %v553_v14 = vld [vmem:[%s909_s1 + $0xe8] sm:$0xf]  ;;  %v610_v15 = vld [vmem:[%s909_s1 + $0xf4] sm:$0xf0] }
   0x5   :  { %254 = vmatpush.bf16.msra.mxu0 %v546_v7  ;;  %v530_v16 = vor.u32 %v605_v13, %v529_v11  ;;  %v554_v17 = vor.u32 %v610_v15, %v553_v14  ;;  %v599_v18 = vld [vmem:[%s909_s1 + $0xa4] sm:$0xf]  ;;  %v515_v19 = vld [vmem:[%s909_s1 + $0xb0] sm:$0xf0]  ;;  %v569_v20 = vld [vmem:[%s909_s1 + $0x108] sm:$0xf] }
   0x6   :  { %274 = vmatpush.bf16.msra.mxu1 %v562_v8  ;;  %v614_v21 = vld [vmem:[%s909_s1 + $0x114] sm:$0xf0]  ;;  %v513_v22 = vld [vmem:[%s909_s1 + $0xa0] sm:$0xf]  ;;  %v601_v23 = vld [vmem:[%s909_s1 + $0xac] sm:$0xf0]  ;;  %v518_v28 = vor.u32 %v599_v18, %v515_v19 }
   0x7   :  { %v570_v24 = vor.u32 %v614_v21, %v569_v20  ;;  %v537_v25 = vld [vmem:[%s909_s1 + $0xc8] sm:$0xf]  ;;  %v606_v26 = vld [vmem:[%s909_s1 + $0xd4] sm:$0xf0]  ;;  %v608_v27 = vld [vmem:[%s909_s1 + $0xec] sm:$0xf]  ;;  %v514_v33 = vor.u32 %v601_v23, %v513_v22 }
   0x8   :  { %281 = vmatpush.bf16.msra.mxu2 %v534_v12  ;;  %v538_v29 = vor.u32 %v606_v26, %v537_v25  ;;  %v555_v30 = vld [vmem:[%s909_s1 + $0xf8] sm:$0xf0]  ;;  %v595_v31 = vld [vmem:[%s909_s1 + $0x84] sm:$0xf]  ;;  %v499_v32 = vld [vmem:[%s909_s1 + $0x90] sm:$0xf0] }
   0x9   :  { %255 = vmatpush.bf16.msra.mxu0 %v530_v16  ;;  %326 = vmatpush.bf16.msra.mxu3 %v570_v24  ;;  %v558_v34 = vor.u32 %v608_v27, %v555_v30  ;;  %v497_v35 = vld [vmem:[%s909_s1 + $0x80] sm:$0xf]  ;;  %v597_v36 = vld [vmem:[%s909_s1 + $0x8c] sm:$0xf0]  ;;  %v521_v37 = vld [vmem:[%s909_s1 + $0xa8] sm:$0xf]  ;;  %v502_v44 = vor.u32 %v595_v31, %v499_v32 }
   0xa   :  { %306 = vmatpush.bf16.msrb.mxu1 %v554_v17  ;;  %v602_v38 = vld [vmem:[%s909_s1 + $0xb4] sm:$0xf0]  ;;  %v604_v39 = vld [vmem:[%s909_s1 + $0xcc] sm:$0xf]  ;;  %v539_v40 = vld [vmem:[%s909_s1 + $0xd8] sm:$0xf0]  ;;  %v498_v48 = vor.u32 %v597_v36, %v497_v35 }
   0xb   :  { %v522_v41 = vor.u32 %v602_v38, %v521_v37  ;;  %v542_v42 = vor.u32 %v604_v39, %v539_v40  ;;  %v591_v43 = vld [vmem:[%s909_s1 + $0x64] sm:$0xf]  ;;  %v483_v45 = vld [vmem:[%s909_s1 + $0x70] sm:$0xf0]  ;;  %v505_v46 = vld [vmem:[%s909_s1 + $0x88] sm:$0xf] }
   0xc   :  { %282 = vmatpush.bf16.msra.mxu2 %v518_v28  ;;  %v598_v47 = vld [vmem:[%s909_s1 + $0x94] sm:$0xf0]  ;;  %v600_v49 = vld [vmem:[%s909_s1 + $0xac] sm:$0xf]  ;;  %v523_v50 = vld [vmem:[%s909_s1 + $0xb8] sm:$0xf0]  ;;  %v486_v59 = vor.u32 %v591_v43, %v483_v45 }
   0xd   :  { %332 = vmatpush.bf16.msrb.mxu3 %v558_v34  ;;  %256 = vmatpush.bf16.msra.mxu0 %v514_v33  ;;  %v763_v51 = vld [vmem:[%s910_s0] sm:$0xff]  ;;  %v593_v53 = vld [vmem:[%s909_s1 + $0x6c] sm:$0xf0]  ;;  %v506_v56 = vor.u32 %v598_v47, %v505_v46  ;;  %v526_v57 = vor.u32 %v600_v49, %v523_v50  ;;  %v489_v58 = vld [vmem:[%s909_s1 + $0x68] sm:$0xf] }
   0xe   :  { %307 = vmatpush.bf16.msrb.mxu1 %v538_v29  ;;  %v481_v52 = vld [vmem:[%s909_s1 + $0x60] sm:$0xf]  ;;  %v66_v54 = vunpack.c.h.b16 %v763_v51  ;;  %v594_v61 = vld [vmem:[%s909_s1 + $0x74] sm:$0xf0]  ;;  %v596_v62 = vld [vmem:[%s909_s1 + $0x8c] sm:$0xf]  ;;  %v65_v34 = vunpack.c.l.b16 %v763_v51 }
   0xf   :  { %v507_v63 = vld [vmem:[%s909_s1 + $0x98] sm:$0xf0]  ;;  %v482_v0 = vor.u32 %v593_v53, %v481_v52  ;;  %v587_v1 = vld [vmem:[%s909_s1 + $0x44] sm:$0xf]  ;;  %v467_v2 = vld [vmem:[%s909_s1 + $0x50] sm:$0xf0]  ;;  %v490_v5 = vor.u32 %v594_v61, %v489_v58 }
  0x10   :  { %283 = vmatpush.bf16.msra.mxu2 %v502_v44  ;;  %v775_v60 = vpack.c.b16 %v66_v54, %v66_v54  ;;  %v465_v3 = vld [vmem:[%s909_s1 + $0x40] sm:$0xf]  ;;  %v589_v4 = vld [vmem:[%s909_s1 + $0x4c] sm:$0xf0]  ;;  %v510_v6 = vor.u32 %v596_v62, %v507_v63  ;;  %v473_v7 = vld [vmem:[%s909_s1 + $0x48] sm:$0xf]  ;;  %v470_v8 = vor.u32 %v587_v1, %v467_v2  ;;  %v67_v45 = vpack.c.b16 %v65_v34, %v65_v34 }
  0x11   :  { %333 = vmatpush.bf16.msrb.mxu3 %v542_v42  ;;  %257 = vmatpush.bf16.msra.mxu0 %v498_v48  ;;  %v590_v9 = vld [vmem:[%s909_s1 + $0x54] sm:$0xf0]  ;;  %v592_v10 = vld [vmem:[%s909_s1 + $0x6c] sm:$0xf]  ;;  %v491_v11 = vld [vmem:[%s909_s1 + $0x78] sm:$0xf0]  ;;  %v466_v12 = vor.u32 %v589_v4, %v465_v3 }
  0x12   :  { %308 = vmatpush.bf16.msrb.mxu1 %v522_v41  ;;  %577 = vmatmul.msk.bf16.vlgmr.msra.gmra.mxu3 %vm250_vm0, %v775_v60  ;;  %v583_v13 = vld [vmem:[%s909_s1 + $0x24] sm:$0xf]  ;;  %v451_v14 = vld [vmem:[%s909_s1 + $0x30] sm:$0xf0]  ;;  %v449_v15 = vld [vmem:[%s909_s1 + $0x20] sm:$0xf]  ;;  %v474_v17 = vor.u32 %v590_v9, %v473_v7  ;;  %v494_v18 = vor.u32 %v592_v10, %v491_v11 }
  0x13   :  { %575 = vmatmul.msk.bf16.vlgmr.msra.gmra.mxu1 %vm250_vm0, %v775_v60  ;;  %v585_v16 = vld [vmem:[%s909_s1 + $0x2c] sm:$0xf0]  ;;  %v579_v19 = vld [vmem:[%s909_s1 + $0x4] sm:$0xf]  ;;  %v457_v20 = vld [vmem:[%s909_s1 + $0x28] sm:$0xf]  ;;  %v454_v21 = vor.u32 %v583_v13, %v451_v14 }
  0x14   :  { %284 = vmatpush.bf16.msra.mxu2 %v486_v59  ;;  %v586_v22 = vld [vmem:[%s909_s1 + $0x34] sm:$0xf0]  ;;  %v588_v23 = vld [vmem:[%s909_s1 + $0x4c] sm:$0xf]  ;;  %v475_v24 = vld [vmem:[%s909_s1 + $0x58] sm:$0xf0]  ;;  %v450_v25 = vor.u32 %v585_v16, %v449_v15 }
  0x15   :  { %334 = vmatpush.bf16.msrb.mxu3 %v526_v57  ;;  %258 = vmatpush.bf16.msra.mxu0 %v482_v0  ;;  %v435_v26 = vld [vmem:[%s909_s1 + $0x10] sm:$0xf0]  ;;  %v433_v27 = vld [vmem:[%s909_s1] sm:$0xf]  ;;  %v581_v29 = vld [vmem:[%s909_s1 + $0xc] sm:$0xf0]  ;;  %v458_v32 = vor.u32 %v586_v22, %v457_v20  ;;  %v478_v33 = vor.u32 %v588_v23, %v475_v24 }
  0x16   :  { %309 = vmatpush.bf16.msrb.mxu1 %v506_v56  ;;  %v58_v28 = vld [vmem:[%s911_s2] sm:$0xff]  ;;  %v563_v31 = vld [vmem:[%s909_s1 + $0x110] sm:$0xf0]  ;;  %v612_v35 = vld [vmem:[%s909_s1 + $0x10c] sm:$0xf]  ;;  %v438_v37 = vor.u32 %v579_v19, %v435_v26  ;;  %v434_v40 = vor.u32 %v581_v29, %v433_v27 }
  0x17   :  { %v611_v30 = vld [vmem:[%s909_s1 + $0x104] sm:$0xf]  ;;  %61 = vperm.xlu0 %616, %v58_v28   ;;  %v571_v36 = vld [vmem:[%s909_s1 + $0x118] sm:$0xf0]  ;;  %v441_v38 = vld [vmem:[%s909_s1 + $0x8] sm:$0xf] }
  0x18   :  { %285 = vmatpush.bf16.msra.mxu2 %v470_v8  ;;  %v582_v39 = vld [vmem:[%s909_s1 + $0x14] sm:$0xf0]  ;;  %v566_v41 = vor.u32 %v611_v30, %v563_v31  ;;  %v584_v42 = vld [vmem:[%s909_s1 + $0x2c] sm:$0xf]  ;;  %v459_v43 = vld [vmem:[%s909_s1 + $0x38] sm:$0xf0]  ;;  %v574_v44 = vor.u32 %v612_v35, %v571_v36 }
  0x19   :  { %335 = vmatpush.bf16.msrb.mxu3 %v510_v6  ;;  %259 = vmatpush.bf16.msra.mxu0 %v466_v12  ;;  %v442_v46 = vor.u32 %v582_v39, %v441_v38  ;;  %v462_v47 = vor.u32 %v584_v42, %v459_v43  ;;  %v580_v48 = vld [vmem:[%s909_s1 + $0xc] sm:$0xf]  ;;  %v443_v49 = vld [vmem:[%s909_s1 + $0x18] sm:$0xf0]  ;;  %v409_v15 = vld [vmem:[%s912_s4] sm:$0xff] }
  0x1a   :  { %310 = vmatpush.bf16.msrb.mxu1 %v490_v5  ;;  %v446_v50 = vor.u32 %v580_v48, %v443_v49  ;;  %412 = vperm.xlu2 %618, %v409_v15  }
  0x1c   :  { %286 = vmatpush.bf16.msra.mxu2 %v454_v21 }
  0x1d   :  { %336 = vmatpush.bf16.msrb.mxu3 %v494_v18  ;;  %260 = vmatpush.bf16.msra.mxu0 %v450_v25  ;;  %v399_v25 = vld [vmem:[%s913_s3] sm:$0xff] }
  0x1e   :  { %311 = vmatpush.bf16.msrb.mxu1 %v474_v17 }
  0x20   :  { %287 = vmatpush.bf16.msra.mxu2 %v438_v37 }
  0x21   :  { %337 = vmatpush.bf16.msrb.mxu3 %v478_v33  ;;  %261 = vmatpush.bf16.msra.mxu0 %v434_v40 }
  0x22   :  { %312 = vmatpush.bf16.msrb.mxu1 %v458_v32 }
  0x23   :  { %288 = vmatmul.bf16.vlgmr.msra.gmra.mxu2 %v67_v45 }
  0x24   :  { %300 = vmatpush.bf16.msrb.mxu2 %v566_v41  ;;  %262 = vmatmul.bf16.vlgmr.msra.gmra.mxu0 %v67_v45 }
  0x25   :  { %352 = vmatpush.bf16.msrb.mxu0 %v574_v44  ;;  %338 = vmatpush.bf16.msrb.mxu3 %v462_v47 }
  0x26   :  { %313 = vmatpush.bf16.msrb.mxu1 %v442_v46 }
  0x29   :  { %314 = vmatmul.bf16.vlgmr.msrb.gmra.mxu1 %v67_v45  ;;  %339 = vmatpush.bf16.msrb.mxu3 %v446_v50 }
  0x2c   :  { %340 = vmatmul.bf16.vlgmr.msrb.gmra.mxu3 %v67_v45 }
  0x33   :  { %576 = vmatmul.msk.bf16.vlgmr.msrb.gmra.mxu2 %vm250_vm0, %v775_v60 }
  0x34   :  { %578 = vmatmul.msk.bf16.vlgmr.msrb.gmra.mxu0 %vm250_vm0, %v775_v60 }
  0x74   :  { %v413_v50 = vpop.permute.xlu2 %412 }
  0x89   :  { %v62_v61 = vpop.permute.xlu0 %61 }
  0x90   :  { %v276_v51 = vpop.f32.mrf.mxu1 }
  0x95   :  { %v328_v52 = vpop.f32.mrf.mxu3 }
  0x98   :  { %v278_v53 = vpop.f32.mrf.mxu1 }
  0x9d   :  { %v330_v54 = vpop.f32.mrf.mxu3 }
  0xa1   :  { %v263_v55 = vpop.f32.mrf.mxu0 }
  0xa2   :  { %v264_v0 = vadd.f32 %v263_v55, %v62_v61 }
  0xa4   :  { %v277_v4 = vadd.f32 %v276_v51, %v264_v0 }
  0xa6   :  { %v315_v56 = vpop.f32.mrf.mxu1  ;;  %v289_v57 = vpop.f32.mrf.mxu2  ;;  %v365_v13 = vmul.f32 %v277_v4, %v277_v4 }
  0xa7   :  { %v316_v3 = vadd.f32 %v315_v56, %v62_v61  ;;  %v290_v5 = vadd.f32 %v289_v57, %v62_v61 }
  0xa9   :  { %v265_v58 = vpop.f32.mrf.mxu0  ;;  %v329_v8 = vadd.f32 %v328_v52, %v316_v3 }
  0xab   :  { %v367_v17 = vmul.f32 %v329_v8, %v329_v8 }
  0xae   :  { %v317_v59 = vpop.f32.mrf.mxu1  ;;  %v291_v62 = vpop.f32.mrf.mxu2 }
  0xaf   :  { %v341_v63 = vpop.f32.mrf.mxu3 }
  0xb0   :  { %v342_v2 = vadd.f32 %v341_v63, %v62_v61 }
  0xb1   :  { %v354_v1 = vpop.f32.mrf.mxu0 }
  0xb2   :  { %v355_v6 = vadd.f32 %v354_v1, %v342_v2 }
  0xb4   :  { %v368_v14 = vmul.f32 %v355_v6, %v355_v6  ;;  %v361_v19 = vsel %vm360_vm1, %v355_v6, 0.0 }
  0xb6   :  { %v302_v60 = vpop.f32.mrf.mxu2  ;;  %v371_v23 = vsel %vm360_vm1, %v368_v14, 0.0 }
  0xb7   :  { %v343_v7 = vpop.f32.mrf.mxu3  ;;  %v303_v9 = vadd.f32 %v302_v60, %v290_v5 }
  0xb9   :  { %v358_v10 = vadd.f32 %v303_v9, %v277_v4  ;;  %v366_v11 = vmul.f32 %v303_v9, %v303_v9  ;;  %v356_v12 = vpop.f32.mrf.mxu0 }
  0xbb   :  { %v359_v16 = vadd.f32 %v358_v10, %v329_v8  ;;  %v369_v18 = vadd.f32 %v366_v11, %v365_v13 }
  0xbd   :  { %v362_v20 = vadd.f32 %v361_v19, %v359_v16  ;;  %v370_v21 = vadd.f32 %v369_v18, %v367_v17 }
  0xbe   :  { %v304_v22 = vpop.f32.mrf.mxu2 }
  0xbf   :  { %363 = vadd.xlane.f32.xlu0 %v362_v20  ;;  %v372_v24 = vadd.f32 %v371_v23, %v370_v21 }
  0xc1   :  { %373 = vadd.xlane.f32.xlu1 %v372_v24 }
  0xda   :  { %402 = vperm.xlu1 %617, %v399_v25  }
 0x132   :  { %v364_v26 = vpop.xlane.xlu0 %363 }
 0x133   :  { %v375_v27 = vmul.f32 0.0025510204, %v364_v26 }
 0x134   :  { %v374_v28 = vpop.xlane.xlu1 %373 }
 0x135   :  { %v376_v29 = vmul.f32 0.0025510204, %v374_v28  ;;  %v377_v30 = vmul.f32 %v375_v27, %v375_v27  ;;  %v380_v40 = vsub.f32 %v277_v4, %v375_v27  ;;  %v381_v41 = vsub.f32 %v303_v9, %v375_v27 }
 0x136   :  { %v382_v42 = vsub.f32 %v329_v8, %v375_v27  ;;  %v383_v43 = vsub.f32 %v355_v6, %v375_v27 }
 0x137   :  { %v378_v31 = vsub.f32 %v376_v29, %v377_v30 }
 0x139   :  { %v379_v32 = vmax.f32 %v378_v31, 0.0 }
 0x13b   :  { %v384_v33 = vadd.f32 1e-05, %v379_v32 }
 0x13d   :  { %619 = vrsqrt.f32 %v384_v33  ;;  %vm391_vm3 = vweird.f32 %v384_v33 }
 0x143   :  { %v620_v34 = vpop.eup %619 }
 0x144   :  { %v386_v35 = vmul.f32 %v620_v34, %v384_v33  ;;  %vm392_vm2 = vweird.f32 %v620_v34 }
 0x145   :  { %vm393_vm4 = vmor %vm391_vm3, %vm392_vm2 }
 0x146   :  { %v387_v36 = vmul.f32 %v620_v34, %v386_v35 }
 0x148   :  { %v388_v37 = vmul.f32 0.5, %v387_v36 }
 0x14a   :  { %v389_v38 = vsub.f32 1.5, %v388_v37 }
 0x14c   :  { %v390_v39 = vmul.f32 %v620_v34, %v389_v38  ;;  %v403_v44 = vpop.permute.xlu1 %402 }
 0x14e   :  { %v394_v45 = vsel %vm393_vm4, %v620_v34, %v390_v39 }
 0x14f   :  { %v395_v46 = vmul.f32 %v394_v45, %v380_v40  ;;  %v396_v47 = vmul.f32 %v394_v45, %v381_v41  ;;  %v397_v48 = vmul.f32 %v394_v45, %v382_v42  ;;  %v398_v49 = vmul.f32 %v394_v45, %v383_v43 }
 0x151   :  { %v405_v51 = vmul.f32 %v403_v44, %v395_v46  ;;  %v406_v52 = vmul.f32 %v403_v44, %v396_v47  ;;  %v407_v53 = vmul.f32 %v403_v44, %v397_v48  ;;  %v408_v54 = vmul.f32 %v403_v44, %v398_v49 }
 0x153   :  { %v415_v55 = vadd.f32 %v413_v50, %v405_v51  ;;  %v416_v56 = vadd.f32 %v413_v50, %v406_v52  ;;  %v417_v57 = vadd.f32 %v413_v50, %v407_v53  ;;  %v418_v58 = vadd.f32 %v413_v50, %v408_v54 }
 0x155   :  { %v419_v59 = vmax.f32 %v415_v55, 0.0  ;;  %v420_v61 = vmax.f32 %v416_v56, 0.0  ;;  %v421_v62 = vmax.f32 %v417_v57, 0.0  ;;  %v422_v63 = vmax.f32 %v418_v58, 0.0 }
 0x157   :  { %423 = vst [vmem:[%s914_s5] sm:$0xff] %v419_v59 }
 0x158   :  { %424 = vst [vmem:[%s914_s5 + $0x8] sm:$0xff] %v420_v61 }
 0x159   :  { %425 = vst [vmem:[%s914_s5 + $0x10] sm:$0xff] %v421_v62 }
 0x15a   :  { %426 = vst.msk [vmem:[%s914_s5 + $0x18] sm:$0xff] %vm360_vm1, %v422_v63 }

// kernel: _lambda_.13
= control target key start
LH: loop header
LB: loop body
LE: loop exit
PB: predicated region body
PF: predicated region fallthrough
CT: control target
= control target key end

     0   :  { %v1306_v3 = vmov 0   ;;  %vm425_vm0 = vcmask 654336   ;;  %s2079_s1 = inlined_call_operand.vmem [shape: bf16[80,1568], index: 1, kind: input, shape index: {}]   ;;  %s2080_s2 = inlined_call_operand.<no memory space> [shape: f32[1,1], index: 2, kind: input, shape index: {}]   ;;  %s2081_s0 = inlined_call_operand.vmem [shape: bf16[1,80], index: 0, kind: input, shape index: {}]   ;;  %s2082_s3 = inlined_call_operand.vmem [shape: f32[1,1568], index: 3, kind: output, shape index: {}]  }
   0x1   :  { %v1111_v0 = vld [vmem:[%s2079_s1 + $0x1a0] sm:$0xf]  ;;  %v1245_v1 = vld [vmem:[%s2079_s1 + $0x1d0] sm:$0xf0]  ;;  %v1239_v2 = vld [vmem:[%s2079_s1 + $0x1a4] sm:$0xf]  ;;  %1253 = vset.pattern.permute.xlu0 %v1306_v3 }
   0x2   :  { %v1112_v4 = vor.u32 %v1245_v1, %v1111_v0  ;;  %v1113_v5 = vld [vmem:[%s2079_s1 + $0x1d4] sm:$0xf0]  ;;  %v1119_v6 = vld [vmem:[%s2079_s1 + $0x1a8] sm:$0xf]  ;;  %v1246_v7 = vld [vmem:[%s2079_s1 + $0x1d8] sm:$0xf0] }
   0x3   :  { %v1116_v8 = vor.u32 %v1239_v2, %v1113_v5  ;;  %v1120_v9 = vor.u32 %v1246_v7, %v1119_v6  ;;  %v1240_v10 = vld [vmem:[%s2079_s1 + $0x1ac] sm:$0xf]  ;;  %v1121_v11 = vld [vmem:[%s2079_s1 + $0x1dc] sm:$0xf0]  ;;  %v1059_v12 = vld [vmem:[%s2079_s1 + $0x138] sm:$0xf] }
   0x4   :  { %432 = vmatpush.bf16.msra.mxu0 %v1112_v4  ;;  %v1124_v13 = vor.u32 %v1240_v10, %v1121_v11  ;;  %v1232_v14 = vld [vmem:[%s2079_s1 + $0x168] sm:$0xf0]  ;;  %v1226_v15 = vld [vmem:[%s2079_s1 + $0x13c] sm:$0xf]  ;;  %v1061_v16 = vld [vmem:[%s2079_s1 + $0x16c] sm:$0xf0]  ;;  %v8_v11 = vstv %s2080_s2 }
   0x5   :  { %445 = vmatpush.bf16.msra.mxu1 %v1116_v8  ;;  %458 = vmatpush.bf16.msra.mxu2 %v1120_v9  ;;  %v1060_v17 = vor.u32 %v1232_v14, %v1059_v12  ;;  %v1064_v18 = vor.u32 %v1226_v15, %v1061_v16  ;;  %v1067_v19 = vld [vmem:[%s2079_s1 + $0x140] sm:$0xf]  ;;  %v1233_v20 = vld [vmem:[%s2079_s1 + $0x170] sm:$0xf0]  ;;  %v1227_v21 = vld [vmem:[%s2079_s1 + $0x144] sm:$0xf] }
   0x6   :  { %471 = vmatpush.bf16.msra.mxu3 %v1124_v13  ;;  %v1068_v22 = vor.u32 %v1233_v20, %v1067_v19  ;;  %v1069_v23 = vld [vmem:[%s2079_s1 + $0x174] sm:$0xf0]  ;;  %v1007_v24 = vld [vmem:[%s2079_s1 + $0xd0] sm:$0xf]  ;;  %v1219_v25 = vld [vmem:[%s2079_s1 + $0x100] sm:$0xf0] }
   0x7   :  { %v1072_v26 = vor.u32 %v1227_v21, %v1069_v23  ;;  %v1213_v27 = vld [vmem:[%s2079_s1 + $0xd4] sm:$0xf]  ;;  %v1009_v28 = vld [vmem:[%s2079_s1 + $0x104] sm:$0xf0]  ;;  %v1015_v29 = vld [vmem:[%s2079_s1 + $0xd8] sm:$0xf]  ;;  %v1008_v30 = vor.u32 %v1219_v25, %v1007_v24 }
   0x8   :  { %433 = vmatpush.bf16.msra.mxu0 %v1060_v17  ;;  %v1220_v31 = vld [vmem:[%s2079_s1 + $0x108] sm:$0xf0]  ;;  %v1214_v32 = vld [vmem:[%s2079_s1 + $0xdc] sm:$0xf]  ;;  %v1017_v33 = vld [vmem:[%s2079_s1 + $0x10c] sm:$0xf0]  ;;  %v1012_v34 = vor.u32 %v1213_v27, %v1009_v28 }
   0x9   :  { %446 = vmatpush.bf16.msra.mxu1 %v1064_v18  ;;  %459 = vmatpush.bf16.msra.mxu2 %v1068_v22  ;;  %v1016_v35 = vor.u32 %v1220_v31, %v1015_v29  ;;  %v955_v36 = vld [vmem:[%s2079_s1 + $0x68] sm:$0xf]  ;;  %v1206_v37 = vld [vmem:[%s2079_s1 + $0x98] sm:$0xf0]  ;;  %v1200_v38 = vld [vmem:[%s2079_s1 + $0x6c] sm:$0xf]  ;;  %v1020_v39 = vor.u32 %v1214_v32, %v1017_v33 }
   0xa   :  { %472 = vmatpush.bf16.msra.mxu3 %v1072_v26  ;;  %v957_v40 = vld [vmem:[%s2079_s1 + $0x9c] sm:$0xf0]  ;;  %v963_v41 = vld [vmem:[%s2079_s1 + $0x70] sm:$0xf]  ;;  %v1207_v42 = vld [vmem:[%s2079_s1 + $0xa0] sm:$0xf0]  ;;  %v956_v45 = vor.u32 %v1206_v37, %v955_v36 }
   0xb   :  { %v1201_v43 = vld [vmem:[%s2079_s1 + $0x74] sm:$0xf]  ;;  %v965_v44 = vld [vmem:[%s2079_s1 + $0xa4] sm:$0xf0]  ;;  %v903_v46 = vld [vmem:[%s2079_s1] sm:$0xf]  ;;  %v960_v48 = vor.u32 %v1200_v38, %v957_v40  ;;  %v964_v49 = vor.u32 %v1207_v42, %v963_v41 }
   0xc   :  { %434 = vmatpush.bf16.msra.mxu0 %v1008_v30  ;;  %v1193_v47 = vld [vmem:[%s2079_s1 + $0x30] sm:$0xf0]  ;;  %v1187_v50 = vld [vmem:[%s2079_s1 + $0x4] sm:$0xf]  ;;  %v905_v51 = vld [vmem:[%s2079_s1 + $0x34] sm:$0xf0]  ;;  %v968_v53 = vor.u32 %v1201_v43, %v965_v44 }
   0xd   :  { %447 = vmatpush.bf16.msra.mxu1 %v1012_v34  ;;  %460 = vmatpush.bf16.msra.mxu2 %v1016_v35  ;;  %v911_v52 = vld [vmem:[%s2079_s1 + $0x8] sm:$0xf]  ;;  %v1194_v54 = vld [vmem:[%s2079_s1 + $0x38] sm:$0xf0]  ;;  %v1188_v55 = vld [vmem:[%s2079_s1 + $0xc] sm:$0xf]  ;;  %v904_v60 = vor.u32 %v1193_v47, %v903_v46  ;;  %v908_v0 = vor.u32 %v1187_v50, %v905_v51 }
   0xe   :  { %473 = vmatpush.bf16.msra.mxu3 %v1020_v39  ;;  %v913_v56 = vld [vmem:[%s2079_s1 + $0x3c] sm:$0xf0]  ;;  %v1127_v57 = vld [vmem:[%s2079_s1 + $0x1b0] sm:$0xf]  ;;  %v1247_v58 = vld [vmem:[%s2079_s1 + $0x1e0] sm:$0xf0]  ;;  %v912_v1 = vor.u32 %v1194_v54, %v911_v52 }
   0xf   :  { %v1241_v59 = vld [vmem:[%s2079_s1 + $0x1b4] sm:$0xf]  ;;  %v1129_v61 = vld [vmem:[%s2079_s1 + $0x1e4] sm:$0xf0]  ;;  %v1135_v62 = vld [vmem:[%s2079_s1 + $0x1b8] sm:$0xf]  ;;  %v916_v4 = vor.u32 %v1188_v55, %v913_v56  ;;  %v1128_v5 = vor.u32 %v1247_v58, %v1127_v57 }
  0x10   :  { %435 = vmatpush.bf16.msra.mxu0 %v956_v45  ;;  %v1248_v63 = vld [vmem:[%s2079_s1 + $0x1e8] sm:$0xf0]  ;;  %v1242_v2 = vld [vmem:[%s2079_s1 + $0x1bc] sm:$0xf]  ;;  %v1137_v3 = vld [vmem:[%s2079_s1 + $0x1ec] sm:$0xf0]  ;;  %v1132_v6 = vor.u32 %v1241_v59, %v1129_v61 }
  0x11   :  { %448 = vmatpush.bf16.msra.mxu1 %v960_v48  ;;  %461 = vmatpush.bf16.msra.mxu2 %v964_v49  ;;  %v1136_v7 = vor.u32 %v1248_v63, %v1135_v62  ;;  %v1075_v8 = vld [vmem:[%s2079_s1 + $0x148] sm:$0xf]  ;;  %v1234_v9 = vld [vmem:[%s2079_s1 + $0x178] sm:$0xf0]  ;;  %v1228_v10 = vld [vmem:[%s2079_s1 + $0x14c] sm:$0xf]  ;;  %v1140_v12 = vor.u32 %v1242_v2, %v1137_v3 }
  0x12   :  { %474 = vmatpush.bf16.msra.mxu3 %v968_v53  ;;  %v1077_v13 = vld [vmem:[%s2079_s1 + $0x17c] sm:$0xf0]  ;;  %v1083_v14 = vld [vmem:[%s2079_s1 + $0x150] sm:$0xf]  ;;  %v1235_v15 = vld [vmem:[%s2079_s1 + $0x180] sm:$0xf0]  ;;  %v1076_v19 = vor.u32 %v1234_v9, %v1075_v8 }
  0x13   :  { %v1495_v16 = vld [vmem:[%s2081_s0] sm:$0x1]  ;;  %v1229_v17 = vld [vmem:[%s2079_s1 + $0x154] sm:$0xf]  ;;  %v1085_v18 = vld [vmem:[%s2079_s1 + $0x184] sm:$0xf0]  ;;  %v1080_v20 = vor.u32 %v1228_v10, %v1077_v13  ;;  %v1084_v21 = vor.u32 %v1235_v15, %v1083_v14 }
  0x14   :  { %436 = vmatpush.bf16.msra.mxu0 %v904_v60  ;;  %9 = vst [vmem:[#allocation2] sm:$0x1] %v8_v11  ;;  %v1023_v22 = vld [vmem:[%s2079_s1 + $0xe0] sm:$0xf]  ;;  %v1221_v23 = vld [vmem:[%s2079_s1 + $0x110] sm:$0xf0]  ;;  %v1088_v25 = vor.u32 %v1229_v17, %v1085_v18 }
  0x15   :  { %449 = vmatpush.bf16.msra.mxu1 %v908_v0  ;;  %462 = vmatpush.bf16.msra.mxu2 %v912_v1  ;;  %v1215_v24 = vld [vmem:[%s2079_s1 + $0xe4] sm:$0xf]  ;;  %v1025_v26 = vld [vmem:[%s2079_s1 + $0x114] sm:$0xf0]  ;;  %v1031_v27 = vld [vmem:[%s2079_s1 + $0xe8] sm:$0xf]  ;;  %v1024_v31 = vor.u32 %v1221_v23, %v1023_v22 }
  0x16   :  { %475 = vmatpush.bf16.msra.mxu3 %v916_v4  ;;  %v1222_v28 = vld [vmem:[%s2079_s1 + $0x118] sm:$0xf0]  ;;  %v1216_v29 = vld [vmem:[%s2079_s1 + $0xec] sm:$0xf]  ;;  %v1033_v30 = vld [vmem:[%s2079_s1 + $0x11c] sm:$0xf0]  ;;  %v1028_v32 = vor.u32 %v1215_v24, %v1025_v26 }
  0x17   :  { %1161 = vmatmul.msk.bf16.vlgmr.msra.gmra.mxu0 %vm425_vm0, %v1495_v16  ;;  %v1032_v33 = vor.u32 %v1222_v28, %v1031_v27  ;;  %v971_v34 = vld [vmem:[%s2079_s1 + $0x78] sm:$0xf]  ;;  %v1208_v35 = vld [vmem:[%s2079_s1 + $0xa8] sm:$0xf0]  ;;  %v1202_v36 = vld [vmem:[%s2079_s1 + $0x7c] sm:$0xf]  ;;  %v1036_v37 = vor.u32 %v1216_v29, %v1033_v30 }
  0x18   :  { %484 = vmatpush.bf16.msrb.mxu0 %v1128_v5  ;;  %1162 = vmatmul.msk.bf16.vlgmr.msra.gmra.mxu1 %vm425_vm0, %v1495_v16  ;;  %v973_v38 = vld [vmem:[%s2079_s1 + $0xac] sm:$0xf0]  ;;  %v979_v39 = vld [vmem:[%s2079_s1 + $0x80] sm:$0xf]  ;;  %v1209_v40 = vld [vmem:[%s2079_s1 + $0xb0] sm:$0xf0]  ;;  %v972_v44 = vor.u32 %v1208_v35, %v971_v34 }
  0x19   :  { %497 = vmatpush.bf16.msrb.mxu1 %v1132_v6  ;;  %510 = vmatpush.bf16.msrb.mxu2 %v1136_v7  ;;  %v1203_v42 = vld [vmem:[%s2079_s1 + $0x84] sm:$0xf]  ;;  %v981_v43 = vld [vmem:[%s2079_s1 + $0xb4] sm:$0xf0]  ;;  %v919_v45 = vld [vmem:[%s2079_s1 + $0x10] sm:$0xf]  ;;  %v976_v47 = vor.u32 %v1202_v36, %v973_v38  ;;  %v980_v48 = vor.u32 %v1209_v40, %v979_v39 }
  0x1a   :  { %523 = vmatpush.bf16.msrb.mxu3 %v1140_v12  ;;  %1163 = vmatmul.msk.bf16.vlgmr.msra.gmra.mxu2 %vm425_vm0, %v1495_v16  ;;  %v1195_v46 = vld [vmem:[%s2079_s1 + $0x40] sm:$0xf0]  ;;  %v1189_v49 = vld [vmem:[%s2079_s1 + $0x14] sm:$0xf]  ;;  %v921_v50 = vld [vmem:[%s2079_s1 + $0x44] sm:$0xf0]  ;;  %v984_v52 = vor.u32 %v1203_v42, %v981_v43 }
  0x1b   :  { %1164 = vmatmul.msk.bf16.vlgmr.msra.gmra.mxu3 %vm425_vm0, %v1495_v16  ;;  %v88_v41 = vld [vmem:[#allocation2] sm:$0x1]  ;;  %v927_v51 = vld [vmem:[%s2079_s1 + $0x18] sm:$0xf]  ;;  %v1196_v53 = vld [vmem:[%s2079_s1 + $0x48] sm:$0xf0]  ;;  %v920_v59 = vor.u32 %v1195_v46, %v919_v45  ;;  %v924_v63 = vor.u32 %v1189_v49, %v921_v50 }
  0x1c   :  { %485 = vmatpush.bf16.msrb.mxu0 %v1076_v19  ;;  %91 = vperm.xlu0 %1253, %v88_v41   ;;  %v1190_v54 = vld [vmem:[%s2079_s1 + $0x1c] sm:$0xf]  ;;  %v929_v55 = vld [vmem:[%s2079_s1 + $0x4c] sm:$0xf0]  ;;  %v1143_v56 = vld [vmem:[%s2079_s1 + $0x1c0] sm:$0xf]  ;;  %v928_v0 = vor.u32 %v1196_v53, %v927_v51 }
  0x1d   :  { %498 = vmatpush.bf16.msrb.mxu1 %v1080_v20  ;;  %511 = vmatpush.bf16.msrb.mxu2 %v1084_v21  ;;  %v1249_v57 = vld [vmem:[%s2079_s1 + $0x1f0] sm:$0xf0]  ;;  %v1243_v58 = vld [vmem:[%s2079_s1 + $0x1c4] sm:$0xf]  ;;  %v1145_v60 = vld [vmem:[%s2079_s1 + $0x1f4] sm:$0xf0]  ;;  %v932_v3 = vor.u32 %v1190_v54, %v929_v55 }
  0x1e   :  { %524 = vmatpush.bf16.msrb.mxu3 %v1088_v25  ;;  %v1151_v61 = vld [vmem:[%s2079_s1 + $0x1c8] sm:$0xf]  ;;  %v1250_v62 = vld [vmem:[%s2079_s1 + $0x1f8] sm:$0xf0]  ;;  %v1244_v1 = vld [vmem:[%s2079_s1 + $0x1cc] sm:$0xf]  ;;  %v1144_v4 = vor.u32 %v1249_v57, %v1143_v56  ;;  %v1148_v5 = vor.u32 %v1243_v58, %v1145_v60 }
  0x1f   :  { %v1153_v2 = vld [vmem:[%s2079_s1 + $0x1fc] sm:$0xf0]  ;;  %v1152_v6 = vor.u32 %v1250_v62, %v1151_v61  ;;  %v1091_v7 = vld [vmem:[%s2079_s1 + $0x158] sm:$0xf]  ;;  %v1236_v8 = vld [vmem:[%s2079_s1 + $0x188] sm:$0xf0] }
  0x20   :  { %486 = vmatpush.bf16.msrb.mxu0 %v1024_v31  ;;  %v1230_v9 = vld [vmem:[%s2079_s1 + $0x15c] sm:$0xf]  ;;  %v1156_v10 = vor.u32 %v1244_v1, %v1153_v2  ;;  %v1093_v11 = vld [vmem:[%s2079_s1 + $0x18c] sm:$0xf0]  ;;  %v1099_v12 = vld [vmem:[%s2079_s1 + $0x160] sm:$0xf]  ;;  %v1092_v17 = vor.u32 %v1236_v8, %v1091_v7 }
  0x21   :  { %499 = vmatpush.bf16.msrb.mxu1 %v1028_v32  ;;  %512 = vmatpush.bf16.msrb.mxu2 %v1032_v33  ;;  %v1237_v13 = vld [vmem:[%s2079_s1 + $0x190] sm:$0xf0]  ;;  %v1231_v14 = vld [vmem:[%s2079_s1 + $0x164] sm:$0xf]  ;;  %v1101_v15 = vld [vmem:[%s2079_s1 + $0x194] sm:$0xf0]  ;;  %v1096_v18 = vor.u32 %v1230_v9, %v1093_v11 }
  0x22   :  { %525 = vmatpush.bf16.msrb.mxu3 %v1036_v37  ;;  %v1100_v19 = vor.u32 %v1237_v13, %v1099_v12  ;;  %v1039_v20 = vld [vmem:[%s2079_s1 + $0xf0] sm:$0xf]  ;;  %v1223_v21 = vld [vmem:[%s2079_s1 + $0x120] sm:$0xf0]  ;;  %v1217_v22 = vld [vmem:[%s2079_s1 + $0xf4] sm:$0xf]  ;;  %v1104_v23 = vor.u32 %v1231_v14, %v1101_v15 }
  0x23   :  { %v1041_v24 = vld [vmem:[%s2079_s1 + $0x124] sm:$0xf0]  ;;  %v1047_v25 = vld [vmem:[%s2079_s1 + $0xf8] sm:$0xf]  ;;  %v1224_v26 = vld [vmem:[%s2079_s1 + $0x128] sm:$0xf0]  ;;  %v1040_v29 = vor.u32 %v1223_v21, %v1039_v20 }
  0x24   :  { %487 = vmatpush.bf16.msrb.mxu0 %v972_v44  ;;  %v1218_v27 = vld [vmem:[%s2079_s1 + $0xfc] sm:$0xf]  ;;  %v1049_v28 = vld [vmem:[%s2079_s1 + $0x12c] sm:$0xf0]  ;;  %v1044_v30 = vor.u32 %v1217_v22, %v1041_v24  ;;  %v1048_v31 = vor.u32 %v1224_v26, %v1047_v25  ;;  %v987_v32 = vld [vmem:[%s2079_s1 + $0x88] sm:$0xf] }
  0x25   :  { %500 = vmatpush.bf16.msrb.mxu1 %v976_v47  ;;  %513 = vmatpush.bf16.msrb.mxu2 %v980_v48  ;;  %v1210_v33 = vld [vmem:[%s2079_s1 + $0xb8] sm:$0xf0]  ;;  %v1204_v34 = vld [vmem:[%s2079_s1 + $0x8c] sm:$0xf]  ;;  %v1052_v35 = vor.u32 %v1218_v27, %v1049_v28  ;;  %v989_v36 = vld [vmem:[%s2079_s1 + $0xbc] sm:$0xf0] }
  0x26   :  { %526 = vmatpush.bf16.msrb.mxu3 %v984_v52  ;;  %v995_v37 = vld [vmem:[%s2079_s1 + $0x90] sm:$0xf]  ;;  %v1211_v38 = vld [vmem:[%s2079_s1 + $0xc0] sm:$0xf0]  ;;  %v1205_v39 = vld [vmem:[%s2079_s1 + $0x94] sm:$0xf]  ;;  %v988_v41 = vor.u32 %v1210_v33, %v987_v32  ;;  %v992_v43 = vor.u32 %v1204_v34, %v989_v36 }
  0x27   :  { %v997_v40 = vld [vmem:[%s2079_s1 + $0xc4] sm:$0xf0]  ;;  %v935_v42 = vld [vmem:[%s2079_s1 + $0x20] sm:$0xf]  ;;  %v996_v44 = vor.u32 %v1211_v38, %v995_v37  ;;  %v1197_v45 = vld [vmem:[%s2079_s1 + $0x50] sm:$0xf0] }
  0x28   :  { %488 = vmatpush.bf16.msrb.mxu0 %v920_v59  ;;  %v1191_v46 = vld [vmem:[%s2079_s1 + $0x24] sm:$0xf]  ;;  %v937_v47 = vld [vmem:[%s2079_s1 + $0x54] sm:$0xf0]  ;;  %v1000_v48 = vor.u32 %v1205_v39, %v997_v40  ;;  %v943_v49 = vld [vmem:[%s2079_s1 + $0x28] sm:$0xf]  ;;  %v936_v55 = vor.u32 %v1197_v45, %v935_v42 }
  0x29   :  { %501 = vmatpush.bf16.msrb.mxu1 %v924_v63  ;;  %514 = vmatpush.bf16.msrb.mxu2 %v928_v0  ;;  %v1198_v50 = vld [vmem:[%s2079_s1 + $0x58] sm:$0xf0]  ;;  %v1192_v51 = vld [vmem:[%s2079_s1 + $0x2c] sm:$0xf]  ;;  %v945_v52 = vld [vmem:[%s2079_s1 + $0x5c] sm:$0xf0]  ;;  %v940_v56 = vor.u32 %v1191_v46, %v937_v47 }
  0x2a   :  { %527 = vmatpush.bf16.msrb.mxu3 %v932_v3  ;;  %v1159_v53 = vld [vmem:[%s2079_s1 + $0x1d0] sm:$0xf]  ;;  %v1251_v54 = vld [vmem:[%s2079_s1 + $0x200] sm:$0xf0]  ;;  %v944_v57 = vor.u32 %v1198_v50, %v943_v49  ;;  %v948_v58 = vor.u32 %v1192_v51, %v945_v52  ;;  %v1107_v60 = vld [vmem:[%s2079_s1 + $0x168] sm:$0xf] }
  0x2b   :  { %1165 = vmatmul.msk.bf16.vlgmr.msrb.gmra.mxu0 %vm425_vm0, %v1495_v16  ;;  %v1160_v59 = vor.u32 %v1251_v54, %v1159_v53  ;;  %v1238_v61 = vld [vmem:[%s2079_s1 + $0x198] sm:$0xf0]  ;;  %v1055_v63 = vld [vmem:[%s2079_s1 + $0x100] sm:$0xf]  ;;  %v1225_v0 = vld [vmem:[%s2079_s1 + $0x130] sm:$0xf0] }
  0x2c   :  { %536 = vmatpush.bf16.msra.mxu0 %v1144_v4  ;;  %1166 = vmatmul.msk.bf16.vlgmr.msrb.gmra.mxu1 %vm425_vm0, %v1495_v16  ;;  %v1108_v62 = vor.u32 %v1238_v61, %v1107_v60  ;;  %v1056_v1 = vor.u32 %v1225_v0, %v1055_v63  ;;  %v1003_v2 = vld [vmem:[%s2079_s1 + $0x98] sm:$0xf]  ;;  %v1212_v3 = vld [vmem:[%s2079_s1 + $0xc8] sm:$0xf0] }
  0x2d   :  { %549 = vmatpush.bf16.msra.mxu1 %v1148_v5  ;;  %562 = vmatpush.bf16.msra.mxu2 %v1152_v6  ;;  %v1004_v4 = vor.u32 %v1212_v3, %v1003_v2  ;;  %v951_v5 = vld [vmem:[%s2079_s1 + $0x30] sm:$0xf]  ;;  %v1199_v6 = vld [vmem:[%s2079_s1 + $0x60] sm:$0xf0] }
  0x2e   :  { %575 = vmatpush.bf16.msra.mxu3 %v1156_v10  ;;  %1167 = vmatmul.msk.bf16.vlgmr.msrb.gmra.mxu2 %vm425_vm0, %v1495_v16  ;;  %v952_v7 = vor.u32 %v1199_v6, %v951_v5 }
  0x2f   :  { %1168 = vmatmul.msk.bf16.vlgmr.msrb.gmra.mxu3 %vm425_vm0, %v1495_v16 }
  0x30   :  { %537 = vmatpush.bf16.msra.mxu0 %v1092_v17 }
  0x31   :  { %550 = vmatpush.bf16.msra.mxu1 %v1096_v18  ;;  %563 = vmatpush.bf16.msra.mxu2 %v1100_v19 }
  0x32   :  { %576 = vmatpush.bf16.msra.mxu3 %v1104_v23 }
  0x34   :  { %538 = vmatpush.bf16.msra.mxu0 %v1040_v29 }
  0x35   :  { %551 = vmatpush.bf16.msra.mxu1 %v1044_v30  ;;  %564 = vmatpush.bf16.msra.mxu2 %v1048_v31 }
  0x36   :  { %577 = vmatpush.bf16.msra.mxu3 %v1052_v35 }
  0x38   :  { %539 = vmatpush.bf16.msra.mxu0 %v988_v41 }
  0x39   :  { %552 = vmatpush.bf16.msra.mxu1 %v992_v43  ;;  %565 = vmatpush.bf16.msra.mxu2 %v996_v44 }
  0x3a   :  { %578 = vmatpush.bf16.msra.mxu3 %v1000_v48 }
  0x3c   :  { %540 = vmatpush.bf16.msra.mxu0 %v936_v55 }
  0x3d   :  { %553 = vmatpush.bf16.msra.mxu1 %v940_v56  ;;  %566 = vmatpush.bf16.msra.mxu2 %v944_v57 }
  0x3e   :  { %579 = vmatpush.bf16.msra.mxu3 %v948_v58 }
  0x3f   :  { %1169 = vmatmul.msk.bf16.vlgmr.msra.gmra.mxu0 %vm425_vm0, %v1495_v16 }
  0x40   :  { %588 = vmatpush.bf16.msrb.mxu0 %v1160_v59  ;;  %1170 = vmatmul.msk.bf16.vlgmr.msra.gmra.mxu1 %vm425_vm0, %v1495_v16 }
  0x41   :  { %1171 = vmatmul.msk.bf16.vlgmr.msra.gmra.mxu2 %vm425_vm0, %v1495_v16  ;;  %1172 = vmatmul.msk.bf16.vlgmr.msra.gmra.mxu3 %vm425_vm0, %v1495_v16 }
  0x44   :  { %589 = vmatpush.bf16.msrb.mxu0 %v1108_v62 }
  0x48   :  { %590 = vmatpush.bf16.msrb.mxu0 %v1056_v1 }
  0x4c   :  { %591 = vmatpush.bf16.msrb.mxu0 %v1004_v4 }
  0x50   :  { %592 = vmatpush.bf16.msrb.mxu0 %v952_v7 }
  0x53   :  { %1173 = vmatmul.msk.bf16.vlgmr.msrb.gmra.mxu0 %vm425_vm0, %v1495_v16 }
  0x8e   :  { %v92_v8 = vpop.permute.xlu0 %91 }
  0x8f   :  { %v1751_v9 = vperm.slane %v92_v8, 0 }
  0x94   :  { %v438_v10 = vpop.f32.mrf.mxu0 }
  0x95   :  { %v439_v11 = vadd.f32 %v438_v10, %v1751_v9  ;;  %v451_v12 = vpop.f32.mrf.mxu1 }
  0x96   :  { %v452_v13 = vadd.f32 %v451_v12, %v1751_v9 }
  0x97   :  { %v1174_v14 = vmul.f32 -1.442695, %v439_v11 }
  0x98   :  { %v1175_v15 = vmul.f32 -1.442695, %v452_v13 }
  0x99   :  { %1254 = vpow2.f32 %v1174_v14 }
  0x9a   :  { %1256 = vpow2.f32 %v1175_v15 }
  0x9c   :  { %v440_v20 = vpop.f32.mrf.mxu0 }
  0x9d   :  { %v464_v17 = vpop.f32.mrf.mxu2  ;;  %v453_v21 = vpop.f32.mrf.mxu1 }
  0x9e   :  { %v465_v18 = vadd.f32 %v464_v17, %v1751_v9  ;;  %v477_v19 = vpop.f32.mrf.mxu3 }
  0x9f   :  { %v478_v16 = vadd.f32 %v477_v19, %v1751_v9  ;;  %v1255_v23 = vpop.eup %1254 }
  0xa0   :  { %v1176_v22 = vmul.f32 -1.442695, %v465_v18  ;;  %v1257_v25 = vpop.eup %1256  ;;  %v1757_v26 = vadd.f32 1.0, %v1255_v23 }
  0xa1   :  { %v1177_v24 = vmul.f32 -1.442695, %v478_v16  ;;  %v1759_v27 = vadd.f32 1.0, %v1257_v25 }
  0xa2   :  { %1258 = vpow2.f32 %v1176_v22  ;;  %v661_v57 = vand.u32 2147483648, %v1757_v26  ;;  %vm655_vm10 = vweird.f32 %v1757_v26  ;;  %v659_v25 = vand.u32 2147483647, %v1757_v26 }
  0xa3   :  { %1260 = vpow2.f32 %v1177_v24  ;;  %vm670_vm1 = vweird.f32 %v1759_v27  ;;  %v674_v61 = vand.u32 2147483647, %v1759_v27  ;;  %v676_v2 = vand.u32 2147483648, %v1759_v27 }
  0xa4   :  { %1262 = vrcp.f32 %v1759_v27 }
  0xa5   :  { %v466_v28 = vpop.f32.mrf.mxu2  ;;  %1264 = vrcp.f32 %v1757_v26  ;;  %vm1850_vm13 = vcmp.eq.f32.partialorder %v674_v61, 8.507059e+37 }
  0xa6   :  { %v479_v29 = vpop.f32.mrf.mxu3 }
  0xa7   :  { %v1848_v29 = vor.u32 1.1754944e-38, %v661_v57 }
  0xa8   :  { %v1259_v30 = vpop.eup %1258  ;;  %v490_v31 = vpop.f32.mrf.mxu0 }
  0xa9   :  { %v1261_v32 = vpop.eup %1260  ;;  %v1763_v33 = vadd.f32 1.0, %v1259_v30  ;;  %v503_v34 = vpop.f32.mrf.mxu1  ;;  %v491_v37 = vadd.f32 %v490_v31, %v1751_v9  ;;  %v677_v31 = vor.u32 1.1754944e-38, %v676_v2 }
  0xaa   :  { %v1765_v35 = vadd.f32 1.0, %v1261_v32  ;;  %v1767_v36 = vpop.eup %1262  ;;  %v504_v38 = vadd.f32 %v503_v34, %v1751_v9 }
  0xab   :  { %1266 = vrcp.f32 %v1763_v33  ;;  %v1772_v39 = vpop.eup %1264  ;;  %v666_v40 = vmul.f32 %v1767_v36, %v1759_v27  ;;  %v1178_v42 = vmul.f32 -1.442695, %v491_v37  ;;  %vm685_vm2 = vweird.f32 %v1763_v33 }
  0xac   :  { %1268 = vrcp.f32 %v1765_v35  ;;  %v651_v41 = vmul.f32 %v1772_v39, %v1757_v26  ;;  %v1179_v43 = vmul.f32 -1.442695, %v504_v38  ;;  %vm671_vm4 = vweird.f32 %v1767_v36 }
  0xad   :  { %v667_v49 = vsub.f32 1.0, %v666_v40  ;;  %1270 = vpow2.f32 %v1178_v42  ;;  %v691_v3 = vand.u32 2147483648, %v1763_v33  ;;  %v689_v7 = vand.u32 2147483647, %v1763_v33  ;;  %vm1829_vm9 = vmor %vm670_vm1, %vm671_vm4 }
  0xae   :  { %1272 = vpow2.f32 %v1179_v43  ;;  %v652_v54 = vsub.f32 1.0, %v651_v41  ;;  %vm700_vm6 = vweird.f32 %v1765_v35  ;;  %v704_v13 = vand.u32 2147483647, %v1765_v35 }
  0xaf   :  { %v668_v60 = vmul.f32 %v1767_v36, %v667_v49  ;;  %vm656_vm8 = vweird.f32 %v1772_v39  ;;  %v706_v18 = vand.u32 2147483648, %v1765_v35  ;;  %v692_v22 = vor.u32 1.1754944e-38, %v691_v3 }
  0xb0   :  { %v492_v47 = vpop.f32.mrf.mxu0  ;;  %v653_v1 = vmul.f32 %v1772_v39, %v652_v54  ;;  %vm690_vm11 = vcmp.eq.f32.partialorder %v689_v7, 8.507059e+37  ;;  %vm1854_vm14 = vcmp.eq.f32.partialorder %v704_v13, 8.507059e+37  ;;  %vm1860_vm15 = vmor %vm655_vm10, %vm656_vm8 }
  0xb1   :  { %v516_v44 = vpop.f32.mrf.mxu2  ;;  %v1780_v48 = vpop.eup %1266  ;;  %v669_v17 = vadd.f32 %v1767_v36, %v668_v60 }
  0xb2   :  { %v517_v45 = vadd.f32 %v516_v44, %v1751_v9  ;;  %v529_v46 = vpop.f32.mrf.mxu3  ;;  %v505_v51 = vpop.f32.mrf.mxu1  ;;  %v681_v52 = vmul.f32 %v1780_v48, %v1763_v33  ;;  %vm686_vm3 = vweird.f32 %v1780_v48  ;;  %v1823_v16 = vadd.f32 %v1772_v39, %v653_v1 }
  0xb3   :  { %v530_v50 = vadd.f32 %v529_v46, %v1751_v9  ;;  %v1785_v53 = vpop.eup %1268  ;;  %vm1809_vm5 = vmor %vm685_vm2, %vm686_vm3  ;;  %v673_v34 = vsel %vm1829_vm9, %v1767_v36, %v669_v17 }
  0xb4   :  { %v1180_v55 = vmul.f32 -1.442695, %v517_v45  ;;  %v682_v58 = vsub.f32 1.0, %v681_v52  ;;  %v696_v59 = vmul.f32 %v1785_v53, %v1765_v35  ;;  %v1271_v0 = vpop.eup %1270  ;;  %vm701_vm7 = vweird.f32 %v1785_v53 }
  0xb5   :  { %v1181_v56 = vmul.f32 -1.442695, %v530_v50  ;;  %v1273_v5 = vpop.eup %1272  ;;  %v1803_v10 = vadd.f32 1.0, %v1271_v0  ;;  %vm1844_vm12 = vmor %vm700_vm6, %vm701_vm7  ;;  %v707_v35 = vor.u32 1.1754944e-38, %v706_v18  ;;  %v658_v40 = vsel %vm1860_vm15, %v1772_v39, %v1823_v16 }
  0xb6   :  { %1274 = vpow2.f32 %v1180_v55  ;;  %v683_v62 = vmul.f32 %v1780_v48, %v682_v58  ;;  %v697_v63 = vsub.f32 1.0, %v696_v59  ;;  %v1816_v14 = vadd.f32 1.0, %v1273_v5 }
  0xb7   :  { %1276 = vpow2.f32 %v1181_v56  ;;  %v1891_v49 = vsel %vm1850_vm13, %v677_v31, %v673_v34  ;;  %vm715_vm0 = vweird.f32 %v1803_v10  ;;  %v719_v51 = vand.u32 2147483647, %v1803_v10 }
  0xb8   :  { %v684_v6 = vadd.f32 %v1780_v48, %v683_v62  ;;  %v698_v8 = vmul.f32 %v1785_v53, %v697_v63  ;;  %1278 = vrcp.f32 %v1803_v10  ;;  %v734_v43 = vand.u32 2147483647, %v1816_v14 }
  0xb9   :  { %v518_v4 = vpop.f32.mrf.mxu2  ;;  %1280 = vrcp.f32 %v1816_v14  ;;  %v736_v36 = vand.u32 2147483648, %v1816_v14  ;;  %v721_v55 = vand.u32 2147483648, %v1803_v10  ;;  %vm730_vm1 = vweird.f32 %v1816_v14 }
  0xba   :  { %v531_v11 = vpop.f32.mrf.mxu3  ;;  %v699_v23 = vadd.f32 %v1785_v53, %v698_v8  ;;  %v688_v28 = vsel %vm1809_vm5, %v1780_v48, %v684_v6  ;;  %vm1907_vm2 = vcmp.eq.f32.partialorder %v734_v43, 8.507059e+37  ;;  %vm1912_vm3 = vcmp.eq.f32.partialorder %v719_v51, 8.507059e+37 }
  0xbb   :  { %v1875_v41 = vsel %vm690_vm11, %v692_v22, %v688_v28  ;;  %v737_v62 = vor.u32 1.1754944e-38, %v736_v36  ;;  %vm871_vm7 = vcmask 1042434   ;;  %vm869_vm11 = vcmask 1040384  }
  0xbc   :  { %v542_v15 = vpop.f32.mrf.mxu0  ;;  %v1275_v20 = vpop.eup %1274  ;;  %v703_v42 = vsel %vm1844_vm12, %v1785_v53, %v699_v23  ;;  %v859_v54 = vrot.slane %v1875_v41, 6  ;;  %vm1952_vm13 = vcmp.eq.f32.partialorder %v659_v25, 8.507059e+37 }
  0xbd   :  { %v555_v19 = vpop.f32.mrf.mxu1  ;;  %v1277_v24 = vpop.eup %1276  ;;  %v1867_v37 = vadd.f32 1.0, %v1275_v20  ;;  %v543_v45 = vadd.f32 %v542_v15, %v1751_v9  ;;  %v1904_v58 = vsel %vm1854_vm14, %v707_v35, %v703_v42  ;;  %vm873_vm14 = vcmask 1041408  }
  0xbe   :  { %v1869_v38 = vadd.f32 1.0, %v1277_v24  ;;  %v1881_v44 = vpop.eup %1278  ;;  %v556_v46 = vadd.f32 %v555_v19, %v1751_v9  ;;  %v722_v42 = vor.u32 1.1754944e-38, %v721_v55  ;;  %v860_v51 = vrot.slane %v1904_v58, 5 }
  0xbf   :  { %1282 = vrcp.f32 %v1867_v37  ;;  %v1887_v48 = vpop.eup %1280  ;;  %v711_v50 = vmul.f32 %v1881_v44, %v1803_v10  ;;  %v1182_v63 = vmul.f32 -1.442695, %v543_v45  ;;  %vm716_vm5 = vweird.f32 %v1881_v44 }
  0xc0   :  { %v726_v56 = vmul.f32 %v1887_v48, %v1816_v14  ;;  %1284 = vrcp.f32 %v1869_v38  ;;  %v1183_v0 = vmul.f32 -1.442695, %v556_v46  ;;  %vm731_vm4 = vweird.f32 %v1887_v48  ;;  %vm1939_vm9 = vmor %vm715_vm0, %vm716_vm5 }
  0xc1   :  { %v712_v59 = vsub.f32 1.0, %v711_v50  ;;  %vm745_vm6 = vweird.f32 %v1867_v37  ;;  %1286 = vpow2.f32 %v1182_v63  ;;  %v749_v11 = vand.u32 2147483647, %v1867_v37  ;;  %vm1930_vm8 = vmor %vm730_vm1, %vm731_vm4 }
  0xc2   :  { %v727_v61 = vsub.f32 1.0, %v726_v56  ;;  %1288 = vpow2.f32 %v1183_v0  ;;  %v751_v17 = vand.u32 2147483648, %v1867_v37  ;;  %v766_v23 = vand.u32 2147483648, %v1869_v38 }
  0xc3   :  { %v713_v1 = vmul.f32 %v1881_v44, %v712_v59  ;;  %vm760_vm12 = vweird.f32 %v1869_v38  ;;  %v764_v10 = vand.u32 2147483647, %v1869_v38  ;;  %vm750_vm4 = vcmp.eq.f32.partialorder %v749_v11, 8.507059e+37 }
  0xc4   :  { %v568_v47 = vpop.f32.mrf.mxu2  ;;  %v581_v52 = vpop.f32.mrf.mxu3  ;;  %v728_v6 = vmul.f32 %v1887_v48, %v727_v61  ;;  %v752_v25 = vor.u32 1.1754944e-38, %v751_v17  ;;  %v767_v46 = vor.u32 1.1754944e-38, %v766_v23  ;;  %v858_v56 = vrot.slane %v1891_v49, 7 }
  0xc5   :  { %v544_v53 = vpop.f32.mrf.mxu0  ;;  %v557_v57 = vpop.f32.mrf.mxu1  ;;  %v569_v3 = vadd.f32 %v568_v47, %v1751_v9  ;;  %v582_v4 = vadd.f32 %v581_v52, %v1751_v9  ;;  %v714_v7 = vadd.f32 %v1881_v44, %v713_v1  ;;  %v872_v49 = vsel %vm871_vm7, %v859_v54, %v860_v51 }
  0xc6   :  { %v1283_v5 = vpop.eup %1282  ;;  %v729_v13 = vadd.f32 %v1887_v48, %v728_v6 }
  0xc7   :  { %v741_v8 = vmul.f32 %v1283_v5, %v1867_v37  ;;  %v1285_v12 = vpop.eup %1284  ;;  %v1184_v18 = vmul.f32 -1.442695, %v569_v3  ;;  %v1185_v19 = vmul.f32 -1.442695, %v582_v4  ;;  %vm746_vm10 = vweird.f32 %v1283_v5 }
  0xc8   :  { %v756_v14 = vmul.f32 %v1285_v12, %v1869_v38  ;;  %v718_v28 = vsel %vm1939_vm9, %v1881_v44, %v714_v7  ;;  %v733_v30 = vsel %vm1930_vm8, %v1887_v48, %v729_v13  ;;  %vm761_vm0 = vweird.f32 %v1285_v12  ;;  %v1287_v35 = vpop.eup %1286  ;;  %vm1962_vm1 = vmor %vm745_vm6, %vm746_vm10 }
  0xc9   :  { %v742_v22 = vsub.f32 1.0, %v741_v8  ;;  %1290 = vpow2.f32 %v1184_v18  ;;  %v1289_v44 = vpop.eup %1288  ;;  %v723_v47 = vsel %vm1912_vm3, %v722_v42, %v718_v28  ;;  %v738_v48 = vsel %vm1907_vm2, %v737_v62, %v733_v30  ;;  %vm1974_vm5 = vmor %vm760_vm12, %vm761_vm0 }
  0xca   :  { %v757_v32 = vsub.f32 1.0, %v756_v14  ;;  %1292 = vpow2.f32 %v1185_v19  ;;  %v1978_v50 = vadd.f32 1.0, %v1287_v35  ;;  %vm765_vm3 = vcmp.eq.f32.partialorder %v764_v10, 8.507059e+37 }
  0xcb   :  { %v743_v31 = vmul.f32 %v1283_v5, %v742_v22  ;;  %v861_v59 = vrot.slane %v723_v47, 4  ;;  %v862_v60 = vrot.slane %v738_v48, 3  ;;  %vm875_vm2 = vcmask 1044484  }
  0xcc   :  { %v570_v20 = vpop.f32.mrf.mxu2  ;;  %v583_v24 = vpop.f32.mrf.mxu3  ;;  %v758_v45 = vmul.f32 %v1285_v12, %v757_v32  ;;  %vm877_vm6 = vcmask 1046534   ;;  %vm879_vm8 = vcmask 1045508   ;;  %v663_v3 = vsel %vm1952_vm13, %v1848_v29, %v658_v40 }
  0xcd   :  { %v744_v36 = vadd.f32 %v1283_v5, %v743_v31  ;;  %vm881_vm9 = vcmask 1043456   ;;  %v870_v41 = vsel %vm869_vm11, %v663_v3, %v858_v56  ;;  %v876_v54 = vsel %vm875_vm2, %v861_v59, %v862_v60 }
  0xce   :  { %v759_v53 = vadd.f32 %v1285_v12, %v758_v45  ;;  %v874_v33 = vsel %vm873_vm14, %v870_v41, %v872_v49  ;;  %v781_v24 = vand.u32 2147483648, %v1978_v50  ;;  %v779_v59 = vand.u32 2147483647, %v1978_v50 }
  0xcf   :  { %v748_v52 = vsel %vm1962_vm1, %v1283_v5, %v744_v36  ;;  %v1291_v55 = vpop.eup %1290 }
  0xd0   :  { %v594_v34 = vpop.f32.mrf.mxu0  ;;  %v753_v57 = vsel %vm750_vm4, %v752_v25, %v748_v52  ;;  %v763_v62 = vsel %vm1974_vm5, %v1285_v12, %v759_v53  ;;  %v1293_v63 = vpop.eup %1292  ;;  %v1993_v1 = vadd.f32 1.0, %v1291_v55 }
  0xd1   :  { %v595_v43 = vadd.f32 %v594_v34, %v1751_v9  ;;  %v1980_v9 = vadd.f32 1.0, %v1289_v44  ;;  %v863_v61 = vrot.slane %v753_v57, 2  ;;  %v768_v58 = vsel %vm765_vm3, %v767_v46, %v763_v62 }
  0xd2   :  { %v864_v0 = vrot.slane %v768_v58, 1  ;;  %v2003_v4 = vadd.f32 1.0, %v1293_v63  ;;  %vm805_vm12 = vweird.f32 %v1993_v1  ;;  %v809_v31 = vand.u32 2147483647, %v1993_v1 }
  0xd3   :  { %1294 = vrcp.f32 %v1980_v9  ;;  %v1186_v38 = vmul.f32 -1.442695, %v595_v43  ;;  %vm790_vm15 = vweird.f32 %v1980_v9  ;;  %v794_v21 = vand.u32 2147483647, %v1980_v9 }
  0xd4   :  { %1296 = vrcp.f32 %v1978_v50  ;;  %v878_v5 = vsel %vm877_vm6, %v863_v61, %v864_v0  ;;  %v796_v14 = vand.u32 2147483648, %v1980_v9  ;;  %v811_v42 = vand.u32 2147483648, %v1993_v1 }
  0xd5   :  { %1298 = vpow2.f32 %v1186_v38  ;;  %v880_v7 = vsel %vm879_vm8, %v876_v54, %v878_v5  ;;  %vm2033_vm0 = vcmp.eq.f32.partialorder %v794_v21, 8.507059e+37  ;;  %vm820_vm1 = vweird.f32 %v2003_v4 }
  0xd6   :  { %1300 = vrcp.f32 %v1993_v1  ;;  %v882_v8 = vsel %vm881_vm9, %v874_v33, %v880_v7  ;;  %v797_v25 = vor.u32 1.1754944e-38, %v796_v14  ;;  %v826_v46 = vand.u32 2147483648, %v2003_v4 }
  0xd7   :  { %891 = vst [vmem:[%s2082_s3] sm:$0xff] %v882_v8  ;;  %1302 = vrcp.f32 %v2003_v4  ;;  %vm810_vm2 = vcmp.eq.f32.partialorder %v809_v31, 8.507059e+37  ;;  %v824_v48 = vand.u32 2147483647, %v2003_v4  ;;  %v812_v51 = vor.u32 1.1754944e-38, %v811_v42 }
  0xd8   :  { %v596_v2 = vpop.f32.mrf.mxu0  ;;  %vm775_vm9 = vweird.f32 %v1978_v50  ;;  %v827_v61 = vor.u32 1.1754944e-38, %v826_v46  ;;  %v892_v58 = vlaneseq }
  0xd9   :  { %v1295_v6 = vpop.eup %1294  ;;  %v782_v2 = vor.u32 1.1754944e-38, %v781_v24 }
  0xda   :  { %v786_v39 = vmul.f32 %v1295_v6, %v1980_v9  ;;  %v2009_v16 = vpop.eup %1296  ;;  %vm791_vm7 = vweird.f32 %v1295_v6 }
  0xdb   :  { %v1299_v40 = vpop.eup %1298  ;;  %v771_v12 = vmul.f32 %v2009_v16, %v1978_v50  ;;  %vm2026_vm10 = vmor %vm790_vm15, %vm791_vm7  ;;  %vm776_vm5 = vweird.f32 %v2009_v16  ;;  %vm825_vm7 = vcmp.eq.f32.partialorder %v824_v48, 8.507059e+37 }
  0xdc   :  { %v787_v29 = vsub.f32 1.0, %v786_v39  ;;  %v1301_v11 = vpop.eup %1300  ;;  %v2017_v13 = vadd.f32 1.0, %v1299_v40  ;;  %vm2066_vm15 = vmor %vm775_vm9, %vm776_vm5  ;;  %vm894_vm5 = vcmp.lt.s32.totalorder %v892_v58, 544 }
  0xdd   :  { %v801_v15 = vmul.f32 %v1301_v11, %v1993_v1  ;;  %v1303_v18 = vpop.eup %1302  ;;  %v772_v20 = vsub.f32 1.0, %v771_v12  ;;  %vm806_vm13 = vweird.f32 %v1301_v11 }
  0xde   :  { %v788_v17 = vmul.f32 %v1295_v6, %v787_v29  ;;  %1304 = vrcp.f32 %v2017_v13  ;;  %v816_v22 = vmul.f32 %v1303_v18, %v2003_v4  ;;  %vm821_vm4 = vweird.f32 %v1303_v18  ;;  %vm2043_vm3 = vmor %vm805_vm12, %vm806_vm13 }
  0xdf   :  { %v802_v19 = vsub.f32 1.0, %v801_v15  ;;  %v773_v34 = vmul.f32 %v2009_v16, %v772_v20  ;;  %vm2052_vm6 = vmor %vm820_vm1, %vm821_vm4  ;;  %v839_v53 = vand.u32 2147483647, %v2017_v13  ;;  %v841_v55 = vand.u32 2147483648, %v2017_v13 }
  0xe0   :  { %v789_v28 = vadd.f32 %v1295_v6, %v788_v17  ;;  %v817_v10 = vsub.f32 1.0, %v816_v22  ;;  %vm885_vm1 = vcmask 1043459   ;;  %vm887_vm4 = vcmask 1042432  }
  0xe1   :  { %v803_v23 = vmul.f32 %v1301_v11, %v802_v19  ;;  %v774_v9 = vadd.f32 %v2009_v16, %v773_v34  ;;  %v842_v50 = vor.u32 1.1754944e-38, %v841_v55  ;;  %vm840_vm13 = vcmp.eq.f32.partialorder %v839_v53, 8.507059e+37 }
  0xe2   :  { %v818_v26 = vmul.f32 %v1303_v18, %v817_v10  ;;  %v793_v44 = vsel %vm2026_vm10, %v1295_v6, %v789_v28  ;;  %vm835_vm10 = vweird.f32 %v2017_v13 }
  0xe3   :  { %v804_v30 = vadd.f32 %v1301_v11, %v803_v23  ;;  %v798_v56 = vsel %vm2033_vm0, %v797_v25, %v793_v44  ;;  %v778_v49 = vsel %vm2066_vm15, %v2009_v16, %v774_v9  ;;  %vm780_vm0 = vcmp.eq.f32.partialorder %v779_v59, 8.507059e+37 }
  0xe4   :  { %v1305_v32 = vpop.eup %1304  ;;  %v819_v45 = vadd.f32 %v1303_v18, %v818_v26  ;;  %v865_v0 = vrot.slane %v798_v56, 7  ;;  %v783_v54 = vsel %vm780_vm0, %v782_v2, %v778_v49 }
  0xe5   :  { %v831_v43 = vmul.f32 %v1305_v32, %v2017_v13  ;;  %v808_v47 = vsel %vm2043_vm3, %v1301_v11, %v804_v30  ;;  %vm836_vm8 = vweird.f32 %v1305_v32 }
  0xe6   :  { %v823_v57 = vsel %vm2052_vm6, %v1303_v18, %v819_v45  ;;  %v813_v60 = vsel %vm810_vm2, %v812_v51, %v808_v47  ;;  %vm837_vm12 = vmor %vm835_vm10, %vm836_vm8  ;;  %v883_v33 = vsel %vm869_vm11, %v783_v54, %v865_v0 }
  0xe7   :  { %v832_v37 = vsub.f32 1.0, %v831_v43  ;;  %v828_v1 = vsel %vm825_vm7, %v827_v61, %v823_v57  ;;  %v866_v3 = vrot.slane %v813_v60, 6 }
  0xe8   :  { %v867_v5 = vrot.slane %v828_v1, 5 }
  0xe9   :  { %v833_v38 = vmul.f32 %v1305_v32, %v832_v37  ;;  %v884_v7 = vsel %vm873_vm14, %v883_v33, %v866_v3 }
  0xeb   :  { %v834_v63 = vadd.f32 %v1305_v32, %v833_v38 }
  0xed   :  { %v838_v4 = vsel %vm837_vm12, %v1305_v32, %v834_v63 }
  0xee   :  { %v843_v41 = vsel %vm840_vm13, %v842_v50, %v838_v4 }
  0xef   :  { %v868_v6 = vrot.slane %v843_v41, 4 }
  0xf1   :  { %v886_v8 = vsel %vm885_vm1, %v867_v5, %v868_v6 }
  0xf2   :  { %v888_v39 = vsel %vm887_vm4, %v884_v7, %v886_v8 }
  0xf3   :  { %896 = vst.msk [vmem:[%s2082_s3 + $0x8] sm:$0x1f] %vm894_vm5, %v888_v39 }

</bundles_post_ra>
